<compile_context>
chip_gen: v5e
topology: v5e:2x2
jax: 0.10.0
libtpu: 0.0.40
codegen_flags: <defaults>
</compile_context>

<pallas_src>
import jax
import jax.numpy as jnp
import numpy as np
from jax.experimental import pallas as pl
from jax.experimental.pallas import tpu as pltpu

# ---------------- small, module-consistent configuration ----------------
B = 4                  # batch
CIN = 4                # inp_channels
COUT = 4               # out_channels
K = 3                  # kernel_size (odd => conv output length == input length)
LMAX = 3
D = (LMAX + 1) ** 2    # d_irrep = 16
N = 64                 # sequence length
PAD = K // 2
RES_B, RES_A = 8, 8    # synthetic SO3 grid resolution
G = RES_B * RES_A      # 64
EPS = 1e-5

CIND = CIN * D         # 64
CD = COUT * D          # 64
CG = COUT * G          # 256

# batches per grid step: target ~128 rows per step so the MXU sublanes are filled,
# while keeping >=2 grid steps for v7x dual-TensorCore sharding.
NB = max(1, min(B, max(1, 128 // N)))
assert B % NB == 0
GRID = B // NB


def _l_of_index():
    l_of = np.zeros((D,), np.int32)
    for l in range(LMAX + 1):
        l_of[l * l:(l + 1) * (l + 1)] = l
    return jnp.asarray(l_of)


def _balance_weight():
    bal = np.zeros((D,), np.float32)
    for l in range(LMAX + 1):
        bal[l * l:(l + 1) * (l + 1)] = 1.0 / (2 * l + 1)
    bal /= (LMAX + 1)
    return jnp.asarray(bal)


def _build_params(key):
    """Deterministic synthetic parameters with the shapes implied by __init__."""
    ks = jax.random.split(key, 7)
    dense_w = jax.random.normal(ks[0], (LMAX + 1, COUT, CIN, K), jnp.float32) * 0.1
    conv_b_scalar = jax.random.normal(ks[1], (COUT,), jnp.float32) * 0.1
    Wg = jax.random.normal(ks[2], (COUT, COUT), jnp.float32) * 0.2      # gating_linear.weight
    gb = jax.random.normal(ks[3], (COUT,), jnp.float32) * 0.1           # gating_linear.bias
    tg = jax.random.normal(ks[4], (RES_B, RES_A, D), jnp.float32) * 0.3  # SO3_grid to-grid
    fg = jax.random.normal(ks[5], (RES_B, RES_A, D), jnp.float32) * 0.3  # SO3_grid from-grid
    # non-trivial affine so the affine-folding into the fused weight is actually exercised
    affine = 1.0 + 0.3 * jax.random.normal(ks[6], (LMAX + 1, COUT), jnp.float32)

    # block-diagonal irrep conv weight, exactly as the module __init__ builds it
    w_full = jnp.zeros((COUT, D, CIN, D, K), jnp.float32)
    l_start = 0
    for l in range(LMAX + 1):
        for j in range(2 * l + 1):
            w_full = w_full.at[:, l_start + j, :, l_start + j, :].set(dense_w[l])
        l_start += 2 * l + 1
    w_full = w_full.reshape(CD, CIND, K)
    bias_full = jnp.zeros((CD,), jnp.float32).at[::D].set(conv_b_scalar)

    return dict(conv_w=w_full, conv_b=bias_full, Wg=Wg, gb=gb,
                tg=tg.reshape(G, D), fg=fg.reshape(G, D), affine=affine)


def prepare_packed(params):
    """One-time packing of module parameters into kernel-ready matrices (hot path never rebuilds)."""
    l_of = _l_of_index()
    bal_tiled = jnp.tile(_balance_weight(), COUT)                 # col = c*D + i -> bal[i]
    aff_tiled = params['affine'][l_of, :].T.reshape(-1)           # col = c*D + i -> affine[l(i), c]
    e0 = (jnp.arange(D) == 0).astype(jnp.float32)
    mask0 = jnp.tile(e0, COUT)                                    # 1 on l=0 (i==0) columns

    # conv weight -> (K, CIN*D, COUT*D): channel-last matmul form
    wk = jnp.transpose(params['conv_w'], (2, 1, 0))

    eyeC = jnp.eye(COUT, dtype=jnp.float32)
    e0_col = e0[:, None]
    Wg_exp = jnp.kron(params['Wg'].T, e0_col)                     # (CD, COUT)
    E_scat = jnp.kron(eyeC, e0_col.T)                             # (COUT, CD) scatter to i==0 cols
    M_gate = Wg_exp @ E_scat                                      # (CD, CD) folded gating matrix
    gb_scat = params['gb'] @ E_scat                               # gating bias on i==0 cols
    TG_exp = jnp.kron(eyeC, params['tg'].T)                       # (CD, CG)
    FG_exp = jnp.kron(eyeC, params['fg'])                         # (CG, CD)

    # fuse (to-grid | gating) into one matrix; fold rms_norm affine into its rows (exact).
    # column order [TG | MG] puts the slice point at CG=256, a multiple of 128 -> aligned slices.
    wpost = aff_tiled[:, None] * jnp.concatenate([TG_exp, M_gate], axis=1)   # (CD, CG+CD)
    # zero the l=0 columns of from-grid so no (1 - m0) masking is needed in-kernel (exact).
    fg0 = FG_exp * (1.0 - mask0)[None, :]                          # (CG, CD)

    consts = jnp.stack([params['conv_b'], bal_tiled, mask0, gb_scat], axis=0)  # (4, CD)
    return dict(wk=wk, wpost=wpost, fg0=fg0, consts=consts)


def _kernel(xp_ref, wk_ref, wpost_ref, fg0_ref, c_ref, o_ref):
    cst = c_ref[...]
    conv_b = cst[0:1]    # (1, CD)
    bal = cst[1:2]
    m0 = cst[2:3]
    gbs = cst[3:4]

    # ---- block-diagonal irrep conv1d: K shifted matmuls per batch slab (halo already padded) ----
    hs = []
    for b in range(NB):
        acc = jnp.dot(xp_ref[b, 0:N, :], wk_ref[0], preferred_element_type=jnp.float32)
        for k in range(1, K):
            acc = acc + jnp.dot(xp_ref[b, k:k + N, :], wk_ref[k],
                                preferred_element_type=jnp.float32)
        hs.append(acc)
    h = (jnp.concatenate(hs, axis=0) if NB > 1 else hs[0]) + conv_b      # (NB*N, CD)

    # ---- rms_norm_sh: center l=0, component norm with degree balancing (affine folded away) ----
    f0_mean = jnp.sum(h * m0, axis=1, keepdims=True) * (1.0 / COUT)
    feat = h - m0 * f0_mean
    var = jnp.sum(feat * feat * bal, axis=1, keepdims=True) * (1.0 / COUT)
    hn = feat * jax.lax.rsqrt(var + EPS)

    # ---- fused (to-grid | gating) matmul; silu(0)=0 keeps gating zero on i!=0 columns ----
    post = jnp.dot(hn, wpost_ref[...], preferred_element_type=jnp.float32)   # (NB*N, CG+CD)
    xg = post[:, :CG]
    xg = xg * jax.nn.sigmoid(xg)                                             # SiLU on the sphere
    pre = post[:, CG:] + gbs
    scal = pre * jax.nn.sigmoid(pre)                                         # SiLU gating scalars

    # ---- from-grid (l=0 columns pre-zeroed) and combine: cat(gating, s2[:, 1:, :]) ----
    s2 = jnp.dot(xg, fg0_ref[...], preferred_element_type=jnp.float32)       # (NB*N, CD)
    o_ref[...] = scal + s2


def irrep_conv1d_block(x, packed):
    """Fused Pallas implementation of IrrepConv1dBlock.forward (norm=True, activation=True, scale=1)."""
    Bx, cind, Nx = x.shape
    assert (Bx, cind, Nx) == (B, CIND, N)

    # channel-last + halo pad along N (only per-call layout work; all weight packing is one-time)
    xt = jnp.transpose(x, (0, 2, 1))                              # (B, N, CIN*D)
    xpad = jnp.pad(xt, ((0, 0), (PAD, PAD), (0, 0)))              # (B, N+2p, CIN*D)

    out = pl.pallas_call(
        _kernel,
        out_shape=jax.ShapeDtypeStruct((B * N, CD), jnp.float32),
        grid=(GRID,),
        in_specs=[
            pl.BlockSpec((NB, N + 2 * PAD, CIND), lambda g: (g, 0, 0)),   # activation stream
            pl.BlockSpec((K, CIND, CD), lambda g: (0, 0, 0)),             # conv weights (constant)
            pl.BlockSpec((CD, CG + CD), lambda g: (0, 0)),                # fused to-grid|gating
            pl.BlockSpec((CG, CD), lambda g: (0, 0)),                     # from-grid (l=0 zeroed)
            pl.BlockSpec((4, CD), lambda g: (0, 0)),                      # per-lane constants
        ],
        out_specs=pl.BlockSpec((NB * N, CD), lambda g: (g, 0)),
        compiler_params=pltpu.CompilerParams(dimension_semantics=("parallel",)),
    )(xpad, packed['wk'], packed['wpost'], packed['fg0'], packed['consts'])

    # (b n) (c i) -> b (c i) n  (module output layout).  A channel-last consumer could take
    # out.reshape(B, N, CD) directly and skip this lane-sparse transpose.
    return out.reshape(B, N, CD).transpose(0, 2, 1)


def reference(x, params):
    """Pure-JAX reference following the PyTorch forward literally (f32-accurate precision)."""
    prec = jax.lax.Precision.HIGHEST
    h = jax.lax.conv_general_dilated(
        x, params['conv_w'], window_strides=(1,), padding=[(PAD, PAD)],
        dimension_numbers=('NCH', 'OIH', 'NCH'), precision=prec)
    h = h + params['conv_b'][None, :, None]
    # b (c i) n -> (b n) i c
    h = h.reshape(B, COUT, D, N).transpose(0, 3, 2, 1).reshape(B * N, D, COUT)
    # rms_norm_sh
    f0 = h[:, :1, :]
    f0 = f0 - f0.mean(axis=2, keepdims=True)
    feat = jnp.concatenate([f0, h[:, 1:, :]], axis=1)
    fn = jnp.einsum('nic,i->nc', feat * feat, _balance_weight(), precision=prec)
    fn = fn.mean(axis=1)[:, None, None]
    inv = jax.lax.rsqrt(fn + EPS)
    affine_exp = params['affine'][_l_of_index(), :]
    hn = feat * inv * affine_exp[None]
    # gating
    g = jnp.dot(hn[:, 0, :], params['Wg'].T, precision=prec) + params['gb']
    g = g * jax.nn.sigmoid(g)
    # SeparableS2Activation
    xg = jnp.einsum('gi,nic->ngc', params['tg'], hn, precision=prec)
    xg = xg * jax.nn.sigmoid(xg)
    s2 = jnp.einsum('gi,ngc->nic', params['fg'], xg, precision=prec)
    out = jnp.concatenate([g[:, None, :], s2[:, 1:, :]], axis=1)
    # (b n) i c -> b (c i) n
    return out.reshape(B, N, D, COUT).transpose(0, 3, 2, 1).reshape(B, CD * 1, N)


if __name__ == "__main__":
    key = jax.random.PRNGKey(0)
    pkey, xkey = jax.random.split(key)
    params = _build_params(pkey)
    packed = prepare_packed(params)          # one-time weight packing, outside the hot path
    x = jax.random.normal(xkey, (B, CIND, N), jnp.float32)

    fwd = jax.jit(irrep_conv1d_block)
    y = jax.block_until_ready(fwd(x, packed))
    y_ref = jax.block_until_ready(reference(x, params))
    np.testing.assert_allclose(np.asarray(y), np.asarray(y_ref), rtol=2e-3, atol=2e-3)
    print("KERNEL_OK")
</pallas_src>

<mosaic_0001>
module attributes {stable_mosaic.version = 11 : i64} {
  func.func @_kernel(%arg0: i32, %arg1: memref<2x66x64xf32, #tpu.memory_space<vmem>>, %arg2: memref<3x64x64xf32, #tpu.memory_space<vmem>>, %arg3: memref<64x320xf32, #tpu.memory_space<vmem>>, %arg4: memref<256x64xf32, #tpu.memory_space<vmem>>, %arg5: memref<4x64xf32, #tpu.memory_space<vmem>>, %arg6: memref<128x64xf32, #tpu.memory_space<vmem>>) attributes {dimension_semantics = [#tpu.dimension_semantics<parallel>], iteration_bounds = array<i64: 2>, scalar_prefetch = 0 : i64, scratch_operands = 0 : i64, tpu.core_type = #tpu.core_type<tc>, window_params = [{transform_indices = @transform_0, window_bounds = array<i64: 2, 66, 64>}, {pipeline_mode = #tpu.pipeline_mode<synchronous>, transform_indices = @transform_1, window_bounds = array<i64: 3, 64, 64>}, {pipeline_mode = #tpu.pipeline_mode<synchronous>, transform_indices = @transform_2, window_bounds = array<i64: 64, 320>}, {pipeline_mode = #tpu.pipeline_mode<synchronous>, transform_indices = @transform_3, window_bounds = array<i64: 256, 64>}, {pipeline_mode = #tpu.pipeline_mode<synchronous>, transform_indices = @transform_4, window_bounds = array<i64: 4, 64>}, {transform_indices = @transform_5, window_bounds = array<i64: 128, 64>}]} {
    %c0 = arith.constant 0 : index
    %c0_0 = arith.constant 0 : index
    %0 = vector.load %arg5[%c0, %c0_0] : memref<4x64xf32, #tpu.memory_space<vmem>>, vector<4x64xf32>
    %1 = vector.extract_strided_slice %0 {offsets = [0, 0], sizes = [1, 64], strides = [1, 1]} : vector<4x64xf32> to vector<1x64xf32>
    %2 = vector.extract_strided_slice %0 {offsets = [1, 0], sizes = [1, 64], strides = [1, 1]} : vector<4x64xf32> to vector<1x64xf32>
    %3 = vector.extract_strided_slice %0 {offsets = [2, 0], sizes = [1, 64], strides = [1, 1]} : vector<4x64xf32> to vector<1x64xf32>
    %4 = vector.extract_strided_slice %0 {offsets = [3, 0], sizes = [1, 64], strides = [1, 1]} : vector<4x64xf32> to vector<1x64xf32>
    %c0_1 = arith.constant 0 : index
    %c0_2 = arith.constant 0 : index
    %c0_3 = arith.constant 0 : index
    %5 = vector.load %arg1[%c0_1, %c0_2, %c0_3] : memref<2x66x64xf32, #tpu.memory_space<vmem>>, vector<1x64x64xf32>
    %6 = vector.shape_cast %5 : vector<1x64x64xf32> to vector<64x64xf32>
    %c0_4 = arith.constant 0 : index
    %c0_5 = arith.constant 0 : index
    %c0_6 = arith.constant 0 : index
    %7 = vector.load %arg2[%c0_4, %c0_5, %c0_6] : memref<3x64x64xf32, #tpu.memory_space<vmem>>, vector<1x64x64xf32>
    %8 = vector.shape_cast %7 : vector<1x64x64xf32> to vector<64x64xf32>
    %cst = arith.constant dense<0.000000e+00> : vector<64x64xf32>
    %9 = tpu.matmul %6, %8, %cst {dimension_numbers = #tpu.dot_dimension_numbers<[1], [0], [0], [1], [0, 0, 1, 1], [], []>} : vector<64x64xf32>, vector<64x64xf32>, vector<64x64xf32> -> vector<64x64xf32>
    %c0_7 = arith.constant 0 : index
    %c1 = arith.constant 1 : index
    %c0_8 = arith.constant 0 : index
    %10 = vector.load %arg1[%c0_7, %c1, %c0_8] : memref<2x66x64xf32, #tpu.memory_space<vmem>>, vector<1x64x64xf32>
    %11 = vector.shape_cast %10 : vector<1x64x64xf32> to vector<64x64xf32>
    %c1_9 = arith.constant 1 : index
    %c0_10 = arith.constant 0 : index
    %c0_11 = arith.constant 0 : index
    %12 = vector.load %arg2[%c1_9, %c0_10, %c0_11] : memref<3x64x64xf32, #tpu.memory_space<vmem>>, vector<1x64x64xf32>
    %13 = vector.shape_cast %12 : vector<1x64x64xf32> to vector<64x64xf32>
    %cst_12 = arith.constant dense<0.000000e+00> : vector<64x64xf32>
    %14 = tpu.matmul %11, %13, %cst_12 {dimension_numbers = #tpu.dot_dimension_numbers<[1], [0], [0], [1], [0, 0, 1, 1], [], []>} : vector<64x64xf32>, vector<64x64xf32>, vector<64x64xf32> -> vector<64x64xf32>
    %15 = arith.addf %9, %14 : vector<64x64xf32>
    %c0_13 = arith.constant 0 : index
    %c2 = arith.constant 2 : index
    %c0_14 = arith.constant 0 : index
    %16 = vector.load %arg1[%c0_13, %c2, %c0_14] : memref<2x66x64xf32, #tpu.memory_space<vmem>>, vector<1x64x64xf32>
    %17 = vector.shape_cast %16 : vector<1x64x64xf32> to vector<64x64xf32>
    %c2_15 = arith.constant 2 : index
    %c0_16 = arith.constant 0 : index
    %c0_17 = arith.constant 0 : index
    %18 = vector.load %arg2[%c2_15, %c0_16, %c0_17] : memref<3x64x64xf32, #tpu.memory_space<vmem>>, vector<1x64x64xf32>
    %19 = vector.shape_cast %18 : vector<1x64x64xf32> to vector<64x64xf32>
    %cst_18 = arith.constant dense<0.000000e+00> : vector<64x64xf32>
    %20 = tpu.matmul %17, %19, %cst_18 {dimension_numbers = #tpu.dot_dimension_numbers<[1], [0], [0], [1], [0, 0, 1, 1], [], []>} : vector<64x64xf32>, vector<64x64xf32>, vector<64x64xf32> -> vector<64x64xf32>
    %21 = arith.addf %15, %20 : vector<64x64xf32>
    %c1_19 = arith.constant 1 : index
    %c0_20 = arith.constant 0 : index
    %c0_21 = arith.constant 0 : index
    %22 = vector.load %arg1[%c1_19, %c0_20, %c0_21] : memref<2x66x64xf32, #tpu.memory_space<vmem>>, vector<1x64x64xf32>
    %23 = vector.shape_cast %22 : vector<1x64x64xf32> to vector<64x64xf32>
    %c0_22 = arith.constant 0 : index
    %c0_23 = arith.constant 0 : index
    %c0_24 = arith.constant 0 : index
    %24 = vector.load %arg2[%c0_22, %c0_23, %c0_24] : memref<3x64x64xf32, #tpu.memory_space<vmem>>, vector<1x64x64xf32>
    %25 = vector.shape_cast %24 : vector<1x64x64xf32> to vector<64x64xf32>
    %cst_25 = arith.constant dense<0.000000e+00> : vector<64x64xf32>
    %26 = tpu.matmul %23, %25, %cst_25 {dimension_numbers = #tpu.dot_dimension_numbers<[1], [0], [0], [1], [0, 0, 1, 1], [], []>} : vector<64x64xf32>, vector<64x64xf32>, vector<64x64xf32> -> vector<64x64xf32>
    %c1_26 = arith.constant 1 : index
    %c1_27 = arith.constant 1 : index
    %c0_28 = arith.constant 0 : index
    %27 = vector.load %arg1[%c1_26, %c1_27, %c0_28] : memref<2x66x64xf32, #tpu.memory_space<vmem>>, vector<1x64x64xf32>
    %28 = vector.shape_cast %27 : vector<1x64x64xf32> to vector<64x64xf32>
    %c1_29 = arith.constant 1 : index
    %c0_30 = arith.constant 0 : index
    %c0_31 = arith.constant 0 : index
    %29 = vector.load %arg2[%c1_29, %c0_30, %c0_31] : memref<3x64x64xf32, #tpu.memory_space<vmem>>, vector<1x64x64xf32>
    %30 = vector.shape_cast %29 : vector<1x64x64xf32> to vector<64x64xf32>
    %cst_32 = arith.constant dense<0.000000e+00> : vector<64x64xf32>
    %31 = tpu.matmul %28, %30, %cst_32 {dimension_numbers = #tpu.dot_dimension_numbers<[1], [0], [0], [1], [0, 0, 1, 1], [], []>} : vector<64x64xf32>, vector<64x64xf32>, vector<64x64xf32> -> vector<64x64xf32>
    %32 = arith.addf %26, %31 : vector<64x64xf32>
    %c1_33 = arith.constant 1 : index
    %c2_34 = arith.constant 2 : index
    %c0_35 = arith.constant 0 : index
    %33 = vector.load %arg1[%c1_33, %c2_34, %c0_35] : memref<2x66x64xf32, #tpu.memory_space<vmem>>, vector<1x64x64xf32>
    %34 = vector.shape_cast %33 : vector<1x64x64xf32> to vector<64x64xf32>
    %c2_36 = arith.constant 2 : index
    %c0_37 = arith.constant 0 : index
    %c0_38 = arith.constant 0 : index
    %35 = vector.load %arg2[%c2_36, %c0_37, %c0_38] : memref<3x64x64xf32, #tpu.memory_space<vmem>>, vector<1x64x64xf32>
    %36 = vector.shape_cast %35 : vector<1x64x64xf32> to vector<64x64xf32>
    %cst_39 = arith.constant dense<0.000000e+00> : vector<64x64xf32>
    %37 = tpu.matmul %34, %36, %cst_39 {dimension_numbers = #tpu.dot_dimension_numbers<[1], [0], [0], [1], [0, 0, 1, 1], [], []>} : vector<64x64xf32>, vector<64x64xf32>, vector<64x64xf32> -> vector<64x64xf32>
    %38 = arith.addf %32, %37 : vector<64x64xf32>
    %39 = tpu.concatenate %21, %38 in 0 : vector<64x64xf32>, vector<64x64xf32> -> vector<128x64xf32>
    %40 = vector.broadcast %1 : vector<1x64xf32> to vector<128x64xf32>
    %41 = arith.addf %39, %40 : vector<128x64xf32>
    %42 = vector.broadcast %3 : vector<1x64xf32> to vector<128x64xf32>
    %43 = arith.mulf %41, %42 : vector<128x64xf32>
    %cst_40 = arith.constant dense<0.000000e+00> : vector<128xf32>
    %44 = vector.multi_reduction <add>, %43, %cst_40 [1] : vector<128x64xf32> to vector<128xf32>
    %45 = vector.shape_cast %44 : vector<128xf32> to vector<128x1xf32>
    %cst_41 = arith.constant 2.500000e-01 : f32
    %46 = vector.broadcast %cst_41 : f32 to vector<128x1xf32>
    %47 = arith.mulf %45, %46 : vector<128x1xf32>
    %48 = vector.broadcast %3 : vector<1x64xf32> to vector<128x64xf32>
    %49 = vector.broadcast %47 : vector<128x1xf32> to vector<128x64xf32>
    %50 = arith.mulf %48, %49 : vector<128x64xf32>
    %51 = arith.subf %41, %50 : vector<128x64xf32>
    %52 = arith.mulf %51, %51 : vector<128x64xf32>
    %53 = vector.broadcast %2 : vector<1x64xf32> to vector<128x64xf32>
    %54 = arith.mulf %52, %53 : vector<128x64xf32>
    %cst_42 = arith.constant dense<0.000000e+00> : vector<128xf32>
    %55 = vector.multi_reduction <add>, %54, %cst_42 [1] : vector<128x64xf32> to vector<128xf32>
    %56 = vector.shape_cast %55 : vector<128xf32> to vector<128x1xf32>
    %cst_43 = arith.constant 2.500000e-01 : f32
    %57 = vector.broadcast %cst_43 : f32 to vector<128x1xf32>
    %58 = arith.mulf %56, %57 : vector<128x1xf32>
    %cst_44 = arith.constant 9.99999974E-6 : f32
    %59 = vector.broadcast %cst_44 : f32 to vector<128x1xf32>
    %60 = arith.addf %58, %59 : vector<128x1xf32>
    %61 = math.rsqrt %60 : vector<128x1xf32>
    %62 = vector.broadcast %61 : vector<128x1xf32> to vector<128x64xf32>
    %63 = arith.mulf %51, %62 : vector<128x64xf32>
    %c0_45 = arith.constant 0 : index
    %c0_46 = arith.constant 0 : index
    %64 = vector.load %arg3[%c0_45, %c0_46] : memref<64x320xf32, #tpu.memory_space<vmem>>, vector<64x320xf32>
    %cst_47 = arith.constant dense<0.000000e+00> : vector<128x320xf32>
    %65 = tpu.matmul %63, %64, %cst_47 {dimension_numbers = #tpu.dot_dimension_numbers<[1], [0], [0], [1], [0, 0, 1, 1], [], []>} : vector<128x64xf32>, vector<64x320xf32>, vector<128x320xf32> -> vector<128x320xf32>
    %66 = vector.extract_strided_slice %65 {offsets = [0, 0], sizes = [128, 256], strides = [1, 1]} : vector<128x320xf32> to vector<128x256xf32>
    %67 = arith.negf %66 : vector<128x256xf32>
    %68 = math.exp %67 : vector<128x256xf32>
    %cst_48 = arith.constant 1.000000e+00 : f32
    %69 = vector.broadcast %cst_48 : f32 to vector<128x256xf32>
    %70 = arith.addf %69, %68 : vector<128x256xf32>
    %71 = arith.divf %69, %70 : vector<128x256xf32>
    %72 = arith.mulf %66, %71 : vector<128x256xf32>
    %73 = vector.extract_strided_slice %65 {offsets = [0, 256], sizes = [128, 64], strides = [1, 1]} : vector<128x320xf32> to vector<128x64xf32>
    %74 = vector.broadcast %4 : vector<1x64xf32> to vector<128x64xf32>
    %75 = arith.addf %73, %74 : vector<128x64xf32>
    %76 = arith.negf %75 : vector<128x64xf32>
    %77 = math.exp %76 : vector<128x64xf32>
    %cst_49 = arith.constant 1.000000e+00 : f32
    %78 = vector.broadcast %cst_49 : f32 to vector<128x64xf32>
    %79 = arith.addf %78, %77 : vector<128x64xf32>
    %80 = arith.divf %78, %79 : vector<128x64xf32>
    %81 = arith.mulf %75, %80 : vector<128x64xf32>
    %c0_50 = arith.constant 0 : index
    %c0_51 = arith.constant 0 : index
    %82 = vector.load %arg4[%c0_50, %c0_51] : memref<256x64xf32, #tpu.memory_space<vmem>>, vector<256x64xf32>
    %cst_52 = arith.constant dense<0.000000e+00> : vector<128x64xf32>
    %83 = tpu.matmul %72, %82, %cst_52 {dimension_numbers = #tpu.dot_dimension_numbers<[1], [0], [0], [1], [0, 0, 1, 1], [], []>} : vector<128x256xf32>, vector<256x64xf32>, vector<128x64xf32> -> vector<128x64xf32>
    %84 = arith.addf %81, %83 : vector<128x64xf32>
    %c0_53 = arith.constant 0 : index
    %c0_54 = arith.constant 0 : index
    %85 = vector.load %arg6[%c0_53, %c0_54] : memref<128x64xf32, #tpu.memory_space<vmem>>, vector<128x64xf32>
    tpu.vector_store %arg6[%c0_53, %c0_54], %84 {strides = array<i32>} : memref<128x64xf32, #tpu.memory_space<vmem>>, vector<128x64xf32>,
    return
  }
  func.func @transform_0(%arg0: i32) -> (i32, i32, i32) {
    %c0_i32 = arith.constant 0 : i32
    %c0_i32_0 = arith.constant 0 : i32
    %c0_i32_1 = arith.constant 0 : i32
    return %arg0, %c0_i32, %c0_i32_0 : i32, i32, i32
  }
  func.func @transform_1(%arg0: i32) -> (i32, i32, i32) {
    %c0_i32 = arith.constant 0 : i32
    %c0_i32_0 = arith.constant 0 : i32
    %c0_i32_1 = arith.constant 0 : i32
    %c0_i32_2 = arith.constant 0 : i32
    return %c0_i32, %c0_i32_0, %c0_i32_1 : i32, i32, i32
  }
  func.func @transform_2(%arg0: i32) -> (i32, i32) {
    %c0_i32 = arith.constant 0 : i32
    %c0_i32_0 = arith.constant 0 : i32
    %c0_i32_1 = arith.constant 0 : i32
    return %c0_i32, %c0_i32_0 : i32, i32
  }
  func.func @transform_3(%arg0: i32) -> (i32, i32) {
    %c0_i32 = arith.constant 0 : i32
    %c0_i32_0 = arith.constant 0 : i32
    %c0_i32_1 = arith.constant 0 : i32
    return %c0_i32, %c0_i32_0 : i32, i32
  }
  func.func @transform_4(%arg0: i32) -> (i32, i32) {
    %c0_i32 = arith.constant 0 : i32
    %c0_i32_0 = arith.constant 0 : i32
    %c0_i32_1 = arith.constant 0 : i32
    return %c0_i32, %c0_i32_0 : i32, i32
  }
  func.func @transform_5(%arg0: i32) -> (i32, i32) {
    %c0_i32 = arith.constant 0 : i32
    %c0_i32_0 = arith.constant 0 : i32
    return %arg0, %c0_i32 : i32, i32
  }
}

</mosaic_0001>

<bundles_post_ra>
// kernel: irrep_conv1d_block.1
= control target key start
LH: loop header
LB: loop body
LE: loop exit
PB: predicated region body
PF: predicated region fallthrough
CT: control target
= control target key end

     0   :  { %s3094_s18 = smov 0   ;;  %s4648_s0 = inlined_call_operand.vmem [shape: f32[4,66,64], index: 0, kind: input, shape index: {}]   ;;  %s4649_s1 = inlined_call_operand.vmem [shape: f32[3,64,64], index: 1, kind: input, shape index: {}]   ;;  %s4650_s2 = inlined_call_operand.vmem [shape: f32[64,320], index: 2, kind: input, shape index: {}]   ;;  %s4651_s3 = inlined_call_operand.vmem [shape: f32[256,64], index: 3, kind: input, shape index: {}]   ;;  %s4652_s4 = inlined_call_operand.vmem [shape: f32[4,64], index: 4, kind: input, shape index: {}]   ;;  %s4653_s5 = inlined_call_operand.vmem [shape: f32[256,64], index: 5, kind: output, shape index: {}]  }
   0x1 LB: > { %s2627_s19 = sadd.s32 4294967295, %s3062_s18   ;;  %p2631_p0 = scmp.ge.s32.totalorder %s3062_s18, 1  ;;  %s3062_s18 = sphi %s3094_s18, %s15_s18  }
   0x2   : > { %p189_p1 = scmp.lt.s32.totalorder %s3062_s18, 3 }
   0x4   : > { %p190_p2 = pnand %p2631_p0, %p189_p1 }
   0x5   : > { %s2632_s26 = sshll.u32 (!%p190_p2), %s2627_s19, 1  ;;  %s4385_s29 = sshll.u32 (!%p190_p2), %s2627_s19, 4 }
   0x6   : > { %193 = sbr.rel (%p190_p2) target bundleno = 960 (0x3c0), region = 40  ;;  %p219_p3 = scmp.lt.s32.totalorder (!%p190_p2), %s2632_s26, 3 }
   0x7   : > { %p226_p4 = scmp.lt.s32.totalorder (!%p190_p2), %s4385_s29, 31 }
   0xb   : > { %v2667_v0 = vld [vmem:[%s4649_s1 + $0xb8] sm:$0xff]  ;;  %v3108_v1 = vld [vmem:[%s4649_s1 + $0xb0] sm:$0xff]  ;;  %v2665_v5 = vld [vmem:[%s4649_s1 + $0xa8] sm:$0xff]  ;;  %s4677_s26 = smov (!%p219_p3, %s2632_s26), 3  ;;  %vm265_vm0 = vcmask 523264   ;;  %s4679_s29 = smov (!%p226_p4, %s4385_s29), 31 }
   0xc   : > { %v2643_v2 = vld [vmem:[%s4649_s1 + $0x78] sm:$0xff]  ;;  %445 = vmatpush.msra.mxu3 %v2667_v0  ;;  %v2642_v4 = vld [vmem:[%s4649_s1 + $0x70] sm:$0xff]  ;;  %v2641_v7 = vld [vmem:[%s4649_s1 + $0x68] sm:$0xff]  ;;  %s2822_s27 = smul.u32 72, %s4677_s26  ;;  %s2635_s19 = sshll.u32 %s4679_s29, 3 }
   0xd   : > { %298 = vmatpush.msra.mxu0 %v2643_v2  ;;  %v247_v3 = vld [vmem:[%s4649_s1 + $0x38] sm:$0xff]  ;;  %v246_v6 = vld [vmem:[%s4649_s1 + $0x30] sm:$0xff]  ;;  %v245_v8 = vld [vmem:[%s4649_s1 + $0x28] sm:$0xff]  ;;  %s4478_s7 = scalar_lea.vmem %s4653_s5, %s2635_s19 }
   0xe   : > { %363 = vmatpush.msra.mxu1 %v247_v3  ;;  %446 = vmatpush.msra.mxu3 %v3108_v1  ;;  %v2664_v9 = vld [vmem:[%s4649_s1 + $0xa0] sm:$0xff]  ;;  %v2663_v12 = vld [vmem:[%s4649_s1 + $0x98] sm:$0xff]  ;;  %v2662_v15 = vld [vmem:[%s4649_s1 + $0x90] sm:$0xff]  ;;  %s3167_s14 = scalar_lea.vmem %s4648_s0, %s2822_s27 }
   0xf   : > { %299 = vmatpush.msra.mxu0 %v2642_v4  ;;  %v2640_v10 = vld [vmem:[%s4649_s1 + $0x60] sm:$0xff]  ;;  %v2639_v13 = vld [vmem:[%s4649_s1 + $0x58] sm:$0xff]  ;;  %v2638_v16 = vld [vmem:[%s4649_s1 + $0x50] sm:$0xff] }
  0x10   : > { %364 = vmatpush.msra.mxu1 %v246_v6  ;;  %447 = vmatpush.msra.mxu3 %v2665_v5  ;;  %v244_v11 = vld [vmem:[%s4649_s1 + $0x20] sm:$0xff]  ;;  %v243_v14 = vld [vmem:[%s4649_s1 + $0x18] sm:$0xff]  ;;  %v242_v17 = vld [vmem:[%s4649_s1 + $0x10] sm:$0xff] }
  0x11   : > { %300 = vmatpush.msra.mxu0 %v2641_v7  ;;  %v2661_v18 = vld [vmem:[%s4649_s1 + $0x88] sm:$0xff]  ;;  %v2660_v21 = vld [vmem:[%s4649_s1 + $0x80] sm:$0xff]  ;;  %v398_v30 = vld [vmem:[%s3167_s14 + $0x12] sm:$0xff] }
  0x12   : > { %365 = vmatpush.msra.mxu1 %v245_v8  ;;  %448 = vmatpush.msra.mxu3 %v2664_v9  ;;  %v2637_v19 = vld [vmem:[%s4649_s1 + $0x48] sm:$0xff]  ;;  %v2636_v22 = vld [vmem:[%s4649_s1 + $0x40] sm:$0xff]  ;;  %v250_v31 = vld [vmem:[%s3167_s14 + $0x11] sm:$0xff] }
  0x13   : > { %301 = vmatpush.msra.mxu0 %v2640_v10  ;;  %v241_v20 = vld [vmem:[%s4649_s1 + $0x8] sm:$0xff]  ;;  %v240_v24 = vld [vmem:[%s4649_s1] sm:$0xff]  ;;  %v234_v32 = vld [vmem:[%s3167_s14 + $0x10] sm:$0xff] }
  0x14   : > { %366 = vmatpush.msra.mxu1 %v244_v11  ;;  %449 = vmatpush.msra.mxu3 %v2663_v12  ;;  %v396_v23 = vld [vmem:[%s3167_s14 + $0x2] sm:$0xff]  ;;  %v397_v27 = vld [vmem:[%s3167_s14 + $0xa] sm:$0xff]  ;;  %v399_v33 = vld [vmem:[%s3167_s14 + $0x1a] sm:$0xff] }
  0x15   : > { %302 = vmatpush.msra.mxu0 %v2639_v13  ;;  %v248_v25 = vld [vmem:[%s3167_s14 + $0x1] sm:$0xff]  ;;  %v249_v28 = vld [vmem:[%s3167_s14 + $0x9] sm:$0xff]  ;;  %v251_v34 = vld [vmem:[%s3167_s14 + $0x19] sm:$0xff] }
  0x16   : > { %367 = vmatpush.msra.mxu1 %v243_v14  ;;  %450 = vmatpush.msra.mxu3 %v2662_v15  ;;  %v232_v26 = vld [vmem:[%s3167_s14] sm:$0xff]  ;;  %v233_v29 = vld [vmem:[%s3167_s14 + $0x8] sm:$0xff]  ;;  %v235_v35 = vld [vmem:[%s3167_s14 + $0x18] sm:$0xff] }
  0x17   : > { %303 = vmatpush.msra.mxu0 %v2638_v16  ;;  %v400_v36 = vld [vmem:[%s3167_s14 + $0x22] sm:$0xff]  ;;  %v401_v39 = vld [vmem:[%s3167_s14 + $0x2a] sm:$0xff]  ;;  %v402_v42 = vld [vmem:[%s3167_s14 + $0x32] sm:$0xff] }
  0x18   : > { %368 = vmatpush.msra.mxu1 %v242_v17  ;;  %451 = vmatpush.msra.mxu3 %v2661_v18  ;;  %v252_v37 = vld [vmem:[%s3167_s14 + $0x21] sm:$0xff]  ;;  %v253_v40 = vld [vmem:[%s3167_s14 + $0x29] sm:$0xff]  ;;  %v254_v43 = vld [vmem:[%s3167_s14 + $0x31] sm:$0xff] }
  0x19   : > { %304 = vmatpush.msra.mxu0 %v2637_v19  ;;  %v236_v38 = vld [vmem:[%s3167_s14 + $0x20] sm:$0xff]  ;;  %v237_v41 = vld [vmem:[%s3167_s14 + $0x28] sm:$0xff]  ;;  %v238_v44 = vld [vmem:[%s3167_s14 + $0x30] sm:$0xff] }
  0x1a   : > { %369 = vmatpush.msra.mxu1 %v241_v20  ;;  %452 = vmatpush.msra.mxu3 %v2660_v21  ;;  %v403_v45 = vld [vmem:[%s3167_s14 + $0x3a] sm:$0xff]  ;;  %v2684_v48 = vld [vmem:[%s3167_s14 + $0x49] sm:$0xff]  ;;  %v2685_v50 = vld [vmem:[%s3167_s14 + $0x51] sm:$0xff] }
  0x1b   : > { %305 = vmatpush.msra.mxu0 %v2636_v22  ;;  %2668 = vmatmul.msk.f32.vlgmr.msra.gmra.mxu3 %vm265_vm0, %v396_v23  ;;  %v255_v46 = vld [vmem:[%s3167_s14 + $0x39] sm:$0xff]  ;;  %v2676_v49 = vld [vmem:[%s3167_s14 + $0x48] sm:$0xff]  ;;  %v2677_v52 = vld [vmem:[%s3167_s14 + $0x50] sm:$0xff] }
  0x1c   : > { %370 = vmatpush.msra.mxu1 %v240_v24  ;;  %2644 = vmatmul.msk.f32.vlgmr.msra.gmra.mxu0 %vm265_vm0, %v248_v25  ;;  %v239_v47 = vld [vmem:[%s3167_s14 + $0x38] sm:$0xff]  ;;  %v2708_v51 = vld [vmem:[%s3167_s14 + $0x4a] sm:$0xff]  ;;  %v2687_v56 = vld [vmem:[%s3167_s14 + $0x61] sm:$0xff] }
  0x1d   : > { %2652 = vmatmul.msk.f32.vlgmr.msra.gmra.mxu1 %vm265_vm0, %v232_v26  ;;  %535 = vmatpush.msrb.mxu3 %v2643_v2  ;;  %v2686_v53 = vld [vmem:[%s3167_s14 + $0x59] sm:$0xff] }
  0x1e   : > { %600 = vmatpush.msrb.mxu0 %v247_v3  ;;  %673 = vmatpush.msrb.mxu1 %v2667_v0  ;;  %v2709_v54 = vld [vmem:[%s3167_s14 + $0x52] sm:$0xff]  ;;  %v2710_v57 = vld [vmem:[%s3167_s14 + $0x5a] sm:$0xff]  ;;  %v2688_v3 = vld [vmem:[%s3167_s14 + $0x69] sm:$0xff] }
  0x1f   : > { %536 = vmatpush.msrb.mxu3 %v2642_v4  ;;  %v2678_v55 = vld [vmem:[%s3167_s14 + $0x58] sm:$0xff]  ;;  %v3256_v60 = vld [vmem:[%s4652_s4] sm:$0xf] }
  0x20   : > { %601 = vmatpush.msrb.mxu0 %v246_v6  ;;  %674 = vmatpush.msrb.mxu1 %v3108_v1  ;;  %v3259_v62 = vperm.slane %v3256_v60, 0  ;;  %v2679_v63 = vld [vmem:[%s3167_s14 + $0x60] sm:$0xff]  ;;  %v3264_v2 = vperm.slane %v3256_v60, 2  ;;  %v2713_v26 = vld [vmem:[%s3167_s14 + $0x72] sm:$0xff] }
  0x21   : > { %537 = vmatpush.msrb.mxu3 %v2641_v7  ;;  %v2711_v4 = vld [vmem:[%s3167_s14 + $0x62] sm:$0xff]  ;;  %v2690_v25 = vld [vmem:[%s3167_s14 + $0x79] sm:$0xff] }
  0x22   : > { %602 = vmatpush.msrb.mxu0 %v245_v8  ;;  %675 = vmatpush.msrb.mxu1 %v2665_v5 }
  0x23   : > { %2669 = vmatmul.msk.f32.gmra.mxu3 %vm265_vm0, %v397_v27 }
  0x24   : > { %603 = vmatpush.msrb.mxu0 %v244_v11  ;;  %538 = vmatpush.msrb.mxu3 %v2640_v10  ;;  %v2680_v11 = vld [vmem:[%s3167_s14 + $0x68] sm:$0xff] }
  0x25   : > { %2645 = vmatmul.msk.f32.gmra.mxu0 %vm265_vm0, %v249_v28  ;;  %2653 = vmatmul.msk.f32.gmra.mxu1 %vm265_vm0, %v233_v29 }
  0x26   : > { %676 = vmatpush.msrb.mxu1 %v2664_v9  ;;  %604 = vmatpush.msrb.mxu0 %v243_v14  ;;  %v2689_v14 = vld [vmem:[%s3167_s14 + $0x71] sm:$0xff] }
  0x27   : > { %539 = vmatpush.msrb.mxu3 %v2639_v13 }
  0x28   : > { %677 = vmatpush.msrb.mxu1 %v2663_v12  ;;  %605 = vmatpush.msrb.mxu0 %v242_v17 }
  0x29   : > { %540 = vmatpush.msrb.mxu3 %v2638_v16 }
  0x2a   : > { %678 = vmatpush.msrb.mxu1 %v2662_v15  ;;  %606 = vmatpush.msrb.mxu0 %v241_v20  ;;  %v2712_v15 = vld [vmem:[%s3167_s14 + $0x6a] sm:$0xff] }
  0x2b   : > { %2670 = vmatmul.msk.f32.gmra.mxu3 %vm265_vm0, %v398_v30 }
  0x2c   : > { %679 = vmatpush.msrb.mxu1 %v2661_v18  ;;  %541 = vmatpush.msrb.mxu3 %v2637_v19 }
  0x2d   : > { %2646 = vmatmul.msk.f32.gmra.mxu0 %vm265_vm0, %v250_v31  ;;  %2654 = vmatmul.msk.f32.gmra.mxu1 %vm265_vm0, %v234_v32 }
  0x2e   : > { %607 = vmatpush.msrb.mxu0 %v240_v24  ;;  %680 = vmatpush.msrb.mxu1 %v2660_v21 }
  0x2f   : > { %542 = vmatpush.msrb.mxu3 %v2636_v22  ;;  %v2681_v22 = vld [vmem:[%s3167_s14 + $0x70] sm:$0xff] }
  0x33   : > { %2671 = vmatmul.msk.f32.gmra.mxu3 %vm265_vm0, %v399_v33  ;;  %v2682_v33 = vld [vmem:[%s3167_s14 + $0x78] sm:$0xff] }
  0x35   : > { %2647 = vmatmul.msk.f32.gmra.mxu0 %vm265_vm0, %v251_v34  ;;  %2655 = vmatmul.msk.f32.gmra.mxu1 %vm265_vm0, %v235_v35 }
  0x3b   : > { %2672 = vmatmul.msk.f32.gmra.mxu3 %vm265_vm0, %v400_v36  ;;  %v2691_v36 = vld [vmem:[%s3167_s14 + $0x81] sm:$0xff] }
  0x3d   : > { %2648 = vmatmul.msk.f32.gmra.mxu0 %vm265_vm0, %v252_v37  ;;  %2656 = vmatmul.msk.f32.gmra.mxu1 %vm265_vm0, %v236_v38  ;;  %v2714_v37 = vld [vmem:[%s3167_s14 + $0x7a] sm:$0xff] }
  0x43   : > { %2673 = vmatmul.msk.f32.gmra.mxu3 %vm265_vm0, %v401_v39 }
  0x45   : > { %2649 = vmatmul.msk.f32.gmra.mxu0 %vm265_vm0, %v253_v40  ;;  %2657 = vmatmul.msk.f32.gmra.mxu1 %vm265_vm0, %v237_v41 }
  0x4b   : > { %2674 = vmatmul.msk.f32.gmra.mxu3 %vm265_vm0, %v402_v42 }
  0x4d   : > { %2650 = vmatmul.msk.f32.gmra.mxu0 %vm265_vm0, %v254_v43  ;;  %2658 = vmatmul.msk.f32.gmra.mxu1 %vm265_vm0, %v238_v44  ;;  %v2683_v43 = vld [vmem:[%s3167_s14 + $0x80] sm:$0xff] }
  0x53   : > { %2675 = vmatmul.msk.f32.gmra.mxu3 %vm265_vm0, %v403_v45 }
  0x55   : > { %2651 = vmatmul.msk.f32.gmra.mxu0 %vm265_vm0, %v255_v46  ;;  %2659 = vmatmul.msk.f32.gmra.mxu1 %vm265_vm0, %v239_v47  ;;  %v2715_v46 = vld [vmem:[%s3167_s14 + $0x82] sm:$0xff] }
  0x5b   : > { %2692 = vmatmul.msk.f32.vlgmr.msrb.gmra.mxu3 %vm265_vm0, %v2684_v48 }
  0x5d   : > { %2700 = vmatmul.msk.f32.vlgmr.msrb.gmra.mxu0 %vm265_vm0, %v2676_v49  ;;  %2716 = vmatmul.msk.f32.vlgmr.msrb.gmra.mxu1 %vm265_vm0, %v2708_v51 }
  0x63   : > { %2693 = vmatmul.msk.f32.gmra.mxu3 %vm265_vm0, %v2685_v50 }
  0x65   : > { %2701 = vmatmul.msk.f32.gmra.mxu0 %vm265_vm0, %v2677_v52  ;;  %2717 = vmatmul.msk.f32.gmra.mxu1 %vm265_vm0, %v2709_v54 }
  0x6b   : > { %2694 = vmatmul.msk.f32.gmra.mxu3 %vm265_vm0, %v2686_v53 }
  0x6d   : > { %2702 = vmatmul.msk.f32.gmra.mxu0 %vm265_vm0, %v2678_v55  ;;  %2718 = vmatmul.msk.f32.gmra.mxu1 %vm265_vm0, %v2710_v57 }
  0x73   : > { %2695 = vmatmul.msk.f32.gmra.mxu3 %vm265_vm0, %v2687_v56 }
  0x75   : > { %2703 = vmatmul.msk.f32.gmra.mxu0 %vm265_vm0, %v2679_v63  ;;  %2719 = vmatmul.msk.f32.gmra.mxu1 %vm265_vm0, %v2711_v4 }
  0x7b   : > { %2696 = vmatmul.msk.f32.gmra.mxu3 %vm265_vm0, %v2688_v3 }
  0x7d   : > { %2704 = vmatmul.msk.f32.gmra.mxu0 %vm265_vm0, %v2680_v11  ;;  %2720 = vmatmul.msk.f32.gmra.mxu1 %vm265_vm0, %v2712_v15 }
  0x83   : > { %2697 = vmatmul.msk.f32.gmra.mxu3 %vm265_vm0, %v2689_v14 }
  0x85   : > { %2705 = vmatmul.msk.f32.gmra.mxu0 %vm265_vm0, %v2681_v22  ;;  %2721 = vmatmul.msk.f32.gmra.mxu1 %vm265_vm0, %v2713_v26 }
  0x8b   : > { %2698 = vmatmul.msk.f32.gmra.mxu3 %vm265_vm0, %v2690_v25 }
  0x8d   : > { %2706 = vmatmul.msk.f32.gmra.mxu0 %vm265_vm0, %v2682_v33  ;;  %2722 = vmatmul.msk.f32.gmra.mxu1 %vm265_vm0, %v2714_v37 }
  0x93   : > { %2699 = vmatmul.msk.f32.gmra.mxu3 %vm265_vm0, %v2691_v36 }
  0x95   : > { %2707 = vmatmul.msk.f32.gmra.mxu0 %vm265_vm0, %v2683_v43  ;;  %2723 = vmatmul.msk.f32.gmra.mxu1 %vm265_vm0, %v2715_v46 }
  0x99   : > { %v307_v58 = vpop.f32.mrf.mxu0 }
  0x9a   : > { %v372_v59 = vpop.f32.mrf.mxu1 }
  0x9b   : > { %v373_v61 = vadd.f32 %v372_v59, %v307_v58 }
  0x9e   : > { %v454_v0 = vpop.f32.mrf.mxu3 }
  0x9f   : > { %v478_v1 = vadd.f32 %v454_v0, %v373_v61 }
  0xa1   : > { %v3271_v7 = vadd.f32 %v3259_v62, %v478_v1 }
  0xa2   : > { %v310_v5 = vpop.f32.mrf.mxu0  ;;  %v375_v6 = vpop.f32.mrf.mxu1 }
  0xa3   : > { %v376_v8 = vadd.f32 %v375_v6, %v310_v5  ;;  %v732_v9 = vmul.f32 %v3264_v2, %v3271_v7 }
  0xa5   : > { %v748_v10 = vsel %vm265_vm0, %v732_v9, 0.0 }
  0xa6   : > { %v457_v12 = vpop.f32.mrf.mxu3  ;;  %749 = vadd.xlane.f32.xlu0 %v748_v10 }
  0xa7   : > { %v479_v13 = vadd.f32 %v457_v12, %v376_v8 }
  0xa9   : > { %v3283_v16 = vadd.f32 %v3259_v62, %v479_v13 }
  0xaa   : > { %v313_v17 = vpop.f32.mrf.mxu0  ;;  %v378_v18 = vpop.f32.mrf.mxu1 }
  0xab   : > { %v379_v19 = vadd.f32 %v378_v18, %v313_v17  ;;  %v733_v20 = vmul.f32 %v3264_v2, %v3283_v16 }
  0xad   : > { %v751_v21 = vsel %vm265_vm0, %v733_v20, 0.0 }
  0xae   : > { %v460_v23 = vpop.f32.mrf.mxu3  ;;  %752 = vadd.xlane.f32.xlu0 %v751_v21 }
  0xaf   : > { %v480_v24 = vadd.f32 %v460_v23, %v379_v19 }
  0xb1   : > { %v3295_v29 = vadd.f32 %v3259_v62, %v480_v24 }
  0xb2   : > { %v316_v27 = vpop.f32.mrf.mxu0  ;;  %v381_v28 = vpop.f32.mrf.mxu1 }
  0xb3   : > { %v382_v30 = vadd.f32 %v381_v28, %v316_v27  ;;  %v734_v31 = vmul.f32 %v3264_v2, %v3295_v29 }
  0xb5   : > { %v754_v32 = vsel %vm265_vm0, %v734_v31, 0.0  ;;  %v3345_v31 = vperm.slane %v3256_v60, 1 }
  0xb6   : > { %v463_v34 = vpop.f32.mrf.mxu3  ;;  %755 = vadd.xlane.f32.xlu1 %v754_v32 }
  0xb7   : > { %v481_v35 = vadd.f32 %v463_v34, %v382_v30 }
  0xb9   : > { %v3307_v38 = vadd.f32 %v3259_v62, %v481_v35 }
  0xba   : > { %v319_v39 = vpop.f32.mrf.mxu0  ;;  %v384_v40 = vpop.f32.mrf.mxu1 }
  0xbb   : > { %v385_v41 = vadd.f32 %v384_v40, %v319_v39  ;;  %v735_v42 = vmul.f32 %v3264_v2, %v3307_v38 }
  0xbd   : > { %v757_v44 = vsel %vm265_vm0, %v735_v42, 0.0 }
  0xbe   : > { %v466_v45 = vpop.f32.mrf.mxu3  ;;  %758 = vadd.xlane.f32.xlu1 %v757_v44 }
  0xbf   : > { %v482_v47 = vadd.f32 %v466_v45, %v385_v41 }
  0xc1   : > { %v3317_v50 = vadd.f32 %v3259_v62, %v482_v47 }
  0xc2   : > { %v322_v48 = vpop.f32.mrf.mxu0  ;;  %v387_v49 = vpop.f32.mrf.mxu1 }
  0xc3   : > { %v388_v51 = vadd.f32 %v387_v49, %v322_v48  ;;  %v736_v52 = vmul.f32 %v3264_v2, %v3317_v50 }
  0xc5   : > { %v760_v53 = vsel %vm265_vm0, %v736_v52, 0.0 }
  0xc6   : > { %v469_v54 = vpop.f32.mrf.mxu3  ;;  %761 = vadd.xlane.f32.xlu2 %v760_v53 }
  0xc7   : > { %v483_v55 = vadd.f32 %v469_v54, %v388_v51 }
  0xc9   : > { %v3323_v56 = vadd.f32 %v3259_v62, %v483_v55 }
  0xca   : > { %v325_v57 = vpop.f32.mrf.mxu0  ;;  %v390_v58 = vpop.f32.mrf.mxu1 }
  0xcb   : > { %v391_v59 = vadd.f32 %v390_v58, %v325_v57  ;;  %v737_v61 = vmul.f32 %v3264_v2, %v3323_v56 }
  0xcd   : > { %v763_v63 = vsel %vm265_vm0, %v737_v61, 0.0 }
  0xce   : > { %v472_v0 = vpop.f32.mrf.mxu3  ;;  %764 = vadd.xlane.f32.xlu2 %v763_v63 }
  0xcf   : > { %v484_v1 = vadd.f32 %v472_v0, %v391_v59 }
  0xd1   : > { %v3329_v3 = vadd.f32 %v3259_v62, %v484_v1 }
  0xd2   : > { %v328_v4 = vpop.f32.mrf.mxu0  ;;  %v393_v5 = vpop.f32.mrf.mxu1 }
  0xd3   : > { %v394_v6 = vadd.f32 %v393_v5, %v328_v4  ;;  %v738_v8 = vmul.f32 %v3264_v2, %v3329_v3 }
  0xd5   : > { %v766_v9 = vsel %vm265_vm0, %v738_v8, 0.0 }
  0xd6   : > { %v475_v10 = vpop.f32.mrf.mxu3  ;;  %767 = vadd.xlane.f32.xlu0 %v766_v9 }
  0xd7   : > { %v485_v11 = vadd.f32 %v475_v10, %v394_v6 }
  0xd9   : > { %v3335_v12 = vadd.f32 %v3259_v62, %v485_v11 }
  0xda   : > { %v609_v17 = vpop.f32.mrf.mxu0  ;;  %v682_v18 = vpop.f32.mrf.mxu1 }
  0xdb   : > { %v739_v13 = vmul.f32 %v3264_v2, %v3335_v12 }
  0xdd   : > { %v769_v14 = vsel %vm265_vm0, %v739_v13, 0.0 }
  0xde   : > { %770 = vadd.xlane.f32.xlu2 %v769_v14  ;;  %v544_v15 = vpop.f32.mrf.mxu3 }
  0xdf   : > { %v610_v24 = vadd.f32 %v609_v17, %v544_v15 }
  0xe1   : > { %v706_v30 = vadd.f32 %v682_v18, %v610_v24 }
  0xe2   : > { %v612_v20 = vpop.f32.mrf.mxu0  ;;  %v685_v21 = vpop.f32.mrf.mxu1 }
  0xe3   : > { %v3350_v36 = vadd.f32 %v3259_v62, %v706_v30 }
  0xe5   : > { %v740_v42 = vmul.f32 %v3264_v2, %v3350_v36 }
  0xe6   : > { %v547_v19 = vpop.f32.mrf.mxu3 }
  0xe7   : > { %v613_v39 = vadd.f32 %v612_v20, %v547_v19  ;;  %v772_v51 = vsel %vm265_vm0, %v740_v42, 0.0 }
  0xe9   : > { %v707_v41 = vadd.f32 %v685_v21, %v613_v39 }
  0xea   : > { %v615_v27 = vpop.f32.mrf.mxu0  ;;  %v688_v34 = vpop.f32.mrf.mxu1 }
  0xeb   : > { %v3363_v49 = vadd.f32 %v3259_v62, %v707_v41 }
  0xed   : > { %v741_v58 = vmul.f32 %v3264_v2, %v3363_v49 }
  0xee   : > { %v550_v26 = vpop.f32.mrf.mxu3 }
  0xef   : > { %v616_v47 = vadd.f32 %v615_v27, %v550_v26  ;;  %v775_v6 = vsel %vm265_vm0, %v741_v58, 0.0 }
  0xf1   : > { %v708_v55 = vadd.f32 %v688_v34, %v616_v47 }
  0xf2   : > { %v618_v44 = vpop.f32.mrf.mxu0  ;;  %v691_v52 = vpop.f32.mrf.mxu1 }
  0xf3   : > { %v3377_v0 = vadd.f32 %v3259_v62, %v708_v55 }
  0xf5   : > { %v742_v10 = vmul.f32 %v3264_v2, %v3377_v0 }
  0xf6   : > { %v553_v43 = vpop.f32.mrf.mxu3 }
  0xf7   : > { %v619_v8 = vadd.f32 %v618_v44, %v553_v43  ;;  %v778_v18 = vsel %vm265_vm0, %v742_v10, 0.0 }
  0xf9   : > { %v709_v14 = vadd.f32 %v691_v52, %v619_v8 }
  0xfa   : > { %v621_v1 = vpop.f32.mrf.mxu0  ;;  %v694_v11 = vpop.f32.mrf.mxu1 }
  0xfb   : > { %v3392_v20 = vadd.f32 %v3259_v62, %v709_v14 }
  0xfd   : > { %v743_v30 = vmul.f32 %v3264_v2, %v3392_v20 }
  0xfe   : > { %v556_v61 = vpop.f32.mrf.mxu3 }
 0x102   : > { %v624_v24 = vpop.f32.mrf.mxu0 }
 0x10a   : > { %v627_v44 = vpop.f32.mrf.mxu0 }
 0x119   : > { %v750_v22 = vpop.xlane.xlu0 %749 }
 0x11a   : > { %v796_v23 = vmul.f32 0.25, %v750_v22  ;;  %v622_v22 = vadd.f32 %v621_v1, %v556_v61 }
 0x11c   : > { %v812_v25 = vmul.f32 %v796_v23, %v3264_v2  ;;  %v559_v23 = vpop.f32.mrf.mxu3  ;;  %v710_v27 = vadd.f32 %v694_v11, %v622_v22 }
 0x11e   : > { %v3342_v28 = vsub.f32 %v3271_v7, %v812_v25  ;;  %v3405_v39 = vadd.f32 %v3259_v62, %v710_v27  ;;  %v1154_v27 = vld [vmem:[%s4650_s2 + $0xa8] sm:$0xff] }
 0x11f   : > { %1213 = vmatpush.msra.mxu2 %v1154_v27 }
 0x120   : > { %v844_v32 = vmul.f32 %v3342_v28, %v3342_v28 }
 0x121   : > { %v753_v33 = vpop.xlane.xlu0 %752 }
 0x122   : > { %v797_v35 = vmul.f32 0.25, %v753_v33  ;;  %v861_v37 = vmul.f32 %v3345_v31, %v844_v32  ;;  %v697_v32 = vpop.f32.mrf.mxu1 }
 0x124   : > { %v813_v40 = vmul.f32 %v797_v35, %v3264_v2  ;;  %v877_v7 = vsel %vm265_vm0, %v861_v37, 0.0  ;;  %v625_v35 = vadd.f32 %v624_v24, %v559_v23  ;;  %v562_v43 = vpop.f32.mrf.mxu3 }
 0x125   : > { %878 = vadd.xlane.f32.xlu1 %v877_v7  ;;  %v628_v55 = vadd.f32 %v627_v44, %v562_v43  ;;  %v1143_v43 = vld [vmem:[%s4650_s2 + $0x50] sm:$0xff]  ;;  %v1144_v44 = vld [vmem:[%s4650_s2 + $0x58] sm:$0xff] }
 0x126   : > { %v3356_v60 = vsub.f32 %v3283_v16, %v813_v40  ;;  %v781_v40 = vsel %vm265_vm0, %v743_v30, 0.0  ;;  %v711_v42 = vadd.f32 %v697_v32, %v625_v35  ;;  %v1156_v30 = vld [vmem:[%s4650_s2 + $0xb8] sm:$0xff]  ;;  %v1151_v32 = vld [vmem:[%s4650_s2 + $0x90] sm:$0xff] }
 0x127   : > { %1343 = vmatpush.msra.mxu0 %v1156_v30  ;;  %1214 = vmatpush.msra.mxu2 %v1151_v32  ;;  %v1148_v35 = vld [vmem:[%s4650_s2 + $0x78] sm:$0xff] }
 0x128   : > { %v845_v45 = vmul.f32 %v3356_v60, %v3356_v60 }
 0x129   : > { %v756_v46 = vpop.xlane.xlu1 %755  ;;  %1215 = vmatpush.msra.mxu2 %v1148_v35 }
 0x12a   : > { %v798_v48 = vmul.f32 0.25, %v756_v46  ;;  %v862_v16 = vmul.f32 %v3345_v31, %v845_v45  ;;  %v744_v46 = vmul.f32 %v3264_v2, %v3405_v39 }
 0x12c   : > { %v814_v53 = vmul.f32 %v798_v48, %v3264_v2  ;;  %v880_v54 = vsel %vm265_vm0, %v862_v16, 0.0  ;;  %v700_v16 = vpop.f32.mrf.mxu1  ;;  %v565_v1 = vpop.f32.mrf.mxu3 }
 0x12d   : > { %773 = vadd.xlane.f32.xlu1 %v772_v51  ;;  %881 = vadd.xlane.f32.xlu0 %v880_v54  ;;  %v3419_v51 = vadd.f32 %v3259_v62, %v711_v42  ;;  %v784_v54 = vsel %vm265_vm0, %v744_v46, 0.0  ;;  %v1142_v42 = vld [vmem:[%s4650_s2 + $0x48] sm:$0xff]  ;;  %v1139_v46 = vld [vmem:[%s4650_s2 + $0x30] sm:$0xff] }
 0x12e   : > { %v3370_v57 = vsub.f32 %v3295_v29, %v814_v53 }
 0x130   : > { %v846_v59 = vmul.f32 %v3370_v57, %v3370_v57 }
 0x131   : > { %v759_v63 = vpop.xlane.xlu1 %758 }
 0x132   : > { %v799_v4 = vmul.f32 0.25, %v759_v63  ;;  %v863_v5 = vmul.f32 %v3345_v31, %v846_v59  ;;  %v745_v59 = vmul.f32 %v3264_v2, %v3419_v51  ;;  %v712_v63 = vadd.f32 %v700_v16, %v628_v55  ;;  %v1136_v16 = vld [vmem:[%s4650_s2 + $0x18] sm:$0xff]  ;;  %v1134_v55 = vld [vmem:[%s4650_s2 + $0x8] sm:$0xff] }
 0x134   : > { %v815_v29 = vmul.f32 %v799_v4, %v3264_v2  ;;  %v883_v9 = vsel %vm265_vm0, %v863_v5, 0.0  ;;  %v630_v4 = vpop.f32.mrf.mxu0  ;;  %v787_v8 = vsel %vm265_vm0, %v745_v59, 0.0  ;;  %v703_v14 = vpop.f32.mrf.mxu1 }
 0x135   : > { %884 = vadd.xlane.f32.xlu2 %v883_v9  ;;  %776 = vadd.xlane.f32.xlu0 %v775_v6  ;;  %v3434_v9 = vadd.f32 %v3259_v62, %v712_v63  ;;  %v631_v11 = vadd.f32 %v630_v4, %v565_v1 }
 0x136   : > { %v3386_v13 = vsub.f32 %v3307_v38, %v815_v29 }
 0x138   : > { %v847_v15 = vmul.f32 %v3386_v13, %v3386_v13 }
 0x139   : > { %v762_v17 = vpop.xlane.xlu2 %761 }
 0x13a   : > { %v800_v19 = vmul.f32 0.25, %v762_v17  ;;  %v864_v21 = vmul.f32 %v3345_v31, %v847_v15 }
 0x13c   : > { %v816_v25 = vmul.f32 %v800_v19, %v3264_v2  ;;  %v886_v38 = vsel %vm265_vm0, %v864_v21, 0.0  ;;  %v746_v19 = vmul.f32 %v3264_v2, %v3434_v9 }
 0x13d   : > { %779 = vadd.xlane.f32.xlu2 %v778_v18  ;;  %887 = vadd.xlane.f32.xlu1 %v886_v38  ;;  %v713_v18 = vadd.f32 %v703_v14, %v631_v11 }
 0x13e   : > { %v3398_v26 = vsub.f32 %v3317_v50, %v816_v25  ;;  %v790_v24 = vsel %vm265_vm0, %v746_v19, 0.0 }
 0x13f   : > { %v3447_v22 = vadd.f32 %v3259_v62, %v713_v18  ;;  %v1155_v62 = vld [vmem:[%s4650_s2 + $0xb0] sm:$0xff] }
 0x140   : > { %v848_v33 = vmul.f32 %v3398_v26, %v3398_v26  ;;  %1278 = vmatpush.msra.mxu3 %v1155_v62 }
 0x141   : > { %v765_v34 = vpop.xlane.xlu2 %764 }
 0x142   : > { %v801_v37 = vmul.f32 0.25, %v765_v34  ;;  %v865_v7 = vmul.f32 %v3345_v31, %v848_v33  ;;  %v1152_v33 = vld [vmem:[%s4650_s2 + $0x98] sm:$0xff]  ;;  %v1153_v34 = vld [vmem:[%s4650_s2 + $0xa0] sm:$0xff] }
 0x143   : > { %1279 = vmatpush.msra.mxu3 %v1152_v33  ;;  %1344 = vmatpush.msra.mxu0 %v1153_v34 }
 0x144   : > { %v817_v50 = vmul.f32 %v801_v37, %v3264_v2  ;;  %v889_v41 = vsel %vm265_vm0, %v865_v7, 0.0  ;;  %v1149_v37 = vld [vmem:[%s4650_s2 + $0x80] sm:$0xff] }
 0x145   : > { %782 = vadd.xlane.f32.xlu1 %v781_v40  ;;  %890 = vadd.xlane.f32.xlu0 %v889_v41  ;;  %v1150_v40 = vld [vmem:[%s4650_s2 + $0x88] sm:$0xff]  ;;  %v1145_v7 = vld [vmem:[%s4650_s2 + $0x60] sm:$0xff]  ;;  %v1147_v41 = vld [vmem:[%s4650_s2 + $0x70] sm:$0xff] }
 0x146   : > { %v3412_v45 = vsub.f32 %v3323_v56, %v817_v50  ;;  %1280 = vmatpush.msra.mxu3 %v1149_v37  ;;  %1345 = vmatpush.msra.mxu0 %v1150_v40  ;;  %v1146_v50 = vld [vmem:[%s4650_s2 + $0x68] sm:$0xff] }
 0x147   : > { %1216 = vmatpush.msra.mxu2 %v1145_v7 }
 0x148   : > { %v849_v47 = vmul.f32 %v3412_v45, %v3412_v45  ;;  %1281 = vmatpush.msra.mxu3 %v1146_v50  ;;  %1346 = vmatpush.msra.mxu0 %v1147_v41 }
 0x149   : > { %v768_v48 = vpop.xlane.xlu0 %767  ;;  %1217 = vmatpush.msra.mxu2 %v1142_v42 }
 0x14a   : > { %v802_v52 = vmul.f32 0.25, %v768_v48  ;;  %v866_v53 = vmul.f32 %v3345_v31, %v849_v47  ;;  %1282 = vmatpush.msra.mxu3 %v1143_v43  ;;  %1347 = vmatpush.msra.mxu0 %v1144_v44  ;;  %v1140_v47 = vld [vmem:[%s4650_s2 + $0x38] sm:$0xff]  ;;  %v1141_v48 = vld [vmem:[%s4650_s2 + $0x40] sm:$0xff] }
 0x14b   : > { %1218 = vmatpush.msra.mxu2 %v1139_v46 }
 0x14c   : > { %v818_v56 = vmul.f32 %v802_v52, %v3264_v2  ;;  %v892_v58 = vsel %vm265_vm0, %v866_v53, 0.0  ;;  %1283 = vmatpush.msra.mxu3 %v1140_v47  ;;  %1348 = vmatpush.msra.mxu0 %v1141_v48  ;;  %v1137_v52 = vld [vmem:[%s4650_s2 + $0x20] sm:$0xff]  ;;  %v1138_v53 = vld [vmem:[%s4650_s2 + $0x28] sm:$0xff] }
 0x14d   : > { %893 = vadd.xlane.f32.xlu2 %v892_v58  ;;  %785 = vadd.xlane.f32.xlu0 %v784_v54  ;;  %v1133_v54 = vld [vmem:[%s4650_s2] sm:$0xff] }
 0x14e   : > { %v3428_v61 = vsub.f32 %v3329_v3, %v818_v56  ;;  %1219 = vmatpush.msra.mxu2 %v1136_v16  ;;  %1284 = vmatpush.msra.mxu3 %v1137_v52  ;;  %v1135_v56 = vld [vmem:[%s4650_s2 + $0x10] sm:$0xff] }
 0x14f   : > { %1349 = vmatpush.msra.mxu0 %v1138_v53 }
 0x150   : > { %v850_v5 = vmul.f32 %v3428_v61, %v3428_v61  ;;  %1220 = vmatpush.msra.mxu2 %v1133_v54  ;;  %1285 = vmatpush.msra.mxu3 %v1134_v55 }
 0x151   : > { %v771_v6 = vpop.xlane.xlu2 %770  ;;  %1350 = vmatpush.msra.mxu0 %v1135_v56 }
 0x152   : > { %v803_v29 = vmul.f32 0.25, %v771_v6  ;;  %v867_v10 = vmul.f32 %v3345_v31, %v850_v5 }
 0x154   : > { %v819_v3 = vmul.f32 %v803_v29, %v3264_v2  ;;  %v895_v15 = vsel %vm265_vm0, %v867_v10, 0.0 }
 0x155   : > { %788 = vadd.xlane.f32.xlu2 %v787_v8  ;;  %896 = vadd.xlane.f32.xlu1 %v895_v15 }
 0x156   : > { %v3440_v17 = vsub.f32 %v3335_v12, %v819_v3  ;;  %v747_v12 = vmul.f32 %v3264_v2, %v3447_v22 }
 0x158   : > { %v851_v21 = vmul.f32 %v3440_v17, %v3440_v17  ;;  %v793_v38 = vsel %vm265_vm0, %v747_v12, 0.0 }
 0x15a   : > { %v868_v23 = vmul.f32 %v3345_v31, %v851_v21 }
 0x15c   : > { %v898_v25 = vsel %vm265_vm0, %v868_v23, 0.0 }
 0x15d   : > { %899 = vadd.xlane.f32.xlu0 %v898_v25  ;;  %791 = vadd.xlane.f32.xlu1 %v790_v24 }
 0x165   : > { %794 = vadd.xlane.f32.xlu0 %v793_v38 }
 0x198   : > { %v879_v58 = vpop.xlane.xlu1 %878 }
 0x199   : > { %v925_v59 = vmul.f32 0.25, %v879_v58 }
 0x19b   : > { %v941_v63 = vadd.f32 1e-05, %v925_v59 }
 0x19d   : > { %2831 = vrsqrt.f32 %v941_v63  ;;  %vm963_vm2 = vweird.f32 %v941_v63 }
 0x1a0   : > { %v774_v1 = vpop.xlane.xlu1 %773  ;;  %v882_v4 = vpop.xlane.xlu0 %881 }
 0x1a1   : > { %v804_v5 = vmul.f32 0.25, %v774_v1  ;;  %v926_v6 = vmul.f32 0.25, %v882_v4 }
 0x1a3   : > { %v2832_v8 = vpop.eup %2831  ;;  %v820_v29 = vmul.f32 %v804_v5, %v3264_v2  ;;  %v942_v10 = vadd.f32 1e-05, %v926_v6 }
 0x1a4   : > { %v958_v11 = vmul.f32 %v2832_v8, %v941_v63  ;;  %vm964_vm1 = vweird.f32 %v2832_v8 }
 0x1a5   : > { %v3529_v14 = vsub.f32 %v3350_v36, %v820_v29  ;;  %2833 = vrsqrt.f32 %v942_v10  ;;  %vm965_vm3 = vmor %vm963_vm2, %vm964_vm1  ;;  %vm973_vm5 = vweird.f32 %v942_v10 }
 0x1a6   : > { %v959_v3 = vmul.f32 %v2832_v8, %v958_v11 }
 0x1a7   : > { %v852_v15 = vmul.f32 %v3529_v14, %v3529_v14 }
 0x1a8   : > { %v960_v18 = vmul.f32 0.5, %v959_v3  ;;  %v885_v19 = vpop.xlane.xlu2 %884  ;;  %v777_v21 = vpop.xlane.xlu0 %776 }
 0x1a9   : > { %v927_v23 = vmul.f32 0.25, %v885_v19  ;;  %v805_v24 = vmul.f32 0.25, %v777_v21  ;;  %v869_v25 = vmul.f32 %v3345_v31, %v852_v15 }
 0x1aa   : > { %v961_v12 = vsub.f32 1.5, %v960_v18 }
 0x1ab   : > { %v2834_v38 = vpop.eup %2833  ;;  %v943_v27 = vadd.f32 1e-05, %v927_v23  ;;  %v821_v62 = vmul.f32 %v805_v24, %v3264_v2  ;;  %v901_v36 = vsel %vm265_vm0, %v869_v25, 0.0 }
 0x1ac   : > { %v968_v30 = vmul.f32 %v2834_v38, %v942_v10  ;;  %902 = vadd.xlane.f32.xlu2 %v901_v36  ;;  %v962_v32 = vmul.f32 %v2832_v8, %v961_v12  ;;  %vm974_vm4 = vweird.f32 %v2834_v38 }
 0x1ad   : > { %2835 = vrsqrt.f32 %v943_v27  ;;  %v3537_v33 = vsub.f32 %v3363_v49, %v821_v62  ;;  %vm975_vm6 = vmor %vm973_vm5, %vm974_vm4  ;;  %vm983_vm8 = vweird.f32 %v943_v27 }
 0x1ae   : > { %v969_v34 = vmul.f32 %v2834_v38, %v968_v30  ;;  %v966_v35 = vsel %vm965_vm3, %v2832_v8, %v962_v32 }
 0x1af   : > { %v1117_v37 = vmul.f32 %v966_v35, %v3342_v28  ;;  %v853_v40 = vmul.f32 %v3537_v33, %v3537_v33 }
 0x1b0   : > { %v970_v7 = vmul.f32 0.5, %v969_v34  ;;  %v780_v50 = vpop.xlane.xlu2 %779  ;;  %v888_v41 = vpop.xlane.xlu1 %887 }
 0x1b1   : > { %v806_v42 = vmul.f32 0.25, %v780_v50  ;;  %v928_v43 = vmul.f32 0.25, %v888_v41  ;;  %2724 = vmatmul.msk.f32.vlgmr.msra.gmra.mxu2 %vm265_vm0, %v1117_v37  ;;  %2740 = vmatmul.msk.f32.vlgmr.msra.gmra.mxu3 %vm265_vm0, %v1117_v37  ;;  %v870_v44 = vmul.f32 %v3345_v31, %v853_v40 }
 0x1b2   : > { %v971_v49 = vsub.f32 1.5, %v970_v7  ;;  %2756 = vmatmul.msk.f32.vlgmr.msra.gmra.mxu0 %vm265_vm0, %v1117_v37 }
 0x1b3   : > { %v2836_v46 = vpop.eup %2835  ;;  %v822_v28 = vmul.f32 %v806_v42, %v3264_v2  ;;  %v944_v47 = vadd.f32 1e-05, %v928_v43  ;;  %v904_v48 = vsel %vm265_vm0, %v870_v44, 0.0 }
 0x1b4   : > { %v978_v16 = vmul.f32 %v2836_v46, %v943_v27  ;;  %905 = vadd.xlane.f32.xlu1 %v904_v48  ;;  %v972_v52 = vmul.f32 %v2834_v38, %v971_v49  ;;  %vm984_vm7 = vweird.f32 %v2836_v46 }
 0x1b5   : > { %v3549_v53 = vsub.f32 %v3377_v0, %v822_v28  ;;  %2837 = vrsqrt.f32 %v944_v47  ;;  %vm985_vm9 = vmor %vm983_vm8, %vm984_vm7  ;;  %vm993_vm11 = vweird.f32 %v944_v47 }
 0x1b6   : > { %v979_v54 = vmul.f32 %v2836_v46, %v978_v16  ;;  %v976_v55 = vsel %vm975_vm6, %v2834_v38, %v972_v52 }
 0x1b7   : > { %v1118_v56 = vmul.f32 %v976_v55, %v3356_v60  ;;  %v854_v58 = vmul.f32 %v3549_v53, %v3549_v53 }
 0x1b8   : > { %v980_v59 = vmul.f32 0.5, %v979_v54  ;;  %v783_v63 = vpop.xlane.xlu1 %782  ;;  %v891_v1 = vpop.xlane.xlu0 %890 }
 0x1b9   : > { %v807_v4 = vmul.f32 0.25, %v783_v63  ;;  %v929_v5 = vmul.f32 0.25, %v891_v1  ;;  %2725 = vmatmul.msk.f32.gmra.mxu2 %vm265_vm0, %v1118_v56  ;;  %2741 = vmatmul.msk.f32.gmra.mxu3 %vm265_vm0, %v1118_v56  ;;  %v871_v0 = vmul.f32 %v3345_v31, %v854_v58 }
 0x1ba   : > { %v981_v6 = vsub.f32 1.5, %v980_v59  ;;  %2757 = vmatmul.msk.f32.gmra.mxu0 %vm265_vm0, %v1118_v56 }
 0x1bb   : > { %v2838_v8 = vpop.eup %2837  ;;  %v823_v60 = vmul.f32 %v807_v4, %v3264_v2  ;;  %v945_v29 = vadd.f32 1e-05, %v929_v5  ;;  %v907_v10 = vsel %vm265_vm0, %v871_v0, 0.0 }
 0x1bc   : > { %v988_v11 = vmul.f32 %v2838_v8, %v944_v47  ;;  %908 = vadd.xlane.f32.xlu2 %v907_v10  ;;  %v982_v3 = vmul.f32 %v2836_v46, %v981_v6  ;;  %vm994_vm10 = vweird.f32 %v2838_v8 }
 0x1bd   : > { %v3561_v15 = vsub.f32 %v3392_v20, %v823_v60  ;;  %2839 = vrsqrt.f32 %v945_v29  ;;  %vm995_vm12 = vmor %vm993_vm11, %vm994_vm10  ;;  %vm1003_vm14 = vweird.f32 %v945_v29 }
 0x1be   : > { %v989_v18 = vmul.f32 %v2838_v8, %v988_v11  ;;  %v986_v19 = vsel %vm985_vm9, %v2836_v46, %v982_v3 }
 0x1bf   : > { %v1119_v21 = vmul.f32 %v986_v19, %v3370_v57  ;;  %v855_v23 = vmul.f32 %v3561_v15, %v3561_v15 }
 0x1c0   : > { %v990_v24 = vmul.f32 0.5, %v989_v18  ;;  %v894_v25 = vpop.xlane.xlu2 %893  ;;  %v786_v12 = vpop.xlane.xlu0 %785 }
 0x1c1   : > { %v930_v38 = vmul.f32 0.25, %v894_v25  ;;  %v808_v27 = vmul.f32 0.25, %v786_v12  ;;  %2726 = vmatmul.msk.f32.gmra.mxu2 %vm265_vm0, %v1119_v21  ;;  %2742 = vmatmul.msk.f32.gmra.mxu3 %vm265_vm0, %v1119_v21  ;;  %v872_v20 = vmul.f32 %v3345_v31, %v855_v23 }
 0x1c2   : > { %v991_v62 = vsub.f32 1.5, %v990_v24  ;;  %2758 = vmatmul.msk.f32.gmra.mxu0 %vm265_vm0, %v1119_v21 }
 0x1c3   : > { %v2840_v36 = vpop.eup %2839  ;;  %v946_v57 = vadd.f32 1e-05, %v930_v38  ;;  %v824_v30 = vmul.f32 %v808_v27, %v3264_v2  ;;  %v910_v32 = vsel %vm265_vm0, %v872_v20, 0.0 }
 0x1c4   : > { %v998_v34 = vmul.f32 %v2840_v36, %v945_v29  ;;  %911 = vadd.xlane.f32.xlu0 %v910_v32  ;;  %v992_v35 = vmul.f32 %v2838_v8, %v991_v62  ;;  %vm1004_vm13 = vweird.f32 %v2840_v36 }
 0x1c5   : > { %2841 = vrsqrt.f32 %v946_v57  ;;  %v3573_v37 = vsub.f32 %v3405_v39, %v824_v30  ;;  %vm1005_vm15 = vmor %vm1003_vm14, %vm1004_vm13  ;;  %vm1013_vm2 = vweird.f32 %v946_v57 }
 0x1c6   : > { %v999_v40 = vmul.f32 %v2840_v36, %v998_v34  ;;  %v996_v7 = vsel %vm995_vm12, %v2838_v8, %v992_v35 }
 0x1c7   : > { %v1120_v50 = vmul.f32 %v996_v7, %v3386_v13  ;;  %v856_v41 = vmul.f32 %v3573_v37, %v3573_v37  ;;  %v2408_v13 = vld [vmem:[%s4651_s3 + $0xf8] sm:$0xff] }
 0x1c8   : > { %v1000_v42 = vmul.f32 0.5, %v999_v40  ;;  %v789_v43 = vpop.xlane.xlu2 %788  ;;  %v897_v44 = vpop.xlane.xlu1 %896  ;;  %2474 = vmatpush.msrb.mxu2 %v2408_v13 }
 0x1c9   : > { %v809_v49 = vmul.f32 0.25, %v789_v43  ;;  %v931_v46 = vmul.f32 0.25, %v897_v44  ;;  %2727 = vmatmul.msk.f32.gmra.mxu2 %vm265_vm0, %v1120_v50  ;;  %2743 = vmatmul.msk.f32.gmra.mxu3 %vm265_vm0, %v1120_v50  ;;  %v873_v28 = vmul.f32 %v3345_v31, %v856_v41  ;;  %v2392_v44 = vld [vmem:[%s4651_s3 + $0x78] sm:$0xff] }
 0x1ca   : > { %v1001_v39 = vsub.f32 1.5, %v1000_v42  ;;  %2759 = vmatmul.msk.f32.gmra.mxu0 %vm265_vm0, %v1120_v50  ;;  %2409 = vmatpush.msra.mxu1 %v2392_v44 }
 0x1cb   : > { %v2842_v47 = vpop.eup %2841  ;;  %v825_v48 = vmul.f32 %v809_v49, %v3264_v2  ;;  %v947_v16 = vadd.f32 1e-05, %v931_v46  ;;  %v913_v52 = vsel %vm265_vm0, %v873_v28, 0.0  ;;  %v2406_v49 = vld [vmem:[%s4651_s3 + $0xe8] sm:$0xff]  ;;  %v2389_v28 = vld [vmem:[%s4651_s3 + $0x60] sm:$0xff] }
 0x1cc   : > { %v1008_v54 = vmul.f32 %v2842_v47, %v946_v57  ;;  %914 = vadd.xlane.f32.xlu1 %v913_v52  ;;  %v1002_v55 = vmul.f32 %v2840_v36, %v1001_v39  ;;  %vm1014_vm1 = vweird.f32 %v2842_v47  ;;  %v2390_v46 = vld [vmem:[%s4651_s3 + $0x68] sm:$0xff] }
 0x1cd   : > { %v3588_v56 = vsub.f32 %v3419_v51, %v825_v48  ;;  %2843 = vrsqrt.f32 %v947_v16  ;;  %vm1015_vm3 = vmor %vm1013_vm2, %vm1014_vm1  ;;  %vm1023_vm5 = vweird.f32 %v947_v16 }
 0x1ce   : > { %v1009_v58 = vmul.f32 %v2842_v47, %v1008_v54  ;;  %v1006_v59 = vsel %vm1005_vm15, %v2840_v36, %v1002_v55 }
 0x1cf   : > { %v1121_v63 = vmul.f32 %v1006_v59, %v3398_v26  ;;  %v857_v1 = vmul.f32 %v3588_v56, %v3588_v56 }
 0x1d0   : > { %v1010_v4 = vmul.f32 0.5, %v1009_v58  ;;  %v792_v5 = vpop.xlane.xlu1 %791  ;;  %v900_v0 = vpop.xlane.xlu0 %899 }
 0x1d1   : > { %v810_v6 = vmul.f32 0.25, %v792_v5  ;;  %v932_v8 = vmul.f32 0.25, %v900_v0  ;;  %2728 = vmatmul.msk.f32.gmra.mxu2 %vm265_vm0, %v1121_v63  ;;  %2744 = vmatmul.msk.f32.gmra.mxu3 %vm265_vm0, %v1121_v63  ;;  %v874_v51 = vmul.f32 %v3345_v31, %v857_v1  ;;  %v2405_v1 = vld [vmem:[%s4651_s3 + $0xe0] sm:$0xff] }
 0x1d2   : > { %v1011_v60 = vsub.f32 1.5, %v1010_v4  ;;  %2760 = vmatmul.msk.f32.gmra.mxu0 %vm265_vm0, %v1121_v63 }
 0x1d3   : > { %v2844_v29 = vpop.eup %2843  ;;  %v826_v26 = vmul.f32 %v810_v6, %v3264_v2  ;;  %v948_v10 = vadd.f32 1e-05, %v932_v8  ;;  %v916_v11 = vsel %vm265_vm0, %v874_v51, 0.0  ;;  %v2386_v6 = vld [vmem:[%s4651_s3 + $0x48] sm:$0xff] }
 0x1d4   : > { %v1018_v3 = vmul.f32 %v2844_v29, %v947_v16  ;;  %917 = vadd.xlane.f32.xlu2 %v916_v11  ;;  %v1012_v18 = vmul.f32 %v2842_v47, %v1011_v60  ;;  %vm1024_vm4 = vweird.f32 %v2844_v29  ;;  %v2387_v16 = vld [vmem:[%s4651_s3 + $0x50] sm:$0xff]  ;;  %v2385_v60 = vld [vmem:[%s4651_s3 + $0x40] sm:$0xff]  ;;  %v2384_v11 = vld [vmem:[%s4651_s3 + $0x38] sm:$0xff] }
 0x1d5   : > { %v3600_v19 = vsub.f32 %v3434_v9, %v826_v26  ;;  %2845 = vrsqrt.f32 %v948_v10  ;;  %vm1025_vm6 = vmor %vm1023_vm5, %vm1024_vm4  ;;  %vm1033_vm8 = vweird.f32 %v948_v10 }
 0x1d6   : > { %v1019_v21 = vmul.f32 %v2844_v29, %v1018_v3  ;;  %v1016_v23 = vsel %vm1015_vm3, %v2842_v47, %v1012_v18  ;;  %v2388_v47 = vld [vmem:[%s4651_s3 + $0x58] sm:$0xff] }
 0x1d7   : > { %v1122_v24 = vmul.f32 %v1016_v23, %v3412_v45  ;;  %v858_v25 = vmul.f32 %v3600_v19, %v3600_v19  ;;  %v2404_v18 = vld [vmem:[%s4651_s3 + $0xd8] sm:$0xff] }
 0x1d8   : > { %v1020_v12 = vmul.f32 0.5, %v1019_v21  ;;  %v795_v38 = vpop.xlane.xlu0 %794 }
 0x1d9   : > { %v811_v27 = vmul.f32 0.25, %v795_v38  ;;  %2729 = vmatmul.msk.f32.gmra.mxu2 %vm265_vm0, %v1122_v24  ;;  %2745 = vmatmul.msk.f32.gmra.mxu3 %vm265_vm0, %v1122_v24  ;;  %v875_v20 = vmul.f32 %v3345_v31, %v858_v25  ;;  %v2383_v25 = vld [vmem:[%s4651_s3 + $0x30] sm:$0xff] }
 0x1da   : > { %v1021_v62 = vsub.f32 1.5, %v1020_v12  ;;  %2761 = vmatmul.msk.f32.gmra.mxu0 %vm265_vm0, %v1122_v24 }
 0x1db   : > { %v2846_v9 = vpop.eup %2845  ;;  %v827_v36 = vmul.f32 %v811_v27, %v3264_v2  ;;  %v919_v45 = vsel %vm265_vm0, %v875_v20, 0.0  ;;  %v2381_v20 = vld [vmem:[%s4651_s3 + $0x20] sm:$0xff] }
 0x1dc   : > { %v1028_v57 = vmul.f32 %v2846_v9, %v948_v10  ;;  %920 = vadd.xlane.f32.xlu0 %v919_v45  ;;  %v1022_v30 = vmul.f32 %v2844_v29, %v1021_v62  ;;  %vm1034_vm7 = vweird.f32 %v2846_v9  ;;  %v2380_v45 = vld [vmem:[%s4651_s3 + $0x18] sm:$0xff] }
 0x1dd   : > { %v3612_v32 = vsub.f32 %v3447_v22, %v827_v36  ;;  %vm1035_vm9 = vmor %vm1033_vm8, %vm1034_vm7 }
 0x1de   : > { %v1029_v34 = vmul.f32 %v2846_v9, %v1028_v57  ;;  %v1026_v35 = vsel %vm1025_vm6, %v2844_v29, %v1022_v30  ;;  %v2379_v30 = vld [vmem:[%s4651_s3 + $0x10] sm:$0xff] }
 0x1df   : > { %v1123_v40 = vmul.f32 %v1026_v35, %v3428_v61  ;;  %v859_v7 = vmul.f32 %v3612_v32, %v3612_v32  ;;  %v2378_v35 = vld [vmem:[%s4651_s3 + $0x8] sm:$0xff] }
 0x1e0   : > { %v1030_v50 = vmul.f32 0.5, %v1029_v34 }
 0x1e1   : > { %2730 = vmatmul.msk.f32.gmra.mxu2 %vm265_vm0, %v1123_v40  ;;  %2746 = vmatmul.msk.f32.gmra.mxu3 %vm265_vm0, %v1123_v40  ;;  %v876_v2 = vmul.f32 %v3345_v31, %v859_v7  ;;  %v2407_v31 = vld [vmem:[%s4651_s3 + $0xf0] sm:$0xff] }
 0x1e2   : > { %v1031_v41 = vsub.f32 1.5, %v1030_v50  ;;  %2762 = vmatmul.msk.f32.gmra.mxu0 %vm265_vm0, %v1123_v40  ;;  %2475 = vmatpush.msrb.mxu2 %v2407_v31  ;;  %v2403_v40 = vld [vmem:[%s4651_s3 + $0xd0] sm:$0xff] }
 0x1e3   : > { %v922_v22 = vsel %vm265_vm0, %v876_v2, 0.0  ;;  %v2377_v2 = vld [vmem:[%s4651_s3] sm:$0xff] }
 0x1e4   : > { %923 = vadd.xlane.f32.xlu1 %v922_v22  ;;  %v1032_v42 = vmul.f32 %v2846_v9, %v1031_v41  ;;  %2476 = vmatpush.msrb.mxu2 %v2406_v49 }
 0x1e6   : > { %v1036_v61 = vsel %vm1035_vm9, %v2846_v9, %v1032_v42  ;;  %2477 = vmatpush.msrb.mxu2 %v2405_v1 }
 0x1e7   : > { %v1124_v43 = vmul.f32 %v1036_v61, %v3440_v17  ;;  %v2391_v17 = vld [vmem:[%s4651_s3 + $0x70] sm:$0xff] }
 0x1e8   : > { %2410 = vmatpush.msra.mxu1 %v2391_v17  ;;  %2478 = vmatpush.msrb.mxu2 %v2404_v18 }
 0x1e9   : > { %2731 = vmatmul.msk.f32.gmra.mxu2 %vm265_vm0, %v1124_v43  ;;  %2747 = vmatmul.msk.f32.gmra.mxu3 %vm265_vm0, %v1124_v43 }
 0x1ea   : > { %2763 = vmatmul.msk.f32.gmra.mxu0 %vm265_vm0, %v1124_v43  ;;  %2411 = vmatpush.msra.mxu1 %v2390_v46 }
 0x1eb   : > { %2479 = vmatpush.msrb.mxu2 %v2403_v40 }
 0x1ec   : > { %2412 = vmatpush.msra.mxu1 %v2389_v28 }
 0x1ee   : > { %2413 = vmatpush.msra.mxu1 %v2388_v47 }
 0x1f0   : > { %2414 = vmatpush.msra.mxu1 %v2387_v16 }
 0x1f2   : > { %2415 = vmatpush.msra.mxu1 %v2386_v6 }
 0x1f4   : > { %2416 = vmatpush.msra.mxu1 %v2385_v60  ;;  %v2402_v60 = vld [vmem:[%s4651_s3 + $0xc8] sm:$0xff] }
 0x1f5   : > { %2480 = vmatpush.msrb.mxu2 %v2402_v60 }
 0x1f6   : > { %2417 = vmatpush.msra.mxu1 %v2384_v11 }
 0x1f8   : > { %2418 = vmatpush.msra.mxu1 %v2383_v25 }
 0x21f   : > { %v903_v39 = vpop.xlane.xlu2 %902 }
 0x220   : > { %v933_v13 = vmul.f32 0.25, %v903_v39 }
 0x222   : > { %v949_v48 = vadd.f32 1e-05, %v933_v13 }
 0x224   : > { %2847 = vrsqrt.f32 %v949_v48  ;;  %vm1043_vm11 = vweird.f32 %v949_v48 }
 0x227   : > { %v906_v52 = vpop.xlane.xlu1 %905 }
 0x228   : > { %v934_v54 = vmul.f32 0.25, %v906_v52 }
 0x22a   : > { %v2848_v55 = vpop.eup %2847  ;;  %v3650_v59 = vadd.f32 1e-05, %v934_v54 }
 0x22b   : > { %v1038_v58 = vmul.f32 %v2848_v55, %v949_v48  ;;  %vm1044_vm10 = vweird.f32 %v2848_v55 }
 0x22c   : > { %2849 = vrsqrt.f32 %v3650_v59  ;;  %vm1045_vm12 = vmor %vm1043_vm11, %vm1044_vm10  ;;  %vm1053_vm14 = vweird.f32 %v3650_v59 }
 0x22d   : > { %v1039_v63 = vmul.f32 %v2848_v55, %v1038_v58 }
 0x22f   : > { %v1040_v4 = vmul.f32 0.5, %v1039_v63  ;;  %v909_v5 = vpop.xlane.xlu2 %908 }
 0x230   : > { %v935_v8 = vmul.f32 0.25, %v909_v5 }
 0x231   : > { %v1041_v0 = vsub.f32 1.5, %v1040_v4 }
 0x232   : > { %v3664_v26 = vpop.eup %2849  ;;  %v3673_v21 = vadd.f32 1e-05, %v935_v8 }
 0x233   : > { %v1042_v51 = vmul.f32 %v2848_v55, %v1041_v0  ;;  %v1048_v12 = vmul.f32 %v3664_v26, %v3650_v59  ;;  %vm1054_vm13 = vweird.f32 %v3664_v26 }
 0x234   : > { %v3662_v29 = vpop.f32.mrf.mxu2  ;;  %vm3723_vm15 = vmor %vm1053_vm14, %vm1054_vm13  ;;  %v3734_v59 = vpop.f32.mrf.mxu3  ;;  %vm1063_vm6 = vweird.f32 %v3673_v21 }
 0x235   : > { %v2772_v10 = vmul.f32 -1.442695, %v3662_v29  ;;  %v1046_v3 = vsel %vm1045_vm12, %v2848_v55, %v1042_v51  ;;  %v1049_v27 = vmul.f32 %v3664_v26, %v1048_v12 }
 0x236   : > { %v1125_v24 = vmul.f32 %v1046_v3, %v3529_v14  ;;  %v2382_v14 = vld [vmem:[%s4651_s3 + $0x28] sm:$0xff] }
 0x237   : > { %2851 = vpow2.f32 %v2772_v10  ;;  %v912_v23 = vpop.xlane.xlu0 %911  ;;  %2419 = vmatpush.msra.mxu1 %v2382_v14  ;;  %v1050_v57 = vmul.f32 0.5, %v1049_v27 }
 0x238   : > { %2732 = vmatmul.msk.f32.gmra.mxu2 %vm265_vm0, %v1125_v24  ;;  %2748 = vmatmul.msk.f32.gmra.mxu3 %vm265_vm0, %v1125_v24  ;;  %v936_v38 = vmul.f32 0.25, %v912_v23  ;;  %2853 = vrsqrt.f32 %v3673_v21 }
 0x239   : > { %2764 = vmatmul.msk.f32.gmra.mxu0 %vm265_vm0, %v1125_v24  ;;  %2420 = vmatpush.msra.mxu1 %v2381_v20  ;;  %v1051_v7 = vsub.f32 1.5, %v1050_v57 }
 0x23a   : > { %v3692_v36 = vadd.f32 1e-05, %v936_v38 }
 0x23b   : > { %2421 = vmatpush.msra.mxu1 %v2380_v45  ;;  %v1052_v44 = vmul.f32 %v3664_v26, %v1051_v7  ;;  %v2773_v45 = vmul.f32 -1.442695, %v3734_v59 }
 0x23c   : > { %v3714_v41 = vpop.f32.mrf.mxu2  ;;  %v3760_v38 = vpop.f32.mrf.mxu3  ;;  %vm1073_vm9 = vweird.f32 %v3692_v36 }
 0x23d   : > { %v2852_v62 = vpop.eup %2851  ;;  %2422 = vmatpush.msra.mxu1 %v2379_v30  ;;  %v2774_v39 = vmul.f32 -1.442695, %v3714_v41  ;;  %v1056_v54 = vsel %vm3723_vm15, %v3664_v26, %v1052_v44 }
 0x23e   : > { %v1496_v9 = vadd.f32 1.0, %v2852_v62  ;;  %v3700_v34 = vpop.eup %2853  ;;  %v1126_v4 = vmul.f32 %v1056_v54, %v3537_v33 }
 0x23f   : > { %2423 = vmatpush.msra.mxu1 %v2378_v35  ;;  %v1058_v50 = vmul.f32 %v3700_v34, %v3673_v21  ;;  %v915_v42 = vpop.xlane.xlu1 %914  ;;  %vm1064_vm5 = vweird.f32 %v3700_v34  ;;  %v2401_v21 = vld [vmem:[%s4651_s3 + $0xc0] sm:$0xff] }
 0x240   : > { %2855 = vrcp.f32 %v1496_v9  ;;  %v937_v49 = vmul.f32 0.25, %v915_v42  ;;  %v1537_v46 = vand.u32 2147483647, %v1496_v9  ;;  %v1539_v28 = vand.u32 2147483648, %v1496_v9  ;;  %2733 = vmatmul.msk.f32.gmra.mxu2 %vm265_vm0, %v1126_v4  ;;  %2749 = vmatmul.msk.f32.gmra.mxu3 %vm265_vm0, %v1126_v4  ;;  %vm1065_vm7 = vmor %vm1063_vm6, %vm1064_vm5 }
 0x241   : > { %2857 = vrsqrt.f32 %v3692_v36  ;;  %2424 = vmatpush.msra.mxu1 %v2377_v2  ;;  %v1059_v31 = vmul.f32 %v3700_v34, %v1058_v50  ;;  %vm1533_vm2 = vweird.f32 %v1496_v9  ;;  %2765 = vmatmul.msk.f32.gmra.mxu0 %vm265_vm0, %v1126_v4 }
 0x242   : > { %v3729_v16 = vadd.f32 1e-05, %v937_v49  ;;  %vm1538_vm4 = vcmp.eq.f32.partialorder %v1537_v46, 8.507059e+37  ;;  %v1540_v58 = vor.u32 1.1754944e-38, %v1539_v28  ;;  %2481 = vmatpush.msrb.mxu2 %v2401_v21 }
 0x243   : > { %v1060_v52 = vmul.f32 0.5, %v1059_v31 }
 0x244   : > { %2859 = vrsqrt.f32 %v3729_v16  ;;  %v3739_v5 = vpop.f32.mrf.mxu2  ;;  %vm1083_vm12 = vweird.f32 %v3729_v16 }
 0x245   : > { %2861 = vpow2.f32 %v2774_v39  ;;  %v1061_v0 = vsub.f32 1.5, %v1060_v52  ;;  %v2776_v20 = vmul.f32 -1.442695, %v3739_v5 }
 0x246   : > { %v2856_v22 = vpop.eup %2855 }
 0x247   : > { %v1529_v61 = vmul.f32 %v2856_v22, %v1496_v9  ;;  %v3716_v43 = vpop.eup %2857  ;;  %vm1534_vm1 = vweird.f32 %v2856_v22  ;;  %v918_v51 = vpop.xlane.xlu2 %917 }
 0x248   : > { %v1068_v48 = vmul.f32 %v3716_v43, %v3692_v36  ;;  %vm1535_vm3 = vmor %vm1533_vm2, %vm1534_vm1  ;;  %v938_v10 = vmul.f32 0.25, %v918_v51  ;;  %vm1074_vm8 = vweird.f32 %v3716_v43 }
 0x249   : > { %v1530_v17 = vsub.f32 1.0, %v1529_v61  ;;  %vm1075_vm10 = vmor %vm1073_vm9, %vm1074_vm8 }
 0x24a   : > { %v1069_v1 = vmul.f32 %v3716_v43, %v1068_v48  ;;  %v3749_v26 = vpop.eup %2859  ;;  %v3755_v18 = vadd.f32 1e-05, %v938_v10 }
 0x24b   : > { %v1531_v47 = vmul.f32 %v2856_v22, %v1530_v17  ;;  %v2862_v11 = vpop.eup %2861  ;;  %v1078_v3 = vmul.f32 %v3749_v26, %v3729_v16  ;;  %vm1084_vm11 = vweird.f32 %v3749_v26 }
 0x24c   : > { %v1070_v33 = vmul.f32 0.5, %v1069_v1  ;;  %v3758_v12 = vadd.f32 1.0, %v2862_v11  ;;  %v3769_v62 = vpop.f32.mrf.mxu2  ;;  %2863 = vrsqrt.f32 %v3755_v18  ;;  %vm1085_vm13 = vmor %vm1083_vm12, %vm1084_vm11 }
 0x24d   : > { %v1532_v55 = vadd.f32 %v2856_v22, %v1531_v47  ;;  %v1079_v27 = vmul.f32 %v3749_v26, %v1078_v3  ;;  %v2778_v61 = vmul.f32 -1.442695, %v3769_v62 }
 0x24e   : > { %v1071_v23 = vsub.f32 1.5, %v1070_v33  ;;  %2865 = vrcp.f32 %v3758_v12  ;;  %vm1563_vm15 = vweird.f32 %v3758_v12  ;;  %v1567_v60 = vand.u32 2147483647, %v3758_v12 }
 0x24f   : > { %v1536_v63 = vsel %vm1535_vm3, %v2856_v22, %v1532_v55  ;;  %v921_v25 = vpop.xlane.xlu0 %920  ;;  %v1080_v57 = vmul.f32 0.5, %v1079_v27  ;;  %2867 = vpow2.f32 %v2776_v20  ;;  %v3790_v22 = vpop.f32.mrf.mxu3  ;;  %vm1093_vm3 = vweird.f32 %v3755_v18 }
 0x250   : > { %v1541_v6 = vsel %vm1538_vm4, %v1540_v58, %v1536_v63  ;;  %v1072_v9 = vmul.f32 %v3716_v43, %v1071_v23  ;;  %2869 = vpow2.f32 %v2773_v45  ;;  %v2399_v23 = vld [vmem:[%s4651_s3 + $0xb0] sm:$0xff]  ;;  %vm1568_vm4 = vcmp.eq.f32.partialorder %v1567_v60, 8.507059e+37  ;;  %v2398_v45 = vld [vmem:[%s4651_s3 + $0xa8] sm:$0xff] }
 0x251   : > { %v2008_v8 = vmul.f32 %v1541_v6, %v3662_v29  ;;  %v1062_v29 = vmul.f32 %v3700_v34, %v1061_v0  ;;  %v1081_v50 = vsub.f32 1.5, %v1080_v57  ;;  %v1569_v6 = vand.u32 2147483648, %v3758_v12 }
 0x252   : > { %v1076_v30 = vsel %vm1075_vm10, %v3716_v43, %v1072_v9  ;;  %v3786_v40 = vpop.eup %2863  ;;  %v2775_v57 = vmul.f32 -1.442695, %v3760_v38 }
 0x253   : > { %2425 = vmatmul.f32.vlgmr.msra.gmra.mxu1 %v2008_v8  ;;  %v1066_v24 = vsel %vm1065_vm7, %v3700_v34, %v1062_v29  ;;  %v2400_v34 = vld [vmem:[%s4651_s3 + $0xb8] sm:$0xff]  ;;  %v1128_v36 = vmul.f32 %v1076_v30, %v3561_v15  ;;  %v1088_v15 = vmul.f32 %v3786_v40, %v3755_v18  ;;  %v1082_v44 = vmul.f32 %v3749_v26, %v1081_v50 }
 0x254   : > { %v1127_v14 = vmul.f32 %v1066_v24, %v3549_v53  ;;  %v939_v53 = vmul.f32 0.25, %v921_v25  ;;  %2482 = vmatpush.msrb.mxu2 %v2400_v34  ;;  %v3788_v2 = vpop.eup %2865  ;;  %v3799_v43 = vpop.f32.mrf.mxu2  ;;  %vm1094_vm2 = vweird.f32 %v3786_v40  ;;  %v1570_v3 = vor.u32 1.1754944e-38, %v1569_v6 }
 0x255   : > { %v2868_v42 = vpop.eup %2867  ;;  %v1559_v17 = vmul.f32 %v3788_v2, %v3758_v12  ;;  %v1089_v28 = vmul.f32 %v3786_v40, %v1088_v15  ;;  %v1086_v48 = vsel %vm1085_vm13, %v3749_v26, %v1082_v44  ;;  %v2780_v54 = vmul.f32 -1.442695, %v3799_v43  ;;  %vm1095_vm5 = vmor %vm1093_vm3, %vm1094_vm2 }
 0x256   : > { %2734 = vmatmul.msk.f32.gmra.mxu2 %vm265_vm0, %v1127_v14  ;;  %2750 = vmatmul.msk.f32.gmra.mxu3 %vm265_vm0, %v1127_v14  ;;  %v3783_v35 = vadd.f32 1e-05, %v939_v53  ;;  %v2870_v49 = vpop.eup %2869  ;;  %v3805_v46 = vadd.f32 1.0, %v2868_v42  ;;  %v1129_v55 = vmul.f32 %v1086_v48, %v3573_v37  ;;  %vm1564_vm14 = vweird.f32 %v3788_v2 }
 0x257   : > { %2766 = vmatmul.msk.f32.gmra.mxu0 %vm265_vm0, %v1127_v14  ;;  %v924_v7 = vpop.xlane.xlu1 %923  ;;  %v3813_v47 = vadd.f32 1.0, %v2870_v49  ;;  %v1560_v52 = vsub.f32 1.0, %v1559_v17  ;;  %v1090_v16 = vmul.f32 0.5, %v1089_v28  ;;  %v3823_v1 = vpop.f32.mrf.mxu3  ;;  %vm3841_vm1 = vmor %vm1563_vm15, %vm1564_vm14  ;;  %2483 = vmatpush.msrb.mxu2 %v2399_v23  ;;  %v2393_v23 = vld [vmem:[%s4651_s3 + $0x80] sm:$0xff] }
 0x258   : > { %2871 = vrsqrt.f32 %v3783_v35  ;;  %v940_v31 = vmul.f32 0.25, %v924_v7  ;;  %v1597_v15 = vand.u32 2147483647, %v3805_v46  ;;  %vm1103_vm8 = vweird.f32 %v3783_v35 }
 0x259   : > { %2873 = vpow2.f32 %v2778_v61  ;;  %v1561_v63 = vmul.f32 %v3788_v2, %v1560_v52  ;;  %v1091_v8 = vsub.f32 1.5, %v1090_v16  ;;  %2484 = vmatpush.msrb.mxu2 %v2398_v45  ;;  %v2397_v61 = vld [vmem:[%s4651_s3 + $0xa0] sm:$0xff]  ;;  %vm1593_vm10 = vweird.f32 %v3805_v46 }
 0x25a   : > { %v3809_v39 = vadd.f32 1e-05, %v940_v31  ;;  %2875 = vrcp.f32 %v3805_v46  ;;  %v2396_v31 = vld [vmem:[%s4651_s3 + $0x98] sm:$0xff]  ;;  %vm1598_vm12 = vcmp.eq.f32.partialorder %v1597_v15, 8.507059e+37  ;;  %v2779_v6 = vmul.f32 -1.442695, %v3823_v1 }
 0x25b   : > { %v1562_v37 = vadd.f32 %v3788_v2, %v1561_v63  ;;  %v1092_v14 = vmul.f32 %v3786_v40, %v1091_v8  ;;  %2485 = vmatpush.msrb.mxu2 %v2397_v61  ;;  %v1552_v61 = vand.u32 2147483647, %v3813_v47 }
 0x25c   : > { %2877 = vrsqrt.f32 %v3809_v39  ;;  %v3831_v0 = vpop.f32.mrf.mxu2  ;;  %vm1113_vm2 = vweird.f32 %v3809_v39 }
 0x25d   : > { %2879 = vrcp.f32 %v3813_v47  ;;  %v1566_v11 = vsel %vm3841_vm1, %v3788_v2, %v1562_v37  ;;  %v2782_v12 = vmul.f32 -1.442695, %v3831_v0  ;;  %v1096_v9 = vsel %vm1095_vm5, %v3786_v40, %v1092_v14  ;;  %2486 = vmatpush.msrb.mxu2 %v2396_v31  ;;  %v2394_v37 = vld [vmem:[%s4651_s3 + $0x88] sm:$0xff] }
 0x25e   : > { %2735 = vmatmul.msk.f32.gmra.mxu2 %vm265_vm0, %v1128_v36  ;;  %2751 = vmatmul.msk.f32.gmra.mxu3 %vm265_vm0, %v1128_v36  ;;  %v3811_v13 = vpop.eup %2871  ;;  %2881 = vpow2.f32 %v2780_v54  ;;  %v1571_v27 = vsel %vm1568_vm4, %v1570_v3, %v1566_v11  ;;  %v1130_v7 = vmul.f32 %v1096_v9, %v3588_v56  ;;  %v1599_v56 = vand.u32 2147483648, %v3805_v46 }
 0x25f   : > { %2767 = vmatmul.msk.f32.gmra.mxu0 %vm265_vm0, %v1128_v36  ;;  %v1098_v58 = vmul.f32 %v3811_v13, %v3783_v35  ;;  %v2874_v4 = vpop.eup %2873  ;;  %v2010_v53 = vmul.f32 %v1571_v27, %v3714_v41  ;;  %v3870_v30 = vpop.f32.mrf.mxu3  ;;  %vm1104_vm6 = vweird.f32 %v3811_v13  ;;  %v2395_v35 = vld [vmem:[%s4651_s3 + $0x90] sm:$0xff] }
 0x260   : > { %v3837_v33 = vpop.eup %2875  ;;  %v3839_v26 = vadd.f32 1.0, %v2874_v4  ;;  %vm3900_vm9 = vmor %vm1103_vm8, %vm1104_vm6  ;;  %2487 = vmatpush.msrb.mxu2 %v2395_v35  ;;  %vm1548_vm6 = vweird.f32 %v3813_v47 }
 0x261   : > { %v1099_v51 = vmul.f32 %v3811_v13, %v1098_v58  ;;  %v1589_v20 = vmul.f32 %v3837_v33, %v3805_v46  ;;  %2428 = vmatmul.f32.gmra.mxu1 %v2010_v53  ;;  %vm1594_vm7 = vweird.f32 %v3837_v33  ;;  %v1600_v58 = vor.u32 1.1754944e-38, %v1599_v56 }
 0x262   : > { %v3845_v29 = vpop.eup %2877  ;;  %2883 = vrcp.f32 %v3839_v26  ;;  %vm1595_vm11 = vmor %vm1593_vm10, %vm1594_vm7  ;;  %2488 = vmatpush.msrb.mxu2 %v2394_v37  ;;  %v1629_v27 = vand.u32 2147483648, %v3839_v26  ;;  %vm1623_vm1 = vweird.f32 %v3839_v26 }
 0x263   : > { %v3855_v24 = vpop.eup %2879  ;;  %v1100_v25 = vmul.f32 0.5, %v1099_v51  ;;  %v1108_v18 = vmul.f32 %v3845_v29, %v3809_v39  ;;  %2885 = vpow2.f32 %v2782_v12  ;;  %v1590_v41 = vsub.f32 1.0, %v1589_v20 }
 0x264   : > { %v2882_v21 = vpop.eup %2881  ;;  %v1544_v34 = vmul.f32 %v3855_v24, %v3813_v47  ;;  %v3875_v50 = vpop.f32.mrf.mxu2  ;;  %2887 = vpow2.f32 %v2775_v57  ;;  %vm1549_vm13 = vweird.f32 %v3855_v24  ;;  %vm1114_vm15 = vweird.f32 %v3845_v29  ;;  %2489 = vmatpush.msrb.mxu2 %v2393_v23 }
 0x265   : > { %v1101_v36 = vsub.f32 1.5, %v1100_v25  ;;  %v3878_v40 = vadd.f32 1.0, %v2882_v21  ;;  %v1109_v2 = vmul.f32 %v3845_v29, %v1108_v18  ;;  %v1591_v42 = vmul.f32 %v3837_v33, %v1590_v41  ;;  %vm3961_vm4 = vmor %vm1113_vm2, %vm1114_vm15 }
 0x266   : > { %2736 = vmatmul.msk.f32.gmra.mxu2 %vm265_vm0, %v1129_v55  ;;  %2752 = vmatmul.msk.f32.gmra.mxu3 %vm265_vm0, %v1129_v55  ;;  %v2784_v17 = vmul.f32 -1.442695, %v3875_v50  ;;  %v1545_v49 = vsub.f32 1.0, %v1544_v34  ;;  %v2781_v25 = vmul.f32 -1.442695, %v3870_v30  ;;  %v1630_v57 = vor.u32 1.1754944e-38, %v1629_v27  ;;  %vm3985_vm7 = vmor %vm1548_vm6, %vm1549_vm13 }
 0x267   : > { %2768 = vmatmul.msk.f32.gmra.mxu0 %vm265_vm0, %v1129_v55  ;;  %v1592_v48 = vadd.f32 %v3837_v33, %v1591_v42  ;;  %v1102_v52 = vmul.f32 %v3811_v13, %v1101_v36  ;;  %v2777_v55 = vmul.f32 -1.442695, %v3790_v22  ;;  %2889 = vrcp.f32 %v3878_v40 }
 0x268   : > { %v3893_v44 = vpop.eup %2883  ;;  %v1110_v16 = vmul.f32 0.5, %v1109_v2  ;;  %2891 = vpow2.f32 %v2784_v17  ;;  %v1546_v10 = vmul.f32 %v3855_v24, %v1545_v49  ;;  %v1627_v21 = vand.u32 2147483647, %v3839_v26 }
 0x269   : > { %v2886_v54 = vpop.eup %2885  ;;  %v1596_v63 = vsel %vm1595_vm11, %v3837_v33, %v1592_v48  ;;  %v1106_v46 = vsel %vm3900_vm9, %v3811_v13, %v1102_v52  ;;  %v1619_v4 = vmul.f32 %v3893_v44, %v3839_v26  ;;  %2893 = vpow2.f32 %v2777_v55  ;;  %v3928_v13 = vpop.f32.mrf.mxu3 }
 0x26a   : > { %v1601_v8 = vsel %vm1598_vm12, %v1600_v58, %v1596_v63  ;;  %v3924_v51 = vadd.f32 1.0, %v2886_v54  ;;  %v2888_v33 = vpop.eup %2887  ;;  %v1131_v11 = vmul.f32 %v1106_v46, %v3600_v19  ;;  %v1111_v12 = vsub.f32 1.5, %v1110_v16 }
 0x26b   : > { %v2012_v60 = vmul.f32 %v1601_v8, %v3739_v5  ;;  %v1620_v3 = vsub.f32 1.0, %v1619_v4  ;;  %2895 = vpow2.f32 %v2779_v6  ;;  %vm1624_vm14 = vweird.f32 %v3893_v44 }
 0x26c   : > { %v3936_v5 = vpop.f32.mrf.mxu2  ;;  %v3945_v18 = vadd.f32 1.0, %v2888_v33  ;;  %2897 = vrcp.f32 %v3924_v51  ;;  %v1547_v53 = vadd.f32 %v3855_v24, %v1546_v10  ;;  %vm1625_vm3 = vmor %vm1623_vm1, %vm1624_vm14  ;;  %v1112_v34 = vmul.f32 %v3845_v29, %v1111_v12 }
 0x26d   : > { %2431 = vmatmul.f32.gmra.mxu1 %v2012_v60  ;;  %v3938_v14 = vpop.eup %2889  ;;  %v1621_v19 = vmul.f32 %v3893_v44, %v1620_v3  ;;  %v2786_v45 = vmul.f32 -1.442695, %v3936_v5  ;;  %2899 = vpow2.f32 %v2781_v25  ;;  %v2783_v26 = vmul.f32 -1.442695, %v3928_v13 }
 0x26e   : > { %2737 = vmatmul.msk.f32.gmra.mxu2 %vm265_vm0, %v1130_v7  ;;  %2753 = vmatmul.msk.f32.gmra.mxu3 %vm265_vm0, %v1130_v7  ;;  %v2892_v20 = vpop.eup %2891  ;;  %vm1628_vm5 = vcmp.eq.f32.partialorder %v1627_v21, 8.507059e+37  ;;  %v1649_v39 = vmul.f32 %v3938_v14, %v3878_v40  ;;  %v1116_v15 = vsel %vm3961_vm4, %v3845_v29, %v1112_v34  ;;  %vm1654_vm8 = vweird.f32 %v3938_v14 }
 0x26f   : > { %2769 = vmatmul.msk.f32.gmra.mxu0 %vm265_vm0, %v1130_v7  ;;  %v1622_v9 = vadd.f32 %v3893_v44, %v1621_v19  ;;  %v2894_v36 = vpop.eup %2893  ;;  %v3969_v2 = vadd.f32 1.0, %v2892_v20  ;;  %2901 = vpow2.f32 %v2786_v45  ;;  %v1132_v48 = vmul.f32 %v1116_v15, %v3612_v32 }
 0x270   : > { %2903 = vrcp.f32 %v3945_v18  ;;  %v3980_v17 = vadd.f32 1.0, %v2894_v36  ;;  %v1650_v52 = vsub.f32 1.0, %v1649_v39  ;;  %v1657_v32 = vand.u32 2147483647, %v3878_v40 }
 0x271   : > { %v1626_v41 = vsel %vm1625_vm3, %v3893_v44, %v1622_v9  ;;  %v2896_v56 = vpop.eup %2895  ;;  %v1554_v44 = vand.u32 2147483648, %v3813_v47  ;;  %2905 = vpow2.f32 %v2783_v26  ;;  %v3989_v29 = vpop.f32.mrf.mxu3  ;;  %v1551_v47 = vsel %vm3985_vm7, %v3855_v24, %v1547_v53 }
 0x272   : > { %v1631_v42 = vsel %vm1628_vm5, %v1630_v57, %v1626_v41  ;;  %v3976_v31 = vpop.eup %2897  ;;  %v3995_v54 = vadd.f32 1.0, %v2896_v56  ;;  %2907 = vrcp.f32 %v3969_v2  ;;  %v1651_v55 = vmul.f32 %v3938_v14, %v1650_v52 }
 0x273   : > { %v2014_v49 = vmul.f32 %v1631_v42, %v3769_v62  ;;  %v2900_v35 = vpop.eup %2899  ;;  %v1659_v62 = vand.u32 2147483648, %v3878_v40  ;;  %v1679_v24 = vmul.f32 %v3976_v31, %v3924_v51  ;;  %vm1553_vm9 = vcmp.eq.f32.partialorder %v1552_v61, 8.507059e+37 }
 0x274   : > { %v1555_v58 = vor.u32 1.1754944e-38, %v1554_v44  ;;  %2909 = vrcp.f32 %v3980_v17  ;;  %v4008_v63 = vadd.f32 1.0, %v2900_v35  ;;  %v1652_v46 = vadd.f32 %v3938_v14, %v1651_v55 }
 0x275   : > { %2434 = vmatmul.f32.gmra.mxu1 %v2014_v49  ;;  %v2902_v16 = vpop.eup %2901  ;;  %vm1653_vm10 = vweird.f32 %v3878_v40  ;;  %v1680_v4 = vsub.f32 1.0, %v1679_v24  ;;  %2911 = vrcp.f32 %v3995_v54  ;;  %v1660_v60 = vor.u32 1.1754944e-38, %v1659_v62 }
 0x276   : > { %2738 = vmatmul.msk.f32.gmra.mxu2 %vm265_vm0, %v1131_v11  ;;  %2754 = vmatmul.msk.f32.gmra.mxu3 %vm265_vm0, %v1131_v11  ;;  %v4012_v37 = vpop.eup %2903  ;;  %v1556_v6 = vsel %vm1553_vm9, %v1555_v58, %v1551_v47  ;;  %v4015_v8 = vadd.f32 1.0, %v2902_v16  ;;  %vm1655_vm11 = vmor %vm1653_vm10, %vm1654_vm8  ;;  %v2785_v10 = vmul.f32 -1.442695, %v3989_v29  ;;  %vm1658_vm12 = vcmp.eq.f32.partialorder %v1657_v32, 8.507059e+37 }
 0x277   : > { %2770 = vmatmul.msk.f32.gmra.mxu0 %vm265_vm0, %v1131_v11  ;;  %v2906_v33 = vpop.eup %2905  ;;  %v1656_v11 = vsel %vm1655_vm11, %v3938_v14, %v1652_v46  ;;  %v1689_v40 = vand.u32 2147483648, %v3924_v51  ;;  %v1681_v25 = vmul.f32 %v3976_v31, %v1680_v4  ;;  %vm1684_vm13 = vweird.f32 %v3976_v31 }
 0x278   : > { %v2908_v3 = vpop.eup %2907  ;;  %v1661_v23 = vsel %vm1658_vm12, %v1660_v60, %v1656_v11  ;;  %v1687_v12 = vand.u32 2147483647, %v3924_v51  ;;  %v2009_v19 = vmul.f32 %v1556_v6, %v3734_v59  ;;  %2913 = vrcp.f32 %v4008_v63 }
 0x279   : > { %v2016_v21 = vmul.f32 %v1661_v23, %v3799_v43  ;;  %2915 = vrcp.f32 %v4015_v8  ;;  %v1682_v14 = vadd.f32 %v3976_v31, %v1681_v25  ;;  %vm1683_vm14 = vweird.f32 %v3924_v51  ;;  %v4035_v53 = vpop.f32.mrf.mxu3 }
 0x27a   : > { %v4028_v27 = vpop.eup %2909  ;;  %v1574_v20 = vmul.f32 %v4012_v37, %v3945_v18  ;;  %2917 = vpow2.f32 %v2785_v10  ;;  %vm1685_vm15 = vmor %vm1683_vm14, %vm1684_vm13  ;;  %v1690_v59 = vor.u32 1.1754944e-38, %v1689_v40  ;;  %v1709_v43 = vmul.f32 %v2908_v3, %v3969_v2 }
 0x27b   : > { %v4038_v9 = vpop.eup %2911  ;;  %v4040_v45 = vadd.f32 1.0, %v2906_v33  ;;  %v1686_v57 = vsel %vm1685_vm15, %v3976_v31, %v1682_v14  ;;  %vm1688_vm1 = vcmp.eq.f32.partialorder %v1687_v12, 8.507059e+37  ;;  %v1582_v36 = vand.u32 2147483647, %v3945_v18 }
 0x27c   : > { %v1575_v51 = vsub.f32 1.0, %v1574_v20  ;;  %v1691_v34 = vsel %vm1688_vm1, %v1690_v59, %v1686_v57  ;;  %v1584_v7 = vand.u32 2147483648, %v3945_v18  ;;  %v1710_v26 = vsub.f32 1.0, %v1709_v43 }
 0x27d   : > { %2437 = vmatmul.f32.gmra.mxu1 %v2016_v21  ;;  %v2787_v41 = vmul.f32 -1.442695, %v4035_v53  ;;  %v2018_v39 = vmul.f32 %v1691_v34, %v3831_v0  ;;  %vm1579_vm2 = vweird.f32 %v4012_v37  ;;  %vm1714_vm3 = vweird.f32 %v2908_v3 }
 0x27e   : > { %2739 = vmatmul.msk.f32.gmra.mxu2 %vm265_vm0, %v1132_v48  ;;  %2755 = vmatmul.msk.f32.gmra.mxu3 %vm265_vm0, %v1132_v48  ;;  %v1576_v42 = vmul.f32 %v4012_v37, %v1575_v51  ;;  %v4049_v15 = vpop.eup %2913  ;;  %v1711_v56 = vmul.f32 %v2908_v3, %v1710_v26  ;;  %v1717_v61 = vand.u32 2147483647, %v3969_v2  ;;  %v1719_v31 = vand.u32 2147483648, %v3969_v2 }
 0x27f   : > { %2771 = vmatmul.msk.f32.gmra.mxu0 %vm265_vm0, %v1132_v48  ;;  %v2916_v44 = vpop.eup %2915  ;;  %vm1578_vm4 = vweird.f32 %v3945_v18  ;;  %vm1713_vm5 = vweird.f32 %v3969_v2  ;;  %v1604_v0 = vmul.f32 %v4028_v27, %v3980_v17  ;;  %vm1583_vm7 = vcmp.eq.f32.partialorder %v1582_v36, 8.507059e+37 }
 0x280   : > { %v1577_v49 = vadd.f32 %v4012_v37, %v1576_v42  ;;  %v2918_v28 = vpop.eup %2917  ;;  %vm1580_vm6 = vmor %vm1578_vm4, %vm1579_vm2  ;;  %v1585_v48 = vor.u32 1.1754944e-38, %v1584_v7  ;;  %v1712_v52 = vadd.f32 %v2908_v3, %v1711_v56  ;;  %vm1718_vm8 = vcmp.eq.f32.partialorder %v1717_v61, 8.507059e+37 }
 0x281   : > { %vm1715_vm9 = vmor %vm1713_vm5, %vm1714_vm3  ;;  %v1720_v47 = vor.u32 1.1754944e-38, %v1719_v31  ;;  %v1605_v62 = vsub.f32 1.0, %v1604_v0  ;;  %vm1609_vm10 = vweird.f32 %v4028_v27  ;;  %v1614_v55 = vand.u32 2147483648, %v3980_v17 }
 0x282   : > { %v1581_v35 = vsel %vm1580_vm6, %v4012_v37, %v1577_v49  ;;  %v1716_v2 = vsel %vm1715_vm9, %v2908_v3, %v1712_v52  ;;  %v1739_v32 = vmul.f32 %v2916_v44, %v4015_v8  ;;  %v1612_v46 = vand.u32 2147483647, %v3980_v17 }
 0x283   : > { %v1586_v18 = vsel %vm1583_vm7, %v1585_v48, %v1581_v35  ;;  %v1721_v16 = vsel %vm1718_vm8, %v1720_v47, %v1716_v2  ;;  %v1606_v58 = vmul.f32 %v4028_v27, %v1605_v62  ;;  %2919 = vrcp.f32 %v4040_v45 }
 0x284   : > { %v2011_v24 = vmul.f32 %v1586_v18, %v3760_v38  ;;  %v4067_v4 = vadd.f32 1.0, %v2918_v28  ;;  %vm1608_vm11 = vweird.f32 %v3980_v17  ;;  %v1740_v37 = vsub.f32 1.0, %v1739_v32 }
 0x285   : > { %2440 = vmatmul.f32.gmra.mxu1 %v2018_v39  ;;  %v2020_v6 = vmul.f32 %v1721_v16, %v3875_v50  ;;  %v1607_v60 = vadd.f32 %v4028_v27, %v1606_v58  ;;  %v1749_v33 = vand.u32 2147483648, %v4015_v8  ;;  %v1634_v38 = vmul.f32 %v4038_v9, %v3995_v54  ;;  %vm1610_vm12 = vmor %vm1608_vm11, %vm1609_vm10 }
 0x286   : > { %2490 = vmatmul.f32.vlgmr.msrb.gmra.mxu2 %v2009_v19  ;;  %v1615_v10 = vor.u32 1.1754944e-38, %v1614_v55  ;;  %v1741_v11 = vmul.f32 %v2916_v44, %v1740_v37  ;;  %vm1744_vm13 = vweird.f32 %v2916_v44  ;;  %v1747_v40 = vand.u32 2147483647, %v4015_v8 }
 0x287   : > { %2921 = vpow2.f32 %v2787_v41  ;;  %v1611_v17 = vsel %vm1610_vm12, %v4028_v27, %v1607_v60  ;;  %vm1613_vm14 = vcmp.eq.f32.partialorder %v1612_v46, 8.507059e+37  ;;  %v1635_v50 = vsub.f32 1.0, %v1634_v38 }
 0x288   : > { %v1616_v3 = vsel %vm1613_vm14, %v1615_v10, %v1611_v17  ;;  %v1742_v23 = vadd.f32 %v2916_v44, %v1741_v11  ;;  %vm1743_vm15 = vweird.f32 %v4015_v8  ;;  %vm1638_vm1 = vweird.f32 %v3995_v54 }
 0x289   : > { %vm1745_vm2 = vmor %vm1743_vm15, %vm1744_vm13  ;;  %v1750_v25 = vor.u32 1.1754944e-38, %v1749_v33  ;;  %v1636_v12 = vmul.f32 %v4038_v9, %v1635_v50  ;;  %vm1639_vm3 = vweird.f32 %v4038_v9  ;;  %v1664_v19 = vmul.f32 %v4049_v15, %v4008_v63  ;;  %v2920_v21 = vpop.eup %2919 }
 0x28a   : > { %v1746_v27 = vsel %vm1745_vm2, %v2916_v44, %v1742_v23  ;;  %vm1748_vm4 = vcmp.eq.f32.partialorder %v1747_v40, 8.507059e+37  ;;  %v1642_v14 = vand.u32 2147483647, %v3995_v54  ;;  %v1644_v20 = vand.u32 2147483648, %v3995_v54  ;;  %vm1640_vm5 = vmor %vm1638_vm1, %vm1639_vm3 }
 0x28b   : > { %v2013_v8 = vmul.f32 %v1616_v3, %v3790_v22  ;;  %v1751_v59 = vsel %vm1748_vm4, %v1750_v25, %v1746_v27  ;;  %v1637_v43 = vadd.f32 %v4038_v9, %v1636_v12  ;;  %v1665_v57 = vsub.f32 1.0, %v1664_v19 }
 0x28c   : > { %2923 = vrcp.f32 %v4067_v4  ;;  %v1694_v7 = vmul.f32 %v2920_v21, %v4040_v45  ;;  %v2022_v26 = vmul.f32 %v1751_v59, %v3936_v5  ;;  %v1645_v22 = vor.u32 1.1754944e-38, %v1644_v20 }
 0x28d   : > { %2443 = vmatmul.f32.gmra.mxu1 %v2020_v6  ;;  %v2922_v51 = vpop.eup %2921  ;;  %v1641_v34 = vsel %vm1640_vm5, %v4038_v9, %v1637_v43  ;;  %v1666_v36 = vmul.f32 %v4049_v15, %v1665_v57  ;;  %vm1643_vm6 = vcmp.eq.f32.partialorder %v1642_v14, 8.507059e+37  ;;  %vm1669_vm7 = vweird.f32 %v4049_v15 }
 0x28e   : > { %2493 = vmatmul.f32.gmra.mxu2 %v2011_v24  ;;  %v4096_v41 = vadd.f32 1.0, %v2922_v51  ;;  %v1646_v39 = vsel %vm1643_vm6, %v1645_v22, %v1641_v34  ;;  %v1695_v54 = vsub.f32 1.0, %v1694_v7  ;;  %v1674_v9 = vand.u32 2147483648, %v4008_v63 }
 0x28f   : > { %v1667_v42 = vadd.f32 %v4049_v15, %v1666_v36  ;;  %v2015_v61 = vmul.f32 %v1646_v39, %v3823_v1  ;;  %vm1668_vm8 = vweird.f32 %v4008_v63  ;;  %v1672_v5 = vand.u32 2147483647, %v4008_v63 }
 0x290   : > { %2925 = vrcp.f32 %v4096_v41  ;;  %vm1670_vm9 = vmor %vm1668_vm8, %vm1669_vm7  ;;  %v1696_v44 = vmul.f32 %v2920_v21, %v1695_v54  ;;  %v1675_v0 = vor.u32 1.1754944e-38, %v1674_v9  ;;  %vm1699_vm11 = vweird.f32 %v2920_v21 }
 0x291   : > { %v1671_v31 = vsel %vm1670_vm9, %v4049_v15, %v1667_v42  ;;  %vm1673_vm10 = vcmp.eq.f32.partialorder %v1672_v5, 8.507059e+37  ;;  %v1704_v35 = vand.u32 2147483648, %v4040_v45  ;;  %vm1698_vm12 = vweird.f32 %v4040_v45  ;;  %v1352_v42 = vpop.f32.mrf.mxu0 }
 0x292   : > { %v2924_v56 = vpop.eup %2923  ;;  %v1676_v28 = vsel %vm1673_vm10, %v1675_v0, %v1671_v31  ;;  %v1697_v48 = vadd.f32 %v2920_v21, %v1696_v44  ;;  %v1702_v47 = vand.u32 2147483647, %v4040_v45  ;;  %vm1700_vm13 = vmor %vm1698_vm12, %vm1699_vm11  ;;  %vm1728_vm1 = vweird.f32 %v4067_v4  ;;  %v3055_v44 = vld [vmem:[%s4652_s4] sm:$0xf] }
 0x293   : > { %v1724_v49 = vmul.f32 %v2924_v56, %v4067_v4  ;;  %v2017_v63 = vmul.f32 %v1676_v28, %v3870_v30  ;;  %v1705_v2 = vor.u32 1.1754944e-38, %v1704_v35  ;;  %vm1729_vm15 = vweird.f32 %v2924_v56 }
 0x294   : > { %v1701_v15 = vsel %vm1700_vm13, %v2920_v21, %v1697_v48  ;;  %vm1703_vm14 = vcmp.eq.f32.partialorder %v1702_v47, 8.507059e+37  ;;  %v1734_v30 = vand.u32 2147483648, %v4067_v4  ;;  %v1732_v46 = vand.u32 2147483647, %v4067_v4  ;;  %vm1730_vm2 = vmor %vm1728_vm1, %vm1729_vm15 }
 0x295   : > { %2446 = vmatmul.f32.gmra.mxu1 %v2022_v26  ;;  %v1725_v52 = vsub.f32 1.0, %v1724_v49  ;;  %v1706_v55 = vsel %vm1703_vm14, %v1705_v2, %v1701_v15  ;;  %v1764_v40 = vand.u32 2147483648, %v4096_v41  ;;  %vm1758_vm5 = vweird.f32 %v4096_v41 }
 0x296   : > { %2496 = vmatmul.f32.gmra.mxu2 %v2013_v8  ;;  %v2926_v1 = vpop.eup %2925  ;;  %v2019_v45 = vmul.f32 %v1706_v55, %v3928_v13  ;;  %v1735_v38 = vor.u32 1.1754944e-38, %v1734_v30  ;;  %vm1733_vm3 = vcmp.eq.f32.partialorder %v1732_v46, 8.507059e+37  ;;  %v1762_v17 = vand.u32 2147483647, %v4096_v41 }
 0x297   : > { %v1726_v62 = vmul.f32 %v2924_v56, %v1725_v52  ;;  %v1754_v18 = vmul.f32 %v2926_v1, %v4096_v41  ;;  %vm1759_vm4 = vweird.f32 %v2926_v1  ;;  %v1765_v12 = vor.u32 1.1754944e-38, %v1764_v40 }
 0x298   : > { %vm1760_vm6 = vmor %vm1758_vm5, %vm1759_vm4  ;;  %vm1763_vm7 = vcmp.eq.f32.partialorder %v1762_v17, 8.507059e+37  ;;  %v4137_v49 = vperm.slane %v3055_v44, 3 }
 0x299   : > { %v1727_v32 = vadd.f32 %v2924_v56, %v1726_v62  ;;  %v1755_v24 = vsub.f32 1.0, %v1754_v18  ;;  %v1355_v55 = vpop.f32.mrf.mxu0 }
 0x29b   : > { %v1731_v60 = vsel %vm1730_vm2, %v2924_v56, %v1727_v32  ;;  %v1756_v33 = vmul.f32 %v2926_v1, %v1755_v24  ;;  %v4152_v24 = vadd.f32 %v4137_v49, %v1355_v55 }
 0x29c   : > { %v1736_v10 = vsel %vm1733_vm3, %v1735_v38, %v1731_v60 }
 0x29d   : > { %v1757_v11 = vadd.f32 %v2926_v1, %v1756_v33  ;;  %v2021_v4 = vmul.f32 %v1736_v10, %v3989_v29  ;;  %v2805_v33 = vmul.f32 -1.442695, %v4152_v24 }
 0x29e   : > { %2499 = vmatmul.f32.gmra.mxu2 %v2015_v61 }
 0x29f   : > { %v1761_v23 = vsel %vm1760_vm6, %v2926_v1, %v1757_v11  ;;  %v4142_v1 = vadd.f32 %v4137_v49, %v1352_v42 }
 0x2a0   : > { %v1766_v19 = vsel %vm1763_vm7, %v1765_v12, %v1761_v23 }
 0x2a1   : > { %v2023_v21 = vmul.f32 %v1766_v19, %v4035_v53  ;;  %v2804_v32 = vmul.f32 -1.442695, %v4142_v1  ;;  %v1358_v11 = vpop.f32.mrf.mxu0 }
 0x2a2   : > { %v4164_v19 = vadd.f32 %v4137_v49, %v1358_v11 }
 0x2a6   : > { %2502 = vmatmul.f32.gmra.mxu2 %v2017_v63 }
 0x2ae   : > { %2505 = vmatmul.f32.gmra.mxu2 %v2019_v45 }
 0x2b6   : > { %2508 = vmatmul.f32.gmra.mxu2 %v2021_v4 }
 0x2bb   : > { %v4114_v16 = vpop.f32.mrf.mxu2  ;;  %v4116_v58 = vpop.f32.mrf.mxu3 }
 0x2bc   : > { %v2788_v37 = vmul.f32 -1.442695, %v4114_v16  ;;  %v2789_v6 = vmul.f32 -1.442695, %v4116_v58 }
 0x2be   : > { %2927 = vpow2.f32 %v2788_v37  ;;  %2511 = vmatmul.f32.gmra.mxu2 %v2023_v21 }
 0x2bf   : > { %2929 = vpow2.f32 %v2789_v6 }
 0x2c3   : > { %v4127_v26 = vpop.f32.mrf.mxu2  ;;  %v4129_v22 = vpop.f32.mrf.mxu3 }
 0x2c4   : > { %v2928_v13 = vpop.eup %2927  ;;  %v2790_v41 = vmul.f32 -1.442695, %v4127_v26  ;;  %v2791_v39 = vmul.f32 -1.442695, %v4129_v22 }
 0x2c5   : > { %v2930_v50 = vpop.eup %2929  ;;  %v1512_v3 = vadd.f32 1.0, %v2928_v13 }
 0x2c6   : > { %v1513_v25 = vadd.f32 1.0, %v2930_v50 }
 0x2c7   : > { %2931 = vrcp.f32 %v1512_v3  ;;  %v1779_v59 = vand.u32 2147483648, %v1512_v3  ;;  %v1777_v51 = vand.u32 2147483647, %v1512_v3  ;;  %vm1773_vm10 = vweird.f32 %v1512_v3 }
 0x2c8   : > { %2933 = vrcp.f32 %v1513_v25  ;;  %v1794_v34 = vand.u32 2147483648, %v1513_v25  ;;  %v1792_v7 = vand.u32 2147483647, %v1513_v25  ;;  %vm1788_vm12 = vweird.f32 %v1513_v25 }
 0x2c9   : > { %v1780_v54 = vor.u32 1.1754944e-38, %v1779_v59  ;;  %vm1778_vm13 = vcmp.eq.f32.partialorder %v1777_v51, 8.507059e+37  ;;  %2935 = vpow2.f32 %v2790_v41 }
 0x2ca   : > { %v1795_v61 = vor.u32 1.1754944e-38, %v1794_v34  ;;  %vm1793_vm15 = vcmp.eq.f32.partialorder %v1792_v7, 8.507059e+37  ;;  %2937 = vpow2.f32 %v2791_v39  ;;  %v2806_v34 = vmul.f32 -1.442695, %v4164_v19 }
 0x2cd   : > { %v2932_v27 = vpop.eup %2931 }
 0x2ce   : > { %v2934_v14 = vpop.eup %2933  ;;  %v1769_v29 = vmul.f32 %v2932_v27, %v1512_v3  ;;  %vm1774_vm8 = vweird.f32 %v2932_v27 }
 0x2cf   : > { %v1784_v20 = vmul.f32 %v2934_v14, %v1513_v25  ;;  %vm1789_vm9 = vweird.f32 %v2934_v14  ;;  %vm1775_vm11 = vmor %vm1773_vm10, %vm1774_vm8  ;;  %v2936_v52 = vpop.eup %2935 }
 0x2d0   : > { %v1770_v8 = vsub.f32 1.0, %v1769_v29  ;;  %vm1790_vm14 = vmor %vm1788_vm12, %vm1789_vm9  ;;  %v2938_v47 = vpop.eup %2937  ;;  %v1514_v15 = vadd.f32 1.0, %v2936_v52 }
 0x2d1   : > { %v1785_v43 = vsub.f32 1.0, %v1784_v20  ;;  %v1515_v18 = vadd.f32 1.0, %v2938_v47 }
 0x2d2   : > { %v1771_v57 = vmul.f32 %v2932_v27, %v1770_v8  ;;  %2939 = vrcp.f32 %v1514_v15  ;;  %v1807_v40 = vand.u32 2147483647, %v1514_v15  ;;  %v1809_v13 = vand.u32 2147483648, %v1514_v15 }
 0x2d3   : > { %v1786_v36 = vmul.f32 %v2934_v14, %v1785_v43  ;;  %2941 = vrcp.f32 %v1515_v18  ;;  %v1824_v23 = vand.u32 2147483648, %v1515_v18  ;;  %v1822_v12 = vand.u32 2147483647, %v1515_v18 }
 0x2d4   : > { %v1772_v53 = vadd.f32 %v2932_v27, %v1771_v57  ;;  %vm1803_vm3 = vweird.f32 %v1514_v15  ;;  %vm1818_vm5 = vweird.f32 %v1515_v18  ;;  %vm1808_vm6 = vcmp.eq.f32.partialorder %v1807_v40, 8.507059e+37 }
 0x2d5   : > { %v1787_v56 = vadd.f32 %v2934_v14, %v1786_v36  ;;  %v1825_v8 = vor.u32 1.1754944e-38, %v1824_v23  ;;  %vm1823_vm8 = vcmp.eq.f32.partialorder %v1822_v12, 8.507059e+37 }
 0x2d6   : > { %v1776_v9 = vsel %vm1775_vm11, %v2932_v27, %v1772_v53 }
 0x2d7   : > { %v1781_v5 = vsel %vm1778_vm13, %v1780_v54, %v1776_v9  ;;  %v1791_v31 = vsel %vm1790_vm14, %v2934_v14, %v1787_v56  ;;  %v1810_v14 = vor.u32 1.1754944e-38, %v1809_v13 }
 0x2d8   : > { %v2024_v0 = vmul.f32 %v1781_v5, %v4114_v16  ;;  %v1796_v28 = vsel %vm1793_vm15, %v1795_v61, %v1791_v31  ;;  %v2940_v16 = vpop.eup %2939 }
 0x2d9   : > { %v2025_v48 = vmul.f32 %v1796_v28, %v4116_v58  ;;  %v4144_v35 = vpop.f32.mrf.mxu2  ;;  %v4146_v63 = vpop.f32.mrf.mxu3  ;;  %v1799_v45 = vmul.f32 %v2940_v16, %v1514_v15  ;;  %vm1804_vm1 = vweird.f32 %v2940_v16 }
 0x2da   : > { %2449 = vmatmul.f32.gmra.mxu1 %v2024_v0  ;;  %v2792_v62 = vmul.f32 -1.442695, %v4144_v35  ;;  %v2793_v2 = vmul.f32 -1.442695, %v4146_v63  ;;  %v2942_v58 = vpop.eup %2941  ;;  %vm1805_vm4 = vmor %vm1803_vm3, %vm1804_vm1  ;;  %v1361_v28 = vpop.f32.mrf.mxu0 }
 0x2db   : > { %2514 = vmatmul.f32.gmra.mxu2 %v2025_v48  ;;  %v1814_v37 = vmul.f32 %v2942_v58, %v1515_v18  ;;  %v1800_v38 = vsub.f32 1.0, %v1799_v45  ;;  %vm1819_vm2 = vweird.f32 %v2942_v58 }
 0x2dc   : > { %2943 = vpow2.f32 %v2792_v62  ;;  %vm1820_vm7 = vmor %vm1818_vm5, %vm1819_vm2 }
 0x2dd   : > { %2945 = vpow2.f32 %v2793_v2  ;;  %v1815_v4 = vsub.f32 1.0, %v1814_v37  ;;  %v1801_v3 = vmul.f32 %v2940_v16, %v1800_v38 }
 0x2de   : > { %2947 = vpow2.f32 %v2804_v32 }
 0x2df   : > { %v1816_v25 = vmul.f32 %v2942_v58, %v1815_v4  ;;  %v1802_v21 = vadd.f32 %v2940_v16, %v1801_v3 }
 0x2e1   : > { %v4154_v30 = vpop.f32.mrf.mxu2  ;;  %v1817_v29 = vadd.f32 %v2942_v58, %v1816_v25  ;;  %v1806_v20 = vsel %vm1805_vm4, %v2940_v16, %v1802_v21  ;;  %v4169_v57 = vpop.f32.mrf.mxu3 }
 0x2e2   : > { %v2944_v46 = vpop.eup %2943  ;;  %v2794_v6 = vmul.f32 -1.442695, %v4154_v30  ;;  %v1811_v59 = vsel %vm1808_vm6, %v1810_v14, %v1806_v20  ;;  %v1364_v21 = vpop.f32.mrf.mxu0 }
 0x2e3   : > { %v2946_v60 = vpop.eup %2945  ;;  %v4158_v10 = vadd.f32 1.0, %v2944_v46  ;;  %v1821_v43 = vsel %vm1820_vm7, %v2942_v58, %v1817_v29  ;;  %v2026_v36 = vmul.f32 %v1811_v59, %v4127_v26  ;;  %v2795_v26 = vmul.f32 -1.442695, %v4169_v57 }
 0x2e4   : > { %v4160_v17 = vadd.f32 1.0, %v2946_v60  ;;  %v2948_v50 = vpop.eup %2947  ;;  %v1826_v7 = vsel %vm1823_vm8, %v1825_v8, %v1821_v43 }
 0x2e5   : > { %2949 = vrcp.f32 %v4158_v10  ;;  %v4167_v27 = vadd.f32 1.0, %v2948_v50  ;;  %v2027_v41 = vmul.f32 %v1826_v7, %v4129_v22  ;;  %2452 = vmatmul.f32.gmra.mxu1 %v2026_v36  ;;  %v1839_v9 = vand.u32 2147483648, %v4158_v10 }
 0x2e6   : > { %2951 = vpow2.f32 %v2794_v6  ;;  %v1837_v31 = vand.u32 2147483647, %v4158_v10  ;;  %vm1833_vm10 = vweird.f32 %v4158_v10  ;;  %v1854_v48 = vand.u32 2147483648, %v4160_v17 }
 0x2e7   : > { %2953 = vrcp.f32 %v4160_v17  ;;  %2517 = vmatmul.f32.gmra.mxu2 %v2027_v41  ;;  %v1852_v62 = vand.u32 2147483647, %v4160_v17  ;;  %v1840_v18 = vor.u32 1.1754944e-38, %v1839_v9  ;;  %vm1848_vm14 = vweird.f32 %v4160_v17 }
 0x2e8   : > { %2955 = vpow2.f32 %v2805_v33  ;;  %vm1838_vm13 = vcmp.eq.f32.partialorder %v1837_v31, 8.507059e+37  ;;  %v1855_v6 = vor.u32 1.1754944e-38, %v1854_v48  ;;  %v2132_v7 = vand.u32 2147483648, %v4167_v27 }
 0x2e9   : > { %2957 = vrcp.f32 %v4167_v27  ;;  %v4182_v44 = vpop.f32.mrf.mxu2  ;;  %v4192_v16 = vpop.f32.mrf.mxu3  ;;  %vm1853_vm1 = vcmp.eq.f32.partialorder %v1852_v62, 8.507059e+37  ;;  %vm2126_vm7 = vweird.f32 %v4167_v27  ;;  %v2130_v48 = vand.u32 2147483647, %v4167_v27 }
 0x2ea   : > { %2959 = vpow2.f32 %v2806_v34  ;;  %v2796_v2 = vmul.f32 -1.442695, %v4182_v44  ;;  %v2797_v40 = vmul.f32 -1.442695, %v4192_v16 }
 0x2eb   : > { %v2950_v51 = vpop.eup %2949 }
 0x2ec   : > { %v2952_v53 = vpop.eup %2951  ;;  %v1829_v39 = vmul.f32 %v2950_v51, %v4158_v10  ;;  %vm1834_vm9 = vweird.f32 %v2950_v51  ;;  %v4201_v10 = vadd.f32 %v4137_v49, %v1361_v28 }
 0x2ed   : > { %v2954_v42 = vpop.eup %2953  ;;  %v4178_v61 = vadd.f32 1.0, %v2952_v53  ;;  %vm1835_vm12 = vmor %vm1833_vm10, %vm1834_vm9 }
 0x2ee   : > { %v1830_v54 = vsub.f32 1.0, %v1829_v39  ;;  %v1844_v56 = vmul.f32 %v2954_v42, %v4160_v17  ;;  %v2956_v0 = vpop.eup %2955  ;;  %vm1849_vm11 = vweird.f32 %v2954_v42  ;;  %v4229_v39 = vadd.f32 %v4137_v49, %v1364_v21 }
 0x2ef   : > { %2961 = vrcp.f32 %v4178_v61  ;;  %v4187_v52 = vpop.eup %2957  ;;  %v4196_v46 = vadd.f32 1.0, %v2956_v0  ;;  %vm1850_vm15 = vmor %vm1848_vm14, %vm1849_vm11  ;;  %v1869_v14 = vand.u32 2147483648, %v4178_v61  ;;  %v1867_v8 = vand.u32 2147483647, %v4178_v61 }
 0x2f0   : > { %v1831_v5 = vmul.f32 %v2950_v51, %v1830_v54  ;;  %v1845_v22 = vsub.f32 1.0, %v1844_v56  ;;  %2963 = vpow2.f32 %v2795_v26  ;;  %v2960_v58 = vpop.eup %2959  ;;  %v2122_v45 = vmul.f32 %v4187_v52, %v4167_v27 }
 0x2f1   : > { %2965 = vpow2.f32 %v2796_v2  ;;  %v4206_v17 = vpop.f32.mrf.mxu2  ;;  %vm1863_vm3 = vweird.f32 %v4178_v61  ;;  %v4223_v34 = vpop.f32.mrf.mxu3  ;;  %v1870_v53 = vor.u32 1.1754944e-38, %v1869_v14  ;;  %vm1868_vm5 = vcmp.eq.f32.partialorder %v1867_v8, 8.507059e+37 }
 0x2f2   : > { %v1832_v47 = vadd.f32 %v2950_v51, %v1831_v5  ;;  %v1846_v15 = vmul.f32 %v2954_v42, %v1845_v22  ;;  %v2123_v3 = vsub.f32 1.0, %v2122_v45  ;;  %2967 = vpow2.f32 %v2797_v40  ;;  %v1367_v2 = vpop.f32.mrf.mxu0 }
 0x2f3   : > { %2969 = vrcp.f32 %v4196_v46  ;;  %v2798_v12 = vmul.f32 -1.442695, %v4206_v17  ;;  %v2799_v56 = vmul.f32 -1.442695, %v4223_v34  ;;  %vm2127_vm6 = vweird.f32 %v4187_v52 }
 0x2f4   : > { %v1836_v55 = vsel %vm1835_vm12, %v2950_v51, %v1832_v47  ;;  %v1847_v32 = vadd.f32 %v2954_v42, %v1846_v15  ;;  %v2124_v59 = vmul.f32 %v4187_v52, %v2123_v3  ;;  %v4249_v47 = vor.u32 1.1754944e-38, %v2132_v7  ;;  %vm4253_vm8 = vmor %vm2126_vm7, %vm2127_vm6 }
 0x2f5   : > { %v1841_v37 = vsel %vm1838_vm13, %v1840_v18, %v1836_v55  ;;  %v2962_v38 = vpop.eup %2961  ;;  %v2808_v15 = vmul.f32 -1.442695, %v4229_v39  ;;  %v2145_v18 = vand.u32 2147483647, %v4196_v46  ;;  %vm2141_vm7 = vweird.f32 %v4196_v46 }
 0x2f6   : > { %v2028_v60 = vmul.f32 %v1841_v37, %v4144_v35  ;;  %v1851_v33 = vsel %vm1850_vm15, %v2954_v42, %v1847_v32  ;;  %v1859_v4 = vmul.f32 %v2962_v38, %v4178_v61  ;;  %v2964_v50 = vpop.eup %2963  ;;  %v4208_v35 = vadd.f32 1.0, %v2960_v58 }
 0x2f7   : > { %v1856_v11 = vsel %vm1853_vm1, %v1855_v6, %v1851_v33  ;;  %v4211_v25 = vadd.f32 1.0, %v2964_v50  ;;  %v2966_v29 = vpop.eup %2965  ;;  %vm1864_vm2 = vweird.f32 %v2962_v38  ;;  %v4234_v61 = vadd.f32 %v4187_v52, %v2124_v59 }
 0x2f8   : > { %v2029_v13 = vmul.f32 %v1856_v11, %v4146_v63  ;;  %2455 = vmatmul.f32.gmra.mxu1 %v2028_v60  ;;  %v1860_v23 = vsub.f32 1.0, %v1859_v4  ;;  %v2807_v63 = vmul.f32 -1.442695, %v4201_v10  ;;  %v4221_v51 = vadd.f32 1.0, %v2966_v29  ;;  %v2968_v36 = vpop.eup %2967  ;;  %vm1865_vm4 = vmor %vm1863_vm3, %vm1864_vm2 }
 0x2f9   : > { %2971 = vrcp.f32 %v4211_v25  ;;  %v4226_v41 = vpop.eup %2969  ;;  %v4238_v5 = vadd.f32 1.0, %v2968_v36  ;;  %v2129_v45 = vsel %vm4253_vm8, %v4187_v52, %v4234_v61  ;;  %v2147_v37 = vand.u32 2147483648, %v4196_v46 }
 0x2fa   : > { %2520 = vmatmul.f32.gmra.mxu2 %v2029_v13  ;;  %v1861_v20 = vmul.f32 %v2962_v38, %v1860_v23  ;;  %2973 = vrcp.f32 %v4208_v35  ;;  %v4245_v22 = vmul.f32 %v4226_v41, %v4196_v46  ;;  %v1882_v6 = vand.u32 2147483647, %v4211_v25 }
 0x2fb   : > { %2975 = vpow2.f32 %v2798_v12  ;;  %v1884_v60 = vand.u32 2147483648, %v4211_v25  ;;  %v4276_v4 = vadd.f32 %v4137_v49, %v1367_v2  ;;  %vm1878_vm10 = vweird.f32 %v4211_v25 }
 0x2fc   : > { %v1862_v43 = vadd.f32 %v2962_v38, %v1861_v20  ;;  %2977 = vpow2.f32 %v2807_v63  ;;  %v2138_v33 = vsub.f32 1.0, %v4245_v22  ;;  %vm1883_vm12 = vcmp.eq.f32.partialorder %v1882_v6, 8.507059e+37  ;;  %v4302_v6 = vpop.f32.mrf.mxu3 }
 0x2fd   : > { %2979 = vrcp.f32 %v4221_v51  ;;  %v1885_v12 = vor.u32 1.1754944e-38, %v1884_v60  ;;  %v1897_v63 = vand.u32 2147483647, %v4221_v51  ;;  %v1899_v21 = vand.u32 2147483648, %v4221_v51 }
 0x2fe   : > { %v1866_v42 = vsel %vm1865_vm4, %v2962_v38, %v1862_v43  ;;  %2981 = vrcp.f32 %v4238_v5  ;;  %vm1893_vm14 = vweird.f32 %v4221_v51  ;;  %vm2142_vm3 = vweird.f32 %v4226_v41 }
 0x2ff   : > { %v1871_v54 = vsel %vm1868_vm5, %v1870_v53, %v1866_v42  ;;  %v2972_v9 = vpop.eup %2971  ;;  %2983 = vpow2.f32 %v2799_v56  ;;  %vm1898_vm1 = vcmp.eq.f32.partialorder %v1897_v63, 8.507059e+37  ;;  %v1912_v56 = vand.u32 2147483647, %v4238_v5 }
 0x300   : > { %v2030_v26 = vmul.f32 %v1871_v54, %v4154_v30  ;;  %v4240_v31 = vpop.eup %2973  ;;  %v1874_v0 = vmul.f32 %v2972_v9, %v4211_v25  ;;  %vm1879_vm9 = vweird.f32 %v2972_v9  ;;  %2985 = vpow2.f32 %v2808_v15 }
 0x301   : > { %v2976_v28 = vpop.eup %2975  ;;  %v4271_v40 = vmul.f32 %v4240_v31, %v4208_v35  ;;  %vm1880_vm11 = vmor %vm1878_vm10, %vm1879_vm9  ;;  %v2809_v25 = vmul.f32 -1.442695, %v4276_v4  ;;  %v1900_v54 = vor.u32 1.1754944e-38, %v1899_v21  ;;  %vm1908_vm4 = vweird.f32 %v4238_v5 }
 0x302   : > { %2458 = vmatmul.f32.gmra.mxu1 %v2030_v26  ;;  %v2978_v30 = vpop.eup %2977  ;;  %v1875_v55 = vsub.f32 1.0, %v1874_v0  ;;  %v4258_v32 = vadd.f32 1.0, %v2976_v28  ;;  %vm1913_vm6 = vcmp.eq.f32.partialorder %v1912_v56, 8.507059e+37  ;;  %v2801_v21 = vmul.f32 -1.442695, %v4302_v6 }
 0x303   : > { %v2980_v58 = vpop.eup %2979  ;;  %v4273_v13 = vadd.f32 1.0, %v2978_v30 }
 0x304   : > { %v1876_v38 = vmul.f32 %v2972_v9, %v1875_v55  ;;  %v1889_v11 = vmul.f32 %v2980_v58, %v4221_v51  ;;  %2987 = vrcp.f32 %v4258_v32  ;;  %v2982_v23 = vpop.eup %2981  ;;  %vm1894_vm13 = vweird.f32 %v2980_v58 }
 0x305   : > { %v2984_v14 = vpop.eup %2983  ;;  %v1904_v8 = vmul.f32 %v2982_v23, %v4238_v5  ;;  %2989 = vrcp.f32 %v4273_v13  ;;  %vm1895_vm15 = vmor %vm1893_vm14, %vm1894_vm13  ;;  %vm1909_vm2 = vweird.f32 %v2982_v23  ;;  %v2153_v51 = vsub.f32 1.0, %v4271_v40 }
 0x306   : > { %v1877_v50 = vadd.f32 %v2972_v9, %v1876_v38  ;;  %v1890_v3 = vsub.f32 1.0, %v1889_v11  ;;  %v4287_v53 = vadd.f32 1.0, %v2984_v14  ;;  %v2986_v42 = vpop.eup %2985  ;;  %vm1910_vm5 = vmor %vm1908_vm4, %vm1909_vm2  ;;  %v4308_v11 = vpop.f32.mrf.mxu1  ;;  %v1927_v40 = vand.u32 2147483647, %v4258_v32 }
 0x307   : > { %v1905_v7 = vsub.f32 1.0, %v1904_v8  ;;  %v4296_v30 = vadd.f32 1.0, %v2986_v42  ;;  %v2154_v8 = vmul.f32 %v4240_v31, %v2153_v51  ;;  %vm1923_vm10 = vweird.f32 %v4258_v32 }
 0x308   : > { %v1881_v29 = vsel %vm1880_vm11, %v2972_v9, %v1877_v50  ;;  %v1891_v20 = vmul.f32 %v2980_v58, %v1890_v3  ;;  %v1914_v9 = vand.u32 2147483648, %v4238_v5  ;;  %2991 = vrcp.f32 %v4287_v53  ;;  %v1370_v3 = vpop.f32.mrf.mxu0 }
 0x309   : > { %v1886_v59 = vsel %vm1883_vm12, %v1885_v12, %v1881_v29  ;;  %v1906_v0 = vmul.f32 %v2982_v23, %v1905_v7  ;;  %2993 = vpow2.f32 %v2809_v25  ;;  %v1929_v5 = vand.u32 2147483648, %v4258_v32 }
 0x30a   : > { %v2031_v43 = vmul.f32 %v1886_v59, %v4169_v57  ;;  %v1892_v36 = vadd.f32 %v2980_v58, %v1891_v20  ;;  %v2988_v26 = vpop.eup %2987  ;;  %v2139_v57 = vmul.f32 %v4226_v41, %v2138_v33  ;;  %v1915_v33 = vor.u32 1.1754944e-38, %v1914_v9 }
 0x30b   : > { %v1919_v15 = vmul.f32 %v2988_v26, %v4258_v32  ;;  %v1907_v55 = vadd.f32 %v2982_v23, %v1906_v0  ;;  %v4304_v60 = vpop.eup %2989  ;;  %vm1924_vm9 = vweird.f32 %v2988_v26  ;;  %v2160_v20 = vand.u32 2147483647, %v4208_v35  ;;  %v4334_v0 = vpop.f32.mrf.mxu3 }
 0x30c   : > { %v1896_v22 = vsel %vm1895_vm15, %v2980_v58, %v1892_v36  ;;  %2523 = vmatmul.f32.gmra.mxu2 %v2031_v43  ;;  %v4300_v58 = vpop.f32.mrf.mxu2  ;;  %v4315_v29 = vadd.f32 %v4226_v41, %v2139_v57  ;;  %vm2156_vm11 = vweird.f32 %v4208_v35  ;;  %v2167_v43 = vmul.f32 %v4304_v60, %v4273_v13  ;;  %vm1925_vm12 = vmor %vm1923_vm10, %vm1924_vm9 }
 0x30d   : > { %v1901_v28 = vsel %vm1898_vm1, %v1900_v54, %v1896_v22  ;;  %v1920_v38 = vsub.f32 1.0, %v1919_v15  ;;  %v2800_v50 = vmul.f32 -1.442695, %v4300_v58  ;;  %v4327_v36 = vadd.f32 %v4137_v49, %v1370_v3  ;;  %vm4347_vm15 = vmor %vm2141_vm7, %vm2142_vm3 }
 0x30e   : > { %v2032_v2 = vmul.f32 %v1901_v28, %v4182_v44  ;;  %v1911_v44 = vsel %vm1910_vm5, %v2982_v23, %v1907_v55  ;;  %v2992_v14 = vpop.eup %2991  ;;  %vm1928_vm13 = vcmp.eq.f32.partialorder %v1927_v40, 8.507059e+37  ;;  %v1942_v56 = vand.u32 2147483647, %v4287_v53  ;;  %v4358_v3 = vpop.f32.mrf.mxu1 }
 0x30f   : > { %v1916_v12 = vsel %vm1913_vm6, %v1915_v33, %v1911_v44  ;;  %v1921_v63 = vmul.f32 %v2988_v26, %v1920_v38  ;;  %2995 = vpow2.f32 %v2800_v50  ;;  %v1934_v59 = vmul.f32 %v2992_v14, %v4287_v53  ;;  %v2994_v7 = vpop.eup %2993 }
 0x310   : > { %2461 = vmatmul.f32.gmra.mxu1 %v2032_v2  ;;  %v2033_v23 = vmul.f32 %v1916_v12, %v4192_v16  ;;  %2997 = vrcp.f32 %v4296_v30  ;;  %v1930_v16 = vor.u32 1.1754944e-38, %v1929_v5  ;;  %vm1939_vm14 = vweird.f32 %v2992_v14 }
 0x311   : > { %v1922_v25 = vadd.f32 %v2988_v26, %v1921_v63  ;;  %v1935_v32 = vsub.f32 1.0, %v1934_v59  ;;  %2999 = vpow2.f32 %v2801_v21  ;;  %v1944_v9 = vand.u32 2147483648, %v4287_v53 }
 0x312   : > { %v2162_v2 = vand.u32 2147483648, %v4208_v35  ;;  %v2168_v55 = vsub.f32 1.0, %v2167_v43  ;;  %v4340_v33 = vadd.f32 1.0, %v2994_v7  ;;  %v2810_v38 = vmul.f32 -1.442695, %v4327_v36  ;;  %v1373_v43 = vpop.f32.mrf.mxu0 }
 0x313   : > { %v1926_v42 = vsel %vm1925_vm12, %v2988_v26, %v1922_v25  ;;  %v1936_v51 = vmul.f32 %v2992_v14, %v1935_v32  ;;  %v2803_v26 = vmul.f32 -1.442695, %v4334_v0  ;;  %vm1938_vm1 = vweird.f32 %v4287_v53 }
 0x314   : > { %2526 = vmatmul.f32.gmra.mxu2 %v2033_v23  ;;  %v1931_v54 = vsel %vm1928_vm13, %v1930_v16, %v1926_v42  ;;  %v4332_v22 = vpop.f32.mrf.mxu2  ;;  %v2155_v50 = vadd.f32 %v4240_v31, %v2154_v8  ;;  %vm2157_vm2 = vweird.f32 %v4240_v31  ;;  %vm1940_vm3 = vmor %vm1938_vm1, %vm1939_vm14  ;;  %v1945_v12 = vor.u32 1.1754944e-38, %v1944_v9 }
 0x315   : > { %v2034_v57 = vmul.f32 %v1931_v54, %v4206_v17  ;;  %v2802_v28 = vmul.f32 -1.442695, %v4332_v22  ;;  %v2996_v15 = vpop.eup %2995  ;;  %v1937_v17 = vadd.f32 %v2992_v14, %v1936_v51  ;;  %v2144_v53 = vsel %vm4347_vm15, %v4226_v41, %v4315_v29  ;;  %vm4376_vm5 = vmor %vm2156_vm11, %vm2157_vm2 }
 0x316   : > { %v4352_v40 = vadd.f32 1.0, %v2996_v15  ;;  %v4354_v5 = vpop.eup %2997  ;;  %vm1943_vm4 = vcmp.eq.f32.partialorder %v1942_v56, 8.507059e+37  ;;  %v2169_v23 = vmul.f32 %v4304_v60, %v2168_v55  ;;  %v2148_v59 = vor.u32 1.1754944e-38, %v2147_v37 }
 0x317   : > { %3001 = vpow2.f32 %v2802_v28  ;;  %v3000_v63 = vpop.eup %2999  ;;  %v1941_v21 = vsel %vm1940_vm3, %v2992_v14, %v1937_v17  ;;  %v2182_v14 = vmul.f32 %v4354_v5, %v4296_v30  ;;  %vm2131_vm6 = vcmp.eq.f32.partialorder %v2130_v48, 8.507059e+37 }
 0x318   : > { %2464 = vmatmul.f32.gmra.mxu1 %v2034_v57  ;;  %3003 = vpow2.f32 %v2803_v26  ;;  %v1946_v8 = vsel %vm1943_vm4, %v1945_v12, %v1941_v21  ;;  %v4368_v25 = vadd.f32 1.0, %v3000_v63  ;;  %vm2146_vm7 = vcmp.eq.f32.partialorder %v2145_v18, 8.507059e+37  ;;  %v4439_v26 = vpop.f32.mrf.mxu1 }
 0x319   : > { %3005 = vrcp.f32 %v4352_v40  ;;  %v2035_v29 = vmul.f32 %v1946_v8, %v4223_v34  ;;  %v2159_v37 = vsel %vm4376_vm5, %v4240_v31, %v2155_v50  ;;  %v2134_v27 = vsel %vm2131_vm6, %v4249_v47, %v2129_v45 }
 0x31a   : > { %3007 = vrcp.f32 %v4340_v33  ;;  %v2149_v34 = vsel %vm2146_vm7, %v2148_v59, %v2144_v53  ;;  %vm2161_vm9 = vcmp.eq.f32.partialorder %v2160_v20, 8.507059e+37  ;;  %v2163_v46 = vor.u32 1.1754944e-38, %v2162_v2  ;;  %v1376_v63 = vpop.f32.mrf.mxu0 }
 0x31b   : > { %3009 = vpow2.f32 %v2810_v38  ;;  %v4404_v31 = vadd.f32 %v4304_v60, %v2169_v23  ;;  %vm2172_vm10 = vweird.f32 %v4304_v60  ;;  %v2177_v18 = vand.u32 2147483648, %v4273_v13 }
 0x31c   : > { %3011 = vrcp.f32 %v4368_v25  ;;  %v2491_v16 = vpop.f32.mrf.mxu2  ;;  %2529 = vmatmul.f32.gmra.mxu2 %v2035_v29  ;;  %v2164_v61 = vsel %vm2161_vm9, %v2163_v46, %v2159_v37  ;;  %v2183_v47 = vsub.f32 1.0, %v2182_v14  ;;  %v4412_v45 = vadd.f32 %v4137_v49, %v1373_v43 }
 0x31d   : > { %v3002_v7 = vpop.eup %3001  ;;  %v2361_v20 = vmul.f32 %v2134_v27, %v4142_v1  ;;  %vm2171_vm8 = vweird.f32 %v4273_v13  ;;  %v4420_v54 = vmul.f32 %v2149_v34, %v4152_v24  ;;  %v2175_v9 = vand.u32 2147483647, %v4273_v13 }
 0x31e   : > { %v3004_v48 = vpop.eup %3003  ;;  %v4408_v62 = vadd.f32 1.0, %v3002_v7  ;;  %vm4422_vm11 = vmor %vm2171_vm8, %vm2172_vm10  ;;  %v4431_v1 = vmul.f32 %v2164_v61, %v4164_v19  ;;  %v4437_v28 = vor.u32 1.1754944e-38, %v2177_v18  ;;  %v4447_v13 = vmul.f32 %v4354_v5, %v2183_v47 }
 0x31f   : > { %v3006_v52 = vpop.eup %3005  ;;  %v4428_v57 = vadd.f32 1.0, %v3004_v48  ;;  %v2174_v24 = vsel %vm4422_vm11, %v4304_v60, %v4404_v31  ;;  %v2811_v2 = vmul.f32 -1.442695, %v4412_v45  ;;  %v1959_v19 = vand.u32 2147483648, %v4352_v40 }
 0x320   : > { %v4414_v35 = vpop.eup %3007  ;;  %v1949_v42 = vmul.f32 %v3006_v52, %v4352_v40  ;;  %3013 = vrcp.f32 %v4408_v62  ;;  %vm1954_vm12 = vweird.f32 %v3006_v52  ;;  %v1957_v17 = vand.u32 2147483647, %v4352_v40 }
 0x321   : > { %v3010_v32 = vpop.eup %3009  ;;  %v4454_v38 = vmul.f32 %v4414_v35, %v4340_v33  ;;  %v1972_v21 = vand.u32 2147483647, %v4368_v25  ;;  %3015 = vrcp.f32 %v4428_v57  ;;  %vm1953_vm13 = vweird.f32 %v4352_v40 }
 0x322   : > { %v3012_v51 = vpop.eup %3011  ;;  %v1950_v15 = vsub.f32 1.0, %v1949_v42  ;;  %v4457_v12 = vadd.f32 1.0, %v3010_v32  ;;  %v1974_v8 = vand.u32 2147483648, %v4368_v25  ;;  %v2492_v59 = vadd.f32 %v2491_v16, %v4308_v11  ;;  %vm1955_vm14 = vmor %vm1953_vm13, %vm1954_vm12  ;;  %v2435_v42 = vpop.f32.mrf.mxu1 }
 0x323   : > { %v1964_v55 = vmul.f32 %v3012_v51, %v4368_v25  ;;  %3017 = vpow2.f32 %v2811_v2  ;;  %v1960_v14 = vor.u32 1.1754944e-38, %v1959_v19  ;;  %vm1969_vm15 = vweird.f32 %v3012_v51 }
 0x324   : > { %v1951_v44 = vmul.f32 %v3006_v52, %v1950_v15  ;;  %v2494_v50 = vpop.f32.mrf.mxu2  ;;  %vm4466_vm1 = vcmp.eq.f32.partialorder %v2175_v9, 8.507059e+37  ;;  %v4471_v43 = vadd.f32 %v4137_v49, %v1376_v63  ;;  %vm1958_vm2 = vcmp.eq.f32.partialorder %v1957_v17, 8.507059e+37 }
 0x325   : > { %v1965_v53 = vsub.f32 1.0, %v1964_v55  ;;  %vm1968_vm3 = vweird.f32 %v4368_v25  ;;  %vm1973_vm4 = vcmp.eq.f32.partialorder %v1972_v21, 8.507059e+37  ;;  %v1975_v34 = vor.u32 1.1754944e-38, %v1974_v8 }
 0x326   : > { %v1952_v23 = vadd.f32 %v3006_v52, %v1951_v44  ;;  %v3014_v41 = vpop.eup %3013  ;;  %vm1970_vm5 = vmor %vm1968_vm3, %vm1969_vm15  ;;  %v2539_v48 = vadd.f32 %v2492_v59, %v2361_v20  ;;  %v1987_v61 = vand.u32 2147483647, %v4408_v62  ;;  %v1989_v47 = vand.u32 2147483648, %v4408_v62 }
 0x327   : > { %v1966_v29 = vmul.f32 %v3012_v51, %v1965_v53  ;;  %v1979_v7 = vmul.f32 %v3014_v41, %v4408_v62  ;;  %v3016_v18 = vpop.eup %3015  ;;  %v2495_v25 = vadd.f32 %v2494_v50, %v4358_v3  ;;  %vm1984_vm6 = vweird.f32 %v3014_v41 }
 0x328   : > { %v1956_v40 = vsel %vm1955_vm14, %v3006_v52, %v1952_v23  ;;  %v1994_v15 = vmul.f32 %v3016_v18, %v4428_v57  ;;  %2555 = vst.msk [vmem:[%s4478_s7] sm:$0xff] %vm265_vm0, %v2539_v48  ;;  %3019 = vrcp.f32 %v4457_v12  ;;  %v2812_v20 = vmul.f32 -1.442695, %v4471_v43 }
 0x329   : > { %v1961_v27 = vsel %vm1958_vm2, %v1960_v14, %v1956_v40  ;;  %v1967_v11 = vadd.f32 %v3012_v51, %v1966_v29  ;;  %v1980_v46 = vsub.f32 1.0, %v1979_v7  ;;  %v3018_v2 = vpop.eup %3017  ;;  %v2540_v19 = vadd.f32 %v2495_v25, %v4420_v54  ;;  %v1379_v29 = vpop.f32.mrf.mxu0 }
 0x32a   : > { %v2036_v16 = vmul.f32 %v1961_v27, %v4300_v58  ;;  %vm1983_vm7 = vweird.f32 %v4408_v62  ;;  %v1995_v55 = vsub.f32 1.0, %v1994_v15  ;;  %vm1988_vm10 = vcmp.eq.f32.partialorder %v1987_v61, 8.507059e+37  ;;  %v2438_v37 = vpop.f32.mrf.mxu1 }
 0x32b   : > { %v1971_v52 = vsel %vm1970_vm5, %v3012_v51, %v1967_v11  ;;  %v1981_v9 = vmul.f32 %v3014_v41, %v1980_v46  ;;  %vm1985_vm9 = vmor %vm1983_vm7, %vm1984_vm6  ;;  %v1990_v17 = vor.u32 1.1754944e-38, %v1989_v47  ;;  %v2002_v50 = vand.u32 2147483647, %v4428_v57  ;;  %2556 = vst.msk [vmem:[%s4478_s7 + $0x8] sm:$0xff] %vm265_vm0, %v2540_v19 }
 0x32c   : > { %v1976_v32 = vsel %vm1973_vm4, %v1975_v34, %v1971_v52  ;;  %v2497_v58 = vpop.f32.mrf.mxu2  ;;  %2467 = vmatmul.f32.gmra.mxu1 %v2036_v16  ;;  %v2004_v63 = vand.u32 2147483648, %v4428_v57  ;;  %v1996_v54 = vmul.f32 %v3016_v18, %v1995_v55  ;;  %vm1999_vm8 = vweird.f32 %v3016_v18 }
 0x32d   : > { %v2037_v51 = vmul.f32 %v1976_v32, %v4302_v6  ;;  %v1982_v3 = vadd.f32 %v3014_v41, %v1981_v9  ;;  %v2498_v44 = vadd.f32 %v2497_v58, %v4439_v26  ;;  %v2179_v62 = vsel %vm4466_vm1, %v4437_v28, %v2174_v24 }
 0x32e   : > { %v2198_v26 = vsub.f32 1.0, %v4454_v38  ;;  %3021 = vpow2.f32 %v2812_v20  ;;  %v4507_v23 = vadd.f32 1.0, %v3018_v2  ;;  %v1997_v59 = vadd.f32 %v3016_v18, %v1996_v54  ;;  %v4513_v56 = vpop.eup %3019 }
 0x32f   : > { %2532 = vmatmul.f32.gmra.mxu2 %v2037_v51  ;;  %v1986_v6 = vsel %vm1985_vm9, %v3014_v41, %v1982_v3  ;;  %v2541_v53 = vadd.f32 %v2498_v44, %v4431_v1  ;;  %vm1998_vm12 = vweird.f32 %v4428_v57  ;;  %v2185_v60 = vadd.f32 %v4354_v5, %v4447_v13 }
 0x330   : > { %v1991_v21 = vsel %vm1988_vm10, %v1990_v17, %v1986_v6  ;;  %vm2187_vm11 = vweird.f32 %v4354_v5  ;;  %vm2000_vm13 = vmor %vm1998_vm12, %vm1999_vm8  ;;  %v2005_v31 = vor.u32 1.1754944e-38, %v2004_v63  ;;  %vm2186_vm14 = vweird.f32 %v4296_v30 }
 0x331   : > { %v2038_v8 = vmul.f32 %v1991_v21, %v4332_v22  ;;  %2557 = vst.msk [vmem:[%s4478_s7 + $0x10] sm:$0xff] %vm265_vm0, %v2541_v53  ;;  %v2192_v1 = vand.u32 2147483648, %v4296_v30  ;;  %v2001_v24 = vsel %vm2000_vm13, %v3016_v18, %v1997_v59  ;;  %vm2003_vm15 = vcmp.eq.f32.partialorder %v2002_v50, 8.507059e+37  ;;  %vm4522_vm1 = vmor %vm2186_vm14, %vm2187_vm11 }
 0x332   : > { %v2364_v57 = vmul.f32 %v2179_v62, %v4201_v10  ;;  %v2190_v28 = vand.u32 2147483647, %v4296_v30  ;;  %v2006_v38 = vsel %vm2003_vm15, %v2005_v31, %v2001_v24  ;;  %v2199_v14 = vmul.f32 %v4414_v35, %v2198_v26 }
 0x333   : > { %3023 = vrcp.f32 %v4507_v23  ;;  %v2039_v40 = vmul.f32 %v2006_v38, %v4334_v0  ;;  %v2189_v10 = vsel %vm4522_vm1, %v4354_v5, %v2185_v60  ;;  %v2212_v30 = vmul.f32 %v4513_v56, %v4457_v12 }
 0x334   : > { %v2500_v22 = vpop.f32.mrf.mxu2  ;;  %2470 = vmatmul.f32.gmra.mxu1 %v2038_v8  ;;  %v3022_v7 = vpop.eup %3021  ;;  %v2193_v11 = vor.u32 1.1754944e-38, %v2192_v1  ;;  %vm2191_vm2 = vcmp.eq.f32.partialorder %v2190_v28, 8.507059e+37  ;;  %v4535_v16 = vadd.f32 %v4137_v49, %v1379_v29  ;;  %v2200_v0 = vadd.f32 %v4414_v35, %v2199_v14 }
 0x335   : > { %v2501_v41 = vadd.f32 %v2500_v22, %v2435_v42  ;;  %vm2202_vm3 = vweird.f32 %v4414_v35  ;;  %v4541_v46 = vadd.f32 1.0, %v3022_v7  ;;  %v2207_v5 = vand.u32 2147483648, %v4340_v33 }
 0x336   : > { %v2194_v34 = vsel %vm2191_vm2, %v2193_v11, %v2189_v10  ;;  %v2213_v48 = vsub.f32 1.0, %v2212_v30  ;;  %vm2201_vm4 = vweird.f32 %v4340_v33  ;;  %v2205_v52 = vand.u32 2147483647, %v4340_v33  ;;  %v2441_v33 = vpop.f32.mrf.mxu1 }
 0x337   : > { %v2542_v27 = vadd.f32 %v2501_v41, %v2364_v57  ;;  %2535 = vmatmul.f32.gmra.mxu2 %v2039_v40  ;;  %v2365_v47 = vmul.f32 %v2194_v34, %v4229_v39  ;;  %vm2203_vm5 = vmor %vm2201_vm4, %vm2202_vm3  ;;  %v2813_v25 = vmul.f32 -1.442695, %v4535_v16  ;;  %3025 = vrcp.f32 %v4541_v46  ;;  %v1382_v39 = vpop.f32.mrf.mxu0 }
 0x338   : > { %v2204_v32 = vsel %vm2203_vm5, %v4414_v35, %v2200_v0  ;;  %v2208_v9 = vor.u32 1.1754944e-38, %v2207_v5  ;;  %v2214_v15 = vmul.f32 %v4513_v56, %v2213_v48  ;;  %vm2206_vm6 = vcmp.eq.f32.partialorder %v2205_v52, 8.507059e+37 }
 0x339   : > { %2558 = vst.msk [vmem:[%s4478_s7 + $0x18] sm:$0xff] %vm265_vm0, %v2542_v27  ;;  %v4544_v18 = vpop.eup %3023  ;;  %3027 = vpow2.f32 %v2813_v25  ;;  %vm2217_vm7 = vweird.f32 %v4513_v56  ;;  %v2222_v55 = vand.u32 2147483648, %v4457_v12  ;;  %vm2216_vm9 = vweird.f32 %v4457_v12 }
 0x33a   : > { %v2227_v58 = vmul.f32 %v4544_v18, %v4507_v23  ;;  %v2209_v20 = vsel %vm2206_vm6, %v2208_v9, %v2204_v32  ;;  %v2215_v51 = vadd.f32 %v4513_v56, %v2214_v15  ;;  %v2220_v17 = vand.u32 2147483647, %v4457_v12  ;;  %vm2218_vm10 = vmor %vm2216_vm9, %vm2217_vm7 }
 0x33b   : > { %v2366_v3 = vmul.f32 %v2209_v20, %v4276_v4  ;;  %v4564_v50 = vadd.f32 %v4137_v49, %v1382_v39  ;;  %v2223_v26 = vor.u32 1.1754944e-38, %v2222_v55  ;;  %vm2232_vm12 = vweird.f32 %v4544_v18 }
 0x33c   : > { %v2503_v61 = vpop.f32.mrf.mxu2  ;;  %v2228_v35 = vsub.f32 1.0, %v2227_v58  ;;  %v2219_v54 = vsel %vm2218_vm10, %v4513_v56, %v2215_v51  ;;  %vm2221_vm8 = vcmp.eq.f32.partialorder %v2220_v17, 8.507059e+37  ;;  %vm2231_vm11 = vweird.f32 %v4507_v23 }
 0x33d   : > { %v2504_v42 = vadd.f32 %v2503_v61, %v2438_v37  ;;  %v3026_v19 = vpop.eup %3025  ;;  %v2814_v21 = vmul.f32 -1.442695, %v4564_v50  ;;  %v2224_v12 = vsel %vm2221_vm8, %v2223_v26, %v2219_v54  ;;  %v2237_v31 = vand.u32 2147483648, %v4507_v23  ;;  %vm2233_vm13 = vmor %vm2231_vm11, %vm2232_vm12 }
 0x33e   : > { %v2229_v53 = vmul.f32 %v4544_v18, %v2228_v35  ;;  %v2242_v4 = vmul.f32 %v3026_v19, %v4541_v46  ;;  %v2444_v59 = vpop.f32.mrf.mxu1  ;;  %v2367_v24 = vmul.f32 %v2224_v12, %v4327_v36  ;;  %v2235_v22 = vand.u32 2147483647, %v4507_v23 }
 0x33f   : > { %v2543_v2 = vadd.f32 %v2504_v42, %v2365_v47  ;;  %v3028_v6 = vpop.eup %3027  ;;  %3029 = vpow2.f32 %v2814_v21  ;;  %v2238_v13 = vor.u32 1.1754944e-38, %v2237_v31  ;;  %vm2247_vm15 = vweird.f32 %v3026_v19  ;;  %v1385_v27 = vpop.f32.mrf.mxu0 }
 0x340   : > { %v4572_v8 = vadd.f32 1.0, %v3028_v6  ;;  %v2230_v60 = vadd.f32 %v4544_v18, %v2229_v53  ;;  %v2243_v56 = vsub.f32 1.0, %v2242_v4  ;;  %vm2236_vm14 = vcmp.eq.f32.partialorder %v2235_v22, 8.507059e+37 }
 0x341   : > { %2559 = vst.msk [vmem:[%s4478_s7 + $0x20] sm:$0xff] %vm265_vm0, %v2543_v2  ;;  %v2252_v23 = vand.u32 2147483648, %v4541_v46  ;;  %vm2246_vm1 = vweird.f32 %v4541_v46  ;;  %v2250_v30 = vand.u32 2147483647, %v4541_v46 }
 0x342   : > { %3031 = vrcp.f32 %v4572_v8  ;;  %v2234_v28 = vsel %vm2233_vm13, %v4544_v18, %v2230_v60  ;;  %v2244_v38 = vmul.f32 %v3026_v19, %v2243_v56  ;;  %vm2248_vm2 = vmor %vm2246_vm1, %vm2247_vm15  ;;  %v2267_v51 = vand.u32 2147483648, %v4572_v8 }
 0x343   : > { %v2239_v14 = vsel %vm2236_vm14, %v2238_v13, %v2234_v28  ;;  %v2253_v18 = vor.u32 1.1754944e-38, %v2252_v23  ;;  %vm2251_vm3 = vcmp.eq.f32.partialorder %v2250_v30, 8.507059e+37  ;;  %vm2261_vm5 = vweird.f32 %v4572_v8 }
 0x344   : > { %v2506_v44 = vpop.f32.mrf.mxu2  ;;  %v2245_v37 = vadd.f32 %v3026_v19, %v2244_v38  ;;  %v2368_v10 = vmul.f32 %v2239_v14, %v4412_v45  ;;  %v4592_v45 = vadd.f32 %v4137_v49, %v1385_v27 }
 0x345   : > { %v2507_v63 = vadd.f32 %v2506_v44, %v2441_v33  ;;  %v3030_v29 = vpop.eup %3029  ;;  %v2268_v44 = vor.u32 1.1754944e-38, %v2267_v51 }
 0x346   : > { %v2447_v40 = vpop.f32.mrf.mxu1  ;;  %v2115_v34 = vadd.f32 1.0, %v3030_v29  ;;  %v2249_v0 = vsel %vm2248_vm2, %v3026_v19, %v2245_v37  ;;  %v2815_v32 = vmul.f32 -1.442695, %v4592_v45 }
 0x347   : > { %v2544_v62 = vadd.f32 %v2507_v63, %v2366_v3  ;;  %v2254_v52 = vsel %vm2251_vm3, %v2253_v18, %v2249_v0  ;;  %v1388_v15 = vpop.f32.mrf.mxu0 }
 0x348   : > { %v3032_v36 = vpop.eup %3031  ;;  %3033 = vrcp.f32 %v2115_v34  ;;  %v2369_v25 = vmul.f32 %v2254_v52, %v4471_v43  ;;  %v4599_v33 = vadd.f32 %v4137_v49, %v1388_v15  ;;  %v2265_v43 = vand.u32 2147483647, %v4572_v8 }
 0x349   : > { %2560 = vst.msk [vmem:[%s4478_s7 + $0x28] sm:$0xff] %vm265_vm0, %v2544_v62  ;;  %v2257_v5 = vmul.f32 %v3032_v36, %v4572_v8  ;;  %3035 = vpow2.f32 %v2815_v32  ;;  %vm2262_vm4 = vweird.f32 %v3032_v36  ;;  %v2282_v60 = vand.u32 2147483648, %v2115_v34 }
 0x34a   : > { %vm2263_vm6 = vmor %vm2261_vm5, %vm2262_vm4  ;;  %v2816_v35 = vmul.f32 -1.442695, %v4599_v33  ;;  %vm2266_vm7 = vcmp.eq.f32.partialorder %v2265_v43, 8.507059e+37  ;;  %vm2276_vm10 = vweird.f32 %v2115_v34  ;;  %v2280_v56 = vand.u32 2147483647, %v2115_v34 }
 0x34b   : > { %v2258_v61 = vsub.f32 1.0, %v2257_v5 }
 0x34c   : > { %v2509_v1 = vpop.f32.mrf.mxu2  ;;  %3037 = vpow2.f32 %v2816_v35  ;;  %vm2281_vm12 = vcmp.eq.f32.partialorder %v2280_v56, 8.507059e+37 }
 0x34d   : > { %v2510_v57 = vadd.f32 %v2509_v1, %v2444_v59  ;;  %v2259_v9 = vmul.f32 %v3032_v36, %v2258_v61 }
 0x34e   : > { %v3034_v2 = vpop.eup %3033 }
 0x34f   : > { %v2545_v41 = vadd.f32 %v2510_v57, %v2367_v24  ;;  %v2260_v20 = vadd.f32 %v3032_v36, %v2259_v9  ;;  %v2272_v39 = vmul.f32 %v3034_v2, %v2115_v34  ;;  %v3036_v55 = vpop.eup %3035  ;;  %v1391_v63 = vpop.f32.mrf.mxu0  ;;  %vm2277_vm9 = vweird.f32 %v3034_v2 }
 0x350   : > { %v2116_v54 = vadd.f32 1.0, %v3036_v55  ;;  %v4607_v26 = vadd.f32 %v4137_v49, %v1391_v63  ;;  %vm2278_vm8 = vmor %vm2276_vm10, %vm2277_vm9 }
 0x351   : > { %2561 = vst.msk [vmem:[%s4478_s7 + $0x30] sm:$0xff] %vm265_vm0, %v2545_v41  ;;  %v2264_v19 = vsel %vm2263_vm6, %v3032_v36, %v2260_v20  ;;  %v2273_v3 = vsub.f32 1.0, %v2272_v39 }
 0x352   : > { %v2269_v17 = vsel %vm2266_vm7, %v2268_v44, %v2264_v19  ;;  %3039 = vrcp.f32 %v2116_v54  ;;  %v3038_v59 = vpop.eup %3037  ;;  %v2817_v31 = vmul.f32 -1.442695, %v4607_v26  ;;  %v2297_v0 = vand.u32 2147483648, %v2116_v54 }
 0x353   : > { %v2274_v6 = vmul.f32 %v3034_v2, %v2273_v3  ;;  %v2370_v62 = vmul.f32 %v2269_v17, %v4535_v16  ;;  %v2117_v24 = vadd.f32 1.0, %v3038_v59  ;;  %v2283_v16 = vor.u32 1.1754944e-38, %v2282_v60 }
 0x354   : > { %v2512_v7 = vpop.f32.mrf.mxu2  ;;  %3041 = vpow2.f32 %v2817_v31  ;;  %vm2291_vm13 = vweird.f32 %v2116_v54 }
 0x355   : > { %v2513_v11 = vadd.f32 %v2512_v7, %v2447_v40  ;;  %v2275_v12 = vadd.f32 %v3034_v2, %v2274_v6  ;;  %3043 = vrcp.f32 %v2117_v24  ;;  %vm2306_vm2 = vweird.f32 %v2117_v24 }
 0x356   : > { %v2310_v51 = vand.u32 2147483647, %v2117_v24 }
 0x357   : > { %v2546_v48 = vadd.f32 %v2513_v11, %v2368_v10  ;;  %v2450_v46 = vpop.f32.mrf.mxu1  ;;  %v2279_v1 = vsel %vm2278_vm8, %v3034_v2, %v2275_v12  ;;  %v1394_v37 = vpop.f32.mrf.mxu0  ;;  %v2312_v2 = vand.u32 2147483648, %v2117_v24 }
 0x358   : > { %v3040_v22 = vpop.eup %3039  ;;  %v2284_v57 = vsel %vm2281_vm12, %v2283_v16, %v2279_v1  ;;  %v4618_v10 = vadd.f32 %v4137_v49, %v1394_v37  ;;  %vm2311_vm4 = vcmp.eq.f32.partialorder %v2310_v51, 8.507059e+37 }
 0x359   : > { %2562 = vst.msk [vmem:[%s4478_s7 + $0x38] sm:$0xff] %vm265_vm0, %v2546_v48  ;;  %v2287_v28 = vmul.f32 %v3040_v22, %v2116_v54  ;;  %v2371_v13 = vmul.f32 %v2284_v57, %v4564_v50  ;;  %vm2292_vm11 = vweird.f32 %v3040_v22  ;;  %v2295_v48 = vand.u32 2147483647, %v2116_v54 }
 0x35a   : > { %v3042_v29 = vpop.eup %3041  ;;  %v2818_v11 = vmul.f32 -1.442695, %v4618_v10  ;;  %vm2293_vm14 = vmor %vm2291_vm13, %vm2292_vm11  ;;  %v2313_v55 = vor.u32 1.1754944e-38, %v2312_v2 }
 0x35b   : > { %v2288_v23 = vsub.f32 1.0, %v2287_v28  ;;  %v3044_v40 = vpop.eup %3043  ;;  %v4615_v7 = vadd.f32 1.0, %v3042_v29  ;;  %vm2296_vm15 = vcmp.eq.f32.partialorder %v2295_v48, 8.507059e+37 }
 0x35c   : > { %v2302_v27 = vmul.f32 %v3044_v40, %v2117_v24  ;;  %vm2307_vm1 = vweird.f32 %v3044_v40 }
 0x35d   : > { %v2289_v30 = vmul.f32 %v3040_v22, %v2288_v23  ;;  %3045 = vrcp.f32 %v4615_v7  ;;  %vm2308_vm3 = vmor %vm2306_vm2, %vm2307_vm1  ;;  %vm2321_vm6 = vweird.f32 %v4615_v7  ;;  %v2325_v12 = vand.u32 2147483647, %v4615_v7 }
 0x35e   : > { %v2515_v47 = vpop.f32.mrf.mxu2  ;;  %v2303_v34 = vsub.f32 1.0, %v2302_v27  ;;  %3047 = vpow2.f32 %v2818_v11 }
 0x35f   : > { %v2516_v42 = vadd.f32 %v2515_v47, %v2450_v46  ;;  %v2290_v50 = vadd.f32 %v3040_v22, %v2289_v30  ;;  %v1397_v5 = vpop.f32.mrf.mxu0  ;;  %v2298_v47 = vor.u32 1.1754944e-38, %v2297_v0  ;;  %vm2326_vm9 = vcmp.eq.f32.partialorder %v2325_v12, 8.507059e+37 }
 0x360   : > { %v2304_v61 = vmul.f32 %v3044_v40, %v2303_v34  ;;  %v4623_v46 = vadd.f32 %v4137_v49, %v1397_v5 }
 0x361   : > { %v2547_v58 = vadd.f32 %v2516_v42, %v2369_v25  ;;  %v2294_v52 = vsel %vm2293_vm14, %v3040_v22, %v2290_v50 }
 0x362   : > { %v2453_v53 = vpop.f32.mrf.mxu1  ;;  %v2299_v25 = vsel %vm2296_vm15, %v2298_v47, %v2294_v52  ;;  %v2305_v9 = vadd.f32 %v3044_v40, %v2304_v61  ;;  %v2819_v15 = vmul.f32 -1.442695, %v4623_v46 }
 0x363   : > { %2563 = vst.msk [vmem:[%s4478_s7 + $0x40] sm:$0xff] %vm265_vm0, %v2547_v58  ;;  %v3046_v18 = vpop.eup %3045  ;;  %v2372_v39 = vmul.f32 %v2299_v25, %v4592_v45 }
 0x364   : > { %v2317_v42 = vmul.f32 %v3046_v18, %v4615_v7  ;;  %v3048_v58 = vpop.eup %3047  ;;  %v2309_v35 = vsel %vm2308_vm3, %v3044_v40, %v2305_v9  ;;  %3049 = vpow2.f32 %v2819_v15  ;;  %vm2322_vm5 = vweird.f32 %v3046_v18 }
 0x365   : > { %v2119_v19 = vadd.f32 1.0, %v3048_v58  ;;  %v2314_v44 = vsel %vm2311_vm4, %v2313_v55, %v2309_v35  ;;  %vm2323_vm7 = vmor %vm2321_vm6, %vm2322_vm5 }
 0x366   : > { %v2318_v43 = vsub.f32 1.0, %v2317_v42  ;;  %v2373_v54 = vmul.f32 %v2314_v44, %v4599_v33 }
 0x367   : > { %3051 = vrcp.f32 %v2119_v19  ;;  %v2342_v29 = vand.u32 2147483648, %v2119_v19  ;;  %vm2336_vm8 = vweird.f32 %v2119_v19 }
 0x368   : > { %v2319_v17 = vmul.f32 %v3046_v18, %v2318_v43 }
 0x369   : > { %v2343_v40 = vor.u32 1.1754944e-38, %v2342_v29 }
 0x36a   : > { %v2518_v4 = vpop.f32.mrf.mxu2  ;;  %v3050_v45 = vpop.eup %3049 }
 0x36b   : > { %v2519_v21 = vadd.f32 %v2518_v4, %v2453_v53  ;;  %v2320_v4 = vadd.f32 %v3046_v18, %v2319_v17 }
 0x36d   : > { %v2548_v8 = vadd.f32 %v2519_v21, %v2370_v62  ;;  %v2327_v62 = vand.u32 2147483648, %v4615_v7  ;;  %v3052_v59 = vpop.eup %3051  ;;  %v2324_v60 = vsel %vm2323_vm7, %v3046_v18, %v2320_v4 }
 0x36e   : > { %v2332_v33 = vmul.f32 %v3052_v59, %v2119_v19  ;;  %vm2337_vm10 = vweird.f32 %v3052_v59 }
 0x36f   : > { %2564 = vst.msk [vmem:[%s4478_s7 + $0x48] sm:$0xff] %vm265_vm0, %v2548_v8  ;;  %v2120_v8 = vadd.f32 1.0, %v3050_v45  ;;  %v2328_v56 = vor.u32 1.1754944e-38, %v2327_v62  ;;  %vm2338_vm12 = vmor %vm2336_vm8, %vm2337_vm10 }
 0x370   : > { %v2333_v22 = vsub.f32 1.0, %v2332_v33 }
 0x371   : > { %3053 = vrcp.f32 %v2120_v8  ;;  %v2329_v31 = vsel %vm2326_vm9, %v2328_v56, %v2324_v60  ;;  %v2357_v34 = vand.u32 2147483648, %v2120_v8  ;;  %vm2351_vm14 = vweird.f32 %v2120_v8 }
 0x372   : > { %v2374_v16 = vmul.f32 %v2329_v31, %v4607_v26  ;;  %v2355_v5 = vand.u32 2147483647, %v2120_v8 }
 0x373   : > { %v2358_v52 = vor.u32 1.1754944e-38, %v2357_v34 }
 0x374   : > { %vm2356_vm1 = vcmp.eq.f32.partialorder %v2355_v5, 8.507059e+37 }
 0x375   : > { %v2456_v38 = vpop.f32.mrf.mxu1 }
 0x377   : > { %v3054_v28 = vpop.eup %3053 }
 0x378   : > { %vm2352_vm13 = vweird.f32 %v3054_v28 }
 0x379   : > { %vm2353_vm15 = vmor %vm2351_vm14, %vm2352_vm13 }
 0x37d   : > { %v2521_v41 = vpop.f32.mrf.mxu2 }
 0x37e   : > { %v2522_v14 = vadd.f32 %v2521_v41, %v2456_v38  ;;  %v2334_v41 = vmul.f32 %v3052_v59, %v2333_v22 }
 0x37f   : > { %v2459_v32 = vpop.f32.mrf.mxu1 }
 0x380   : > { %v2549_v36 = vadd.f32 %v2522_v14, %v2371_v13  ;;  %v2347_v13 = vmul.f32 %v3054_v28, %v2120_v8  ;;  %v2335_v14 = vadd.f32 %v3052_v59, %v2334_v41 }
 0x382   : > { %2565 = vst.msk [vmem:[%s4478_s7 + $0x50] sm:$0xff] %vm265_vm0, %v2549_v36  ;;  %v2348_v37 = vsub.f32 1.0, %v2347_v13  ;;  %v2340_v36 = vand.u32 2147483647, %v2119_v19  ;;  %v2339_v23 = vsel %vm2338_vm12, %v3052_v59, %v2335_v14 }
 0x384   : > { %v2349_v7 = vmul.f32 %v3054_v28, %v2348_v37  ;;  %vm2341_vm11 = vcmp.eq.f32.partialorder %v2340_v36, 8.507059e+37 }
 0x385   : > { %v2344_v26 = vsel %vm2341_vm11, %v2343_v40, %v2339_v23 }
 0x386   : > { %v2350_v27 = vadd.f32 %v3054_v28, %v2349_v7  ;;  %v2375_v50 = vmul.f32 %v2344_v26, %v4618_v10 }
 0x388   : > { %v2354_v18 = vsel %vm2353_vm15, %v3054_v28, %v2350_v27 }
 0x389   : > { %v2359_v61 = vsel %vm2356_vm1, %v2358_v52, %v2354_v18 }
 0x38a   : > { %v2376_v42 = vmul.f32 %v2359_v61, %v4623_v46 }
 0x38d   : > { %v2462_v63 = vpop.f32.mrf.mxu1 }
 0x38f   : > { %v2524_v20 = vpop.f32.mrf.mxu2 }
 0x390   : > { %v2525_v49 = vadd.f32 %v2524_v20, %v2459_v32 }
 0x392   : > { %v2550_v3 = vadd.f32 %v2525_v49, %v2372_v39 }
 0x394   : > { %2566 = vst.msk [vmem:[%s4478_s7 + $0x58] sm:$0xff] %vm265_vm0, %v2550_v3 }
 0x395   : > { %v2465_v1 = vpop.f32.mrf.mxu1 }
 0x397   : > { %v2527_v6 = vpop.f32.mrf.mxu2 }
 0x398   : > { %v2528_v53 = vadd.f32 %v2527_v6, %v2462_v63 }
 0x39a   : > { %v2551_v21 = vadd.f32 %v2528_v53, %v2373_v54 }
 0x39c   : > { %2567 = vst.msk [vmem:[%s4478_s7 + $0x60] sm:$0xff] %vm265_vm0, %v2551_v21 }
 0x39f   : > { %v2530_v24 = vpop.f32.mrf.mxu2 }
 0x3a0   : > { %v2531_v57 = vadd.f32 %v2530_v24, %v2465_v1 }
 0x3a2   : > { %v2552_v38 = vadd.f32 %v2531_v57, %v2374_v16 }
 0x3a4   : > { %2568 = vst.msk [vmem:[%s4478_s7 + $0x68] sm:$0xff] %vm265_vm0, %v2552_v38 }
 0x3a9   : > { %v2468_v30 = vpop.f32.mrf.mxu1 }
 0x3b1   : > { %v2471_v47 = vpop.f32.mrf.mxu1 }
 0x3b2   : > { %v2533_v11 = vpop.f32.mrf.mxu2 }
 0x3b3   : > { %v2534_v0 = vadd.f32 %v2533_v11, %v2468_v30 }
 0x3b5   : > { %v2553_v48 = vadd.f32 %v2534_v0, %v2375_v50 }
 0x3b7   : > { %2569 = vst.msk [vmem:[%s4478_s7 + $0x70] sm:$0xff] %vm265_vm0, %v2553_v48 }
 0x3ba   : > { %v2536_v25 = vpop.f32.mrf.mxu2 }
 0x3bb   : > { %v2537_v32 = vadd.f32 %v2536_v25, %v2471_v47 }
 0x3bd   : > { %v2554_v9 = vadd.f32 %v2537_v32, %v2376_v42 }
 0x3bf   : > { %2570 = vst.msk [vmem:[%s4478_s7 + $0x78] sm:$0xff] %vm265_vm0, %v2554_v9 }
 0x3c0 PF: > { %s15_s18 = sadd.s32 1, %s3062_s18  }
 0x3c1   : > { %p12_p5 = scmp.ge.s32.totalorder %s15_s18, 4  }
 0x3c3   :  { %14 = sbr.rel (!%p12_p5) target bundleno = 1 (0x1), region = 73 }

</bundles_post_ra>
